<compile_context>
chip_gen: v7x
topology: tpu7x:2x2x1
jax: 0.10.0
libtpu: 0.0.40
codegen_flags: <defaults>
</compile_context>

<pallas_src>
import functools
import math

import jax
import jax.numpy as jnp
from jax.experimental import pallas as pl
from jax.experimental.pallas import tpu as pltpu


# Above the 16/32 MiB scoped-VMEM defaults, below v7x's 64 MiB physical VMEM.
_VMEM_LIMIT = 48 * 1024 * 1024


# ----------------------------------------------------------------------------
# BatchNorm folding (inference): y = x * scale + shift
# ----------------------------------------------------------------------------
def fold_bn(bn, eps=1e-3):
    # ERFNet uses BatchNorm2d(eps=1e-3) for every BN in this module.
    scale = bn["gamma"] * jax.lax.rsqrt(bn["var"] + eps)
    shift = bn["beta"] - bn["mean"] * scale
    return scale, shift


# ----------------------------------------------------------------------------
# Fused non_bottleneck_1d kernel
# ----------------------------------------------------------------------------
def _nb_halos(d, H, W):
    # zero-pad depth (in flattened rows) needed per conv; 0 => side taps are
    # entirely outside the image and are skipped statically.
    return (W if H > 1 else 0,
            1 if W > 1 else 0,
            d * W if d < H else 0,
            d if d < W else 0)


def _nb_kernel(d, H, W, hmax, x_ref, w1_ref, w2_ref, w3_ref, w4_ref,
               b1_ref, b2_ref, o_ref, p_ref):
    HW = H * W
    C = p_ref.shape[1]
    h1, h2, h3, h4 = _nb_halos(d, H, W)
    col = jax.lax.broadcasted_iota(jnp.int32, (HW, 1), 0) % W

    # Zero the halo rows ONCE; every conv only rewrites the body region, so
    # the halos stay zero for the whole kernel (no full-buffer zero fills).
    if hmax > 0:
        p_ref[0:hmax, :] = jnp.zeros((hmax, C), jnp.float32)
        p_ref[hmax + HW:hmax + HW + hmax, :] = jnp.zeros((hmax, C), jnp.float32)

    x_bf = x_ref[...]                        # (HW, C) bf16 straight from HBM

    def conv(src_bf, src_f32, halo, w_ref, m0, m2):
        # Centre tap directly from the bf16 value (no scratch round-trip).
        acc = jnp.dot(src_bf, w_ref[1], preferred_element_type=jnp.float32)
        if halo == 0:                        # side taps fully outside image
            return acc
        p_ref[hmax:hmax + HW, :] = src_f32   # body only; halo rows stay zero
        for t, off, m in ((0, hmax - halo, m0), (2, hmax + halo, m2)):
            v = p_ref[off:off + HW, :]
            if m is not None:
                v = jnp.where(m, v, 0.0)
            acc = acc + jnp.dot(v.astype(jnp.bfloat16), w_ref[t],
                                preferred_element_type=jnp.float32)
        return acc

    x_f32 = x_bf.astype(jnp.float32)         # reused for the residual add

    # conv3x1_1 -> ReLU
    t1 = jnp.maximum(conv(x_bf, x_f32, h1, w1_ref, None, None), 0.0)
    # conv1x3_1 -> BN1 (scale folded into w2, shift b1) -> ReLU
    m2_0 = (col >= 1) if h2 else None
    m2_2 = (col < (W - 1)) if h2 else None
    t2 = jnp.maximum(conv(t1.astype(jnp.bfloat16), t1, h2, w2_ref, m2_0, m2_2)
                     + b1_ref[...], 0.0)
    # conv3x1_2 (dilated in H) -> ReLU
    t3 = jnp.maximum(conv(t2.astype(jnp.bfloat16), t2, h3, w3_ref, None, None),
                     0.0)
    # conv1x3_2 (dilated in W) -> BN2 -> (+ residual) -> ReLU
    m4_0 = (col >= d) if h4 else None
    m4_2 = (col < (W - d)) if h4 else None
    y = conv(t3.astype(jnp.bfloat16), t3, h4, w4_ref, m4_0, m4_2) + b2_ref[...]
    o_ref[...] = jnp.maximum(y + x_f32, 0.0).astype(o_ref.dtype)


def _prep_nb(p):
    s1, b1 = fold_bn(p["bn1"])
    s2, b2 = fold_bn(p["bn2"])
    w1 = jnp.transpose(p["w31_1"][:, :, :, 0], (2, 1, 0)).astype(jnp.bfloat16)
    w2 = (jnp.transpose(p["w13_1"][:, :, 0, :], (2, 1, 0))
          * s1[None, None, :]).astype(jnp.bfloat16)
    w3 = jnp.transpose(p["w31_2"][:, :, :, 0], (2, 1, 0)).astype(jnp.bfloat16)
    w4 = (jnp.transpose(p["w13_2"][:, :, 0, :], (2, 1, 0))
          * s2[None, None, :]).astype(jnp.bfloat16)
    return w1, w2, w3, w4, b1.reshape(1, -1), b2.reshape(1, -1)


def nb_block(x, h, w, p, d):
    n, hw, c = x.shape
    w1, w2, w3, w4, b1, b2 = _prep_nb(p)
    hmax = max(_nb_halos(d, h, w))
    return pl.pallas_call(
        functools.partial(_nb_kernel, d, h, w, hmax),
        out_shape=jax.ShapeDtypeStruct((n, hw, c), jnp.bfloat16),
        grid=(n,),
        in_specs=[
            pl.BlockSpec((None, hw, c), lambda i: (i, 0, 0)),
            pl.BlockSpec((3, c, c), lambda i: (0, 0, 0)),
            pl.BlockSpec((3, c, c), lambda i: (0, 0, 0)),
            pl.BlockSpec((3, c, c), lambda i: (0, 0, 0)),
            pl.BlockSpec((3, c, c), lambda i: (0, 0, 0)),
            pl.BlockSpec((1, c), lambda i: (0, 0)),
            pl.BlockSpec((1, c), lambda i: (0, 0)),
        ],
        out_specs=pl.BlockSpec((None, hw, c), lambda i: (i, 0, 0)),
        scratch_shapes=[pltpu.VMEM((hw + 2 * hmax, c), jnp.float32)],
        compiler_params=pltpu.CompilerParams(
            dimension_semantics=("parallel",), vmem_limit_bytes=_VMEM_LIMIT),
    )(x, w1, w2, w3, w4, b1, b2)


# ----------------------------------------------------------------------------
# Fused DownsamplerBlockLJW kernel (conv3x3/s2 + maxpool2x2 + concat + BN+ReLU)
# Input is phase-decomposed: x_ph[phase = (h%2)*2 + (w%2)] of shape (HWo, Cin).
# ----------------------------------------------------------------------------
def _down_kernel(Wo, HW, Cconv, Cpool, x_ref, wc_ref, bc_ref, sp_ref, tp_ref,
                 o_ref, q_ref):
    Cin = q_ref.shape[1]
    col = jax.lax.broadcasted_iota(jnp.int32, (HW, 1), 0) % Wo
    mask_w = col >= 1            # valid output cols for taps that look left
    halo = Wo + 1

    # Zero only the halo rows, once (body is rewritten per phase below).
    q_ref[0:halo, :] = jnp.zeros((halo, Cin), jnp.float32)

    xs = [x_ref[ph] for ph in range(4)]      # bf16 (HW, Cin)

    # --- 3x3 stride-2 conv branch (BN scale folded into weights) -> [:Cconv]
    # taps[phase] = (kh*3+kw, flat_shift, needs_col_mask).  Row-boundary taps
    # are covered by the zeroed halo rows.
    taps = (
        ((4, 0, False),),
        ((3, 1, True), (5, 0, False)),
        ((1, Wo, False), (7, 0, False)),
        ((0, Wo + 1, True), (2, Wo, False), (6, 1, True), (8, 0, False)),
    )
    acc = None
    for ph in range(4):
        if any(s > 0 for (_, s, _) in taps[ph]):
            q_ref[halo:halo + HW, :] = xs[ph].astype(jnp.float32)
        for (wi, s, need_mask) in taps[ph]:
            if s == 0:
                v = xs[ph]                                   # already bf16
            else:
                v = q_ref[halo - s:halo - s + HW, :]
                if need_mask:
                    v = jnp.where(mask_w, v, 0.0)
                v = v.astype(jnp.bfloat16)
            part = jnp.dot(v, wc_ref[wi], preferred_element_type=jnp.float32)
            acc = part if acc is None else acc + part
    o_ref[:, :Cconv] = jnp.maximum(acc + bc_ref[...], 0.0).astype(o_ref.dtype)

    # --- max-pool branch (+ BN affine + ReLU) -> output channels [Cconv:]
    pool = jnp.maximum(jnp.maximum(xs[0], xs[1]), jnp.maximum(xs[2], xs[3]))
    pool_out = jnp.maximum(
        pool[:, :Cpool].astype(jnp.float32) * sp_ref[...] + tp_ref[...], 0.0)
    o_ref[:, Cconv:] = pool_out.astype(o_ref.dtype)


def _prep_down(p, cin, cin_p, cconv):
    scale, shift = fold_bn(p["bn"])
    wm = jnp.transpose(p["conv"], (2, 3, 1, 0)).reshape(9, cin, cconv)
    wm = wm * scale[:cconv][None, None, :]
    if cin_p != cin:
        wm = jnp.pad(wm, ((0, 0), (0, cin_p - cin), (0, 0)))
    wm = wm.astype(jnp.bfloat16)
    bc = shift[:cconv].reshape(1, cconv)
    sp = scale[cconv:].reshape(1, cin)
    tp = shift[cconv:].reshape(1, cin)
    return wm, bc, sp, tp


def downsample(x, h, w, p):
    # x: (N, h*w, Cin) bf16; requires even h, w (same assumption as the
    # reference concat of conv(s2,p1) and maxpool(2,2) branches).
    n, hw, cin = x.shape
    assert h % 2 == 0 and w % 2 == 0, "DownsamplerBlockLJW requires even H, W"
    ho, wo = h // 2, w // 2
    hwo = ho * wo
    cconv = p["conv"].shape[0]
    cout = cconv + cin

    # Phase-decompose once (even/odd rows x even/odd cols) -> (N, 4, HWo, Cin).
    xs = (x.reshape(n, ho, 2, wo, 2, cin)
           .transpose(0, 2, 4, 1, 3, 5)
           .reshape(n, 4, hwo, cin))
    cin_p = max(cin, 8)                      # keep contraction dim >= 8
    if cin_p != cin:
        xs = jnp.pad(xs, ((0, 0), (0, 0), (0, 0), (0, cin_p - cin)))

    wc, bc, sp, tp = _prep_down(p, cin, cin_p, cconv)

    out = pl.pallas_call(
        functools.partial(_down_kernel, wo, hwo, cconv, cin),
        out_shape=jax.ShapeDtypeStruct((n, hwo, cout), jnp.bfloat16),
        grid=(n,),
        in_specs=[
            pl.BlockSpec((None, 4, hwo, cin_p), lambda i: (i, 0, 0, 0)),
            pl.BlockSpec((9, cin_p, cconv), lambda i: (0, 0, 0)),
            pl.BlockSpec((1, cconv), lambda i: (0, 0)),
            pl.BlockSpec((1, cin), lambda i: (0, 0)),
            pl.BlockSpec((1, cin), lambda i: (0, 0)),
        ],
        out_specs=pl.BlockSpec((None, hwo, cout), lambda i: (i, 0, 0)),
        scratch_shapes=[pltpu.VMEM((wo + 1 + hwo, cin_p), jnp.float32)],
        compiler_params=pltpu.CompilerParams(
            dimension_semantics=("parallel",), vmem_limit_bytes=_VMEM_LIMIT),
    )(xs, wc, bc, sp, tp)
    return out, ho, wo


# ----------------------------------------------------------------------------
# Fused UpsamplerBlock kernel (ConvTranspose2d k3 s2 p1 op1 + BN + ReLU)
# Decomposed into the 4 output phases; no zero-dilated input is built.
# ----------------------------------------------------------------------------
def _up_kernel(h, w, x_ref, w_ref, b_ref, o_ref, q_ref):
    hw = h * w
    Cin = q_ref.shape[1]
    col = jax.lax.broadcasted_iota(jnp.int32, (hw, 1), 0) % w
    mask_w = col < (w - 1)       # valid cols for taps that look right

    x = x_ref[...]                                   # bf16 (hw, Cin)
    q_ref[0:hw, :] = x.astype(jnp.float32)           # body
    q_ref[hw:hw + w + 1, :] = jnp.zeros((w + 1, Cin), jnp.float32)  # tail halo
    b = b_ref[...]

    # taps[phase = py*2 + px] = (ky*3+kx, flat_row_shift_into_input, mask)
    taps = (
        ((4, 0, False),),
        ((3, 1, True), (5, 0, False)),
        ((1, w, False), (7, 0, False)),
        ((0, w + 1, True), (2, w, False), (6, 1, True), (8, 0, False)),
    )
    for ph in range(4):
        acc = None
        for (wi, s, need_mask) in taps[ph]:
            if s == 0:
                v = x                                # already bf16
            else:
                v = q_ref[s:s + hw, :]
                if need_mask:
                    v = jnp.where(mask_w, v, 0.0)
                v = v.astype(jnp.bfloat16)
            part = jnp.dot(v, w_ref[wi], preferred_element_type=jnp.float32)
            acc = part if acc is None else acc + part
        o_ref[ph, :, :] = jnp.maximum(acc + b, 0.0).astype(o_ref.dtype)


def _prep_up(p):
    scale, shift = fold_bn(p["bn"])
    cin, cout = p["w"].shape[0], p["w"].shape[1]
    wm = jnp.transpose(p["w"], (2, 3, 0, 1)).reshape(9, cin, cout)
    wm = (wm * scale[None, None, :]).astype(jnp.bfloat16)
    return wm, shift.reshape(1, cout)


def upsample(x, h, w, p):
    n, hw, cin = x.shape
    wm, b = _prep_up(p)
    cout = wm.shape[-1]
    out_ph = pl.pallas_call(
        functools.partial(_up_kernel, h, w),
        out_shape=jax.ShapeDtypeStruct((n, 4, hw, cout), jnp.bfloat16),
        grid=(n,),
        in_specs=[
            pl.BlockSpec((None, hw, cin), lambda i: (i, 0, 0)),
            pl.BlockSpec((9, cin, cout), lambda i: (0, 0, 0)),
            pl.BlockSpec((1, cout), lambda i: (0, 0)),
        ],
        out_specs=pl.BlockSpec((None, 4, hw, cout), lambda i: (i, 0, 0, 0)),
        scratch_shapes=[pltpu.VMEM((hw + w + 1, cin), jnp.float32)],
        compiler_params=pltpu.CompilerParams(
            dimension_semantics=("parallel",), vmem_limit_bytes=_VMEM_LIMIT),
    )(x, wm, b)
    # interleave the 4 phases back to (N, (2h)*(2w), Cout)
    out = (out_ph.reshape(n, 2, 2, h, w, cout)
                 .transpose(0, 3, 1, 4, 2, 5)
                 .reshape(n, 4 * hw, cout))
    return out, 2 * h, 2 * w


# ----------------------------------------------------------------------------
# Parameter init (deterministic, synthetic, PyTorch weight layouts)
# ----------------------------------------------------------------------------
def _conv_w(key, cout, cin, kh, kw):
    std = 1.0 / math.sqrt(cin * kh * kw)
    return std * jax.random.normal(key, (cout, cin, kh, kw), jnp.float32)


def _bn_p(key, c):
    k1, k2, k3, k4 = jax.random.split(key, 4)
    return dict(
        gamma=1.0 + 0.1 * jax.random.normal(k1, (c,), jnp.float32),
        beta=0.1 * jax.random.normal(k2, (c,), jnp.float32),
        mean=0.1 * jax.random.normal(k3, (c,), jnp.float32),
        var=1.0 + 0.1 * jnp.abs(jax.random.normal(k4, (c,), jnp.float32)),
    )


def _init_down(key, cin, cout):
    k1, k2 = jax.random.split(key)
    return dict(conv=_conv_w(k1, cout - cin, cin, 3, 3), bn=_bn_p(k2, cout))


def _init_nb(key, c):
    ks = jax.random.split(key, 6)
    return dict(
        w31_1=_conv_w(ks[0], c, c, 3, 1), w13_1=_conv_w(ks[1], c, c, 1, 3),
        bn1=_bn_p(ks[2], c),
        w31_2=_conv_w(ks[3], c, c, 3, 1), w13_2=_conv_w(ks[4], c, c, 1, 3),
        bn2=_bn_p(ks[5], c),
    )


def _init_up(key, cin, cout):
    k1, k2 = jax.random.split(key)
    std = 1.0 / math.sqrt(cout * 9)
    return dict(w=std * jax.random.normal(k1, (cin, cout, 3, 3), jnp.float32),
                bn=_bn_p(k2, cout))


# Static layer structure (mirrors NewERFNetEncoder.__init__ with quantize=False)
LAYER_SPECS = (
    [("down", 16, 64)]
    + [("nb", 64, 1)] * 5
    + [("down", 64, 128)]
    + [("nb", 128, d) for _ in range(2) for d in (2, 4, 8, 16)]
    + [("up", 128, 64), ("nb", 64, 1), ("nb", 64, 1)]
)


def build_params(key):
    keys = jax.random.split(key, len(LAYER_SPECS) + 1)
    params = {"initial": _init_down(keys[0], 3, 16), "layers": []}
    for k, spec in zip(keys[1:], LAYER_SPECS):
        if spec[0] == "down":
            params["layers"].append(_init_down(k, spec[1], spec[2]))
        elif spec[0] == "nb":
            params["layers"].append(_init_nb(k, spec[1]))
        else:
            params["layers"].append(_init_up(k, spec[1], spec[2]))
    return params


# ----------------------------------------------------------------------------
# Full encoder forward
# ----------------------------------------------------------------------------
def encoder_forward(params, x):
    # x: (B, N, C, H, W) — same as the PyTorch module.  Dropout2d is identity
    # in inference; BatchNorm uses running stats (folded into the kernels).
    b, nv, c, h, w = x.shape
    out = x.reshape(b * nv, c, h, w).transpose(0, 2, 3, 1)      # NCHW -> NHWC
    out = out.reshape(b * nv, h * w, c).astype(jnp.bfloat16)    # bf16 acts
    out, cur_h, cur_w = downsample(out, h, w, params["initial"])
    for spec, p in zip(LAYER_SPECS, params["layers"]):
        if spec[0] == "down":
            out, cur_h, cur_w = downsample(out, cur_h, cur_w, p)
        elif spec[0] == "nb":
            out = nb_block(out, cur_h, cur_w, p, spec[2])
        else:
            out, cur_h, cur_w = upsample(out, cur_h, cur_w, p)
    n, cc = out.shape[0], out.shape[-1]
    out = (out.reshape(n, cur_h, cur_w, cc)
              .transpose(0, 3, 1, 2)                            # -> NCHW
              .astype(jnp.float32))
    return ([out], [out], [out])


if __name__ == "__main__":
    key = jax.random.PRNGKey(0)
    kx, kp = jax.random.split(key)
    B, Nv, C, H, W = 1, 2, 3, 16, 16
    x = jax.random.normal(kx, (B, Nv, C, H, W), jnp.float32)
    params = build_params(kp)

    fwd = jax.jit(encoder_forward)
    (o1,), (o2,), (o3,) = fwd(params, x)
    o1 = jax.block_until_ready(o1)
    assert o1.shape == (B * Nv, 64, H // 4, W // 4), o1.shape
    assert o1.dtype == jnp.float32
    assert bool(jnp.isfinite(o1).all())
    print("KERNEL_OK")
</pallas_src>

<mosaic_0001>
module attributes {stable_mosaic.version = 11 : i64} {
  func.func @_down_kernel(%arg0: i32, %arg1: memref<1x4x64x8xbf16, #tpu.memory_space<vmem>>, %arg2: memref<9x8x13xbf16, #tpu.memory_space<vmem>>, %arg3: memref<1x13xf32, #tpu.memory_space<vmem>>, %arg4: memref<1x3xf32, #tpu.memory_space<vmem>>, %arg5: memref<1x3xf32, #tpu.memory_space<vmem>>, %arg6: memref<1x64x16xbf16, #tpu.memory_space<vmem>>, %arg7: memref<73x8xf32, #tpu.memory_space<vmem>>) attributes {dimension_semantics = [#tpu.dimension_semantics<parallel>], iteration_bounds = array<i64: 2>, scalar_prefetch = 0 : i64, scratch_operands = 1 : i64, tpu.core_type = #tpu.core_type<tc>, window_params = [{transform_indices = @transform_0, window_bounds = array<i64: 1, 4, 64, 8>}, {pipeline_mode = #tpu.pipeline_mode<synchronous>, transform_indices = @transform_1, window_bounds = array<i64: 9, 8, 13>}, {pipeline_mode = #tpu.pipeline_mode<synchronous>, transform_indices = @transform_2, window_bounds = array<i64: 1, 13>}, {pipeline_mode = #tpu.pipeline_mode<synchronous>, transform_indices = @transform_3, window_bounds = array<i64: 1, 3>}, {pipeline_mode = #tpu.pipeline_mode<synchronous>, transform_indices = @transform_4, window_bounds = array<i64: 1, 3>}, {transform_indices = @transform_5, window_bounds = array<i64: 1, 64, 16>}]} {
    %0 = tpu.iota {dimensions = array<i32: 0>} : vector<64x1xi32>
    %c8_i32 = arith.constant 8 : i32
    %c0_i32 = arith.constant 0 : i32
    %1 = arith.cmpi eq, %c8_i32, %c0_i32 : i32
    %c1_i32 = arith.constant 1 : i32
    %2 = arith.select %1, %c1_i32, %c8_i32 : i32
    %3 = vector.broadcast %2 : i32 to vector<64x1xi32>
    %4 = arith.remsi %0, %3 : vector<64x1xi32>
    %c0_i32_0 = arith.constant 0 : i32
    %5 = vector.broadcast %c0_i32_0 : i32 to vector<64x1xi32>
    %6 = arith.cmpi ne, %4, %5 : vector<64x1xi32>
    %c0_i32_1 = arith.constant 0 : i32
    %7 = vector.broadcast %c0_i32_1 : i32 to vector<64x1xi32>
    %8 = arith.cmpi slt, %4, %7 : vector<64x1xi32>
    %c0_i32_2 = arith.constant 0 : i32
    %9 = arith.cmpi slt, %2, %c0_i32_2 : i32
    %10 = vector.broadcast %9 : i1 to vector<64x1xi1>
    %11 = vector.broadcast %10 : vector<64x1xi1> to vector<64x1xi1>
    %12 = arith.xori %8, %11 : vector<64x1xi1>
    %13 = arith.andi %12, %6 : vector<64x1xi1>
    %14 = vector.broadcast %2 : i32 to vector<64x1xi32>
    %15 = arith.addi %4, %14 : vector<64x1xi32>
    %16 = arith.select %13, %15, %4 : vector<64x1xi1>, vector<64x1xi32>
    %c1_i32_3 = arith.constant 1 : i32
    %17 = vector.broadcast %c1_i32_3 : i32 to vector<64x1xi32>
    %18 = arith.cmpi sge, %16, %17 : vector<64x1xi32>
    %cst = arith.constant 0.000000e+00 : f32
    %19 = vector.broadcast %cst : f32 to vector<9x8xf32>
    %c0 = arith.constant 0 : index
    %c0_4 = arith.constant 0 : index
    %20 = vector.load %arg7[%c0, %c0_4] : memref<73x8xf32, #tpu.memory_space<vmem>>, vector<9x8xf32>
    tpu.vector_store %arg7[%c0, %c0_4], %19 {strides = array<i32>} : memref<73x8xf32, #tpu.memory_space<vmem>>, vector<9x8xf32>,
    %c0_5 = arith.constant 0 : index
    %c0_6 = arith.constant 0 : index
    %c0_7 = arith.constant 0 : index
    %c0_8 = arith.constant 0 : index
    %21 = vector.load %arg1[%c0_5, %c0_6, %c0_7, %c0_8] : memref<1x4x64x8xbf16, #tpu.memory_space<vmem>>, vector<1x1x64x8xbf16>
    %22 = vector.shape_cast %21 : vector<1x1x64x8xbf16> to vector<64x8xbf16>
    %c0_9 = arith.constant 0 : index
    %c1 = arith.constant 1 : index
    %c0_10 = arith.constant 0 : index
    %c0_11 = arith.constant 0 : index
    %23 = vector.load %arg1[%c0_9, %c1, %c0_10, %c0_11] : memref<1x4x64x8xbf16, #tpu.memory_space<vmem>>, vector<1x1x64x8xbf16>
    %24 = vector.shape_cast %23 : vector<1x1x64x8xbf16> to vector<64x8xbf16>
    %c0_12 = arith.constant 0 : index
    %c2 = arith.constant 2 : index
    %c0_13 = arith.constant 0 : index
    %c0_14 = arith.constant 0 : index
    %25 = vector.load %arg1[%c0_12, %c2, %c0_13, %c0_14] : memref<1x4x64x8xbf16, #tpu.memory_space<vmem>>, vector<1x1x64x8xbf16>
    %26 = vector.shape_cast %25 : vector<1x1x64x8xbf16> to vector<64x8xbf16>
    %c0_15 = arith.constant 0 : index
    %c3 = arith.constant 3 : index
    %c0_16 = arith.constant 0 : index
    %c0_17 = arith.constant 0 : index
    %27 = vector.load %arg1[%c0_15, %c3, %c0_16, %c0_17] : memref<1x4x64x8xbf16, #tpu.memory_space<vmem>>, vector<1x1x64x8xbf16>
    %28 = vector.shape_cast %27 : vector<1x1x64x8xbf16> to vector<64x8xbf16>
    %c4 = arith.constant 4 : index
    %c0_18 = arith.constant 0 : index
    %c0_19 = arith.constant 0 : index
    %29 = vector.load %arg2[%c4, %c0_18, %c0_19] : memref<9x8x13xbf16, #tpu.memory_space<vmem>>, vector<1x8x13xbf16>
    %30 = vector.shape_cast %29 : vector<1x8x13xbf16> to vector<8x13xbf16>
    %cst_20 = arith.constant dense<0.000000e+00> : vector<64x13xf32>
    %31 = tpu.matmul %22, %30, %cst_20 {dimension_numbers = #tpu.dot_dimension_numbers<[1], [0], [0], [1], [0, 0, 1, 1], [], []>} : vector<64x8xbf16>, vector<8x13xbf16>, vector<64x13xf32> -> vector<64x13xf32>
    %32 = arith.extf %24 : vector<64x8xbf16> to vector<64x8xf32>
    %c9 = arith.constant 9 : index
    %c0_21 = arith.constant 0 : index
    %33 = vector.load %arg7[%c9, %c0_21] : memref<73x8xf32, #tpu.memory_space<vmem>>, vector<64x8xf32>
    tpu.vector_store %arg7[%c9, %c0_21], %32 {strides = array<i32>} : memref<73x8xf32, #tpu.memory_space<vmem>>, vector<64x8xf32>,
    %c8 = arith.constant 8 : index
    %c0_22 = arith.constant 0 : index
    %34 = vector.load %arg7[%c8, %c0_22] : memref<73x8xf32, #tpu.memory_space<vmem>>, vector<64x8xf32>
    %cst_23 = arith.constant 0.000000e+00 : f32
    %35 = vector.shape_cast %18 : vector<64x1xi1> to vector<64x1xi1>
    %36 = vector.broadcast %35 : vector<64x1xi1> to vector<64x8xi1>
    %37 = vector.broadcast %cst_23 : f32 to vector<64x8xf32>
    %38 = arith.select %36, %34, %37 : vector<64x8xi1>, vector<64x8xf32>
    %39 = arith.truncf %38 : vector<64x8xf32> to vector<64x8xbf16>
    %c3_24 = arith.constant 3 : index
    %c0_25 = arith.constant 0 : index
    %c0_26 = arith.constant 0 : index
    %40 = vector.load %arg2[%c3_24, %c0_25, %c0_26] : memref<9x8x13xbf16, #tpu.memory_space<vmem>>, vector<1x8x13xbf16>
    %41 = vector.shape_cast %40 : vector<1x8x13xbf16> to vector<8x13xbf16>
    %cst_27 = arith.constant dense<0.000000e+00> : vector<64x13xf32>
    %42 = tpu.matmul %39, %41, %cst_27 {dimension_numbers = #tpu.dot_dimension_numbers<[1], [0], [0], [1], [0, 0, 1, 1], [], []>} : vector<64x8xbf16>, vector<8x13xbf16>, vector<64x13xf32> -> vector<64x13xf32>
    %43 = arith.addf %31, %42 : vector<64x13xf32>
    %c5 = arith.constant 5 : index
    %c0_28 = arith.constant 0 : index
    %c0_29 = arith.constant 0 : index
    %44 = vector.load %arg2[%c5, %c0_28, %c0_29] : memref<9x8x13xbf16, #tpu.memory_space<vmem>>, vector<1x8x13xbf16>
    %45 = vector.shape_cast %44 : vector<1x8x13xbf16> to vector<8x13xbf16>
    %cst_30 = arith.constant dense<0.000000e+00> : vector<64x13xf32>
    %46 = tpu.matmul %24, %45, %cst_30 {dimension_numbers = #tpu.dot_dimension_numbers<[1], [0], [0], [1], [0, 0, 1, 1], [], []>} : vector<64x8xbf16>, vector<8x13xbf16>, vector<64x13xf32> -> vector<64x13xf32>
    %47 = arith.addf %43, %46 : vector<64x13xf32>
    %48 = arith.extf %26 : vector<64x8xbf16> to vector<64x8xf32>
    %c9_31 = arith.constant 9 : index
    %c0_32 = arith.constant 0 : index
    %49 = vector.load %arg7[%c9_31, %c0_32] : memref<73x8xf32, #tpu.memory_space<vmem>>, vector<64x8xf32>
    tpu.vector_store %arg7[%c9_31, %c0_32], %48 {strides = array<i32>} : memref<73x8xf32, #tpu.memory_space<vmem>>, vector<64x8xf32>,
    %c1_33 = arith.constant 1 : index
    %c0_34 = arith.constant 0 : index
    %50 = vector.load %arg7[%c1_33, %c0_34] : memref<73x8xf32, #tpu.memory_space<vmem>>, vector<64x8xf32>
    %51 = arith.truncf %50 : vector<64x8xf32> to vector<64x8xbf16>
    %c1_35 = arith.constant 1 : index
    %c0_36 = arith.constant 0 : index
    %c0_37 = arith.constant 0 : index
    %52 = vector.load %arg2[%c1_35, %c0_36, %c0_37] : memref<9x8x13xbf16, #tpu.memory_space<vmem>>, vector<1x8x13xbf16>
    %53 = vector.shape_cast %52 : vector<1x8x13xbf16> to vector<8x13xbf16>
    %cst_38 = arith.constant dense<0.000000e+00> : vector<64x13xf32>
    %54 = tpu.matmul %51, %53, %cst_38 {dimension_numbers = #tpu.dot_dimension_numbers<[1], [0], [0], [1], [0, 0, 1, 1], [], []>} : vector<64x8xbf16>, vector<8x13xbf16>, vector<64x13xf32> -> vector<64x13xf32>
    %55 = arith.addf %47, %54 : vector<64x13xf32>
    %c7 = arith.constant 7 : index
    %c0_39 = arith.constant 0 : index
    %c0_40 = arith.constant 0 : index
    %56 = vector.load %arg2[%c7, %c0_39, %c0_40] : memref<9x8x13xbf16, #tpu.memory_space<vmem>>, vector<1x8x13xbf16>
    %57 = vector.shape_cast %56 : vector<1x8x13xbf16> to vector<8x13xbf16>
    %cst_41 = arith.constant dense<0.000000e+00> : vector<64x13xf32>
    %58 = tpu.matmul %26, %57, %cst_41 {dimension_numbers = #tpu.dot_dimension_numbers<[1], [0], [0], [1], [0, 0, 1, 1], [], []>} : vector<64x8xbf16>, vector<8x13xbf16>, vector<64x13xf32> -> vector<64x13xf32>
    %59 = arith.addf %55, %58 : vector<64x13xf32>
    %60 = arith.extf %28 : vector<64x8xbf16> to vector<64x8xf32>
    %c9_42 = arith.constant 9 : index
    %c0_43 = arith.constant 0 : index
    %61 = vector.load %arg7[%c9_42, %c0_43] : memref<73x8xf32, #tpu.memory_space<vmem>>, vector<64x8xf32>
    tpu.vector_store %arg7[%c9_42, %c0_43], %60 {strides = array<i32>} : memref<73x8xf32, #tpu.memory_space<vmem>>, vector<64x8xf32>,
    %c0_44 = arith.constant 0 : index
    %c0_45 = arith.constant 0 : index
    %62 = vector.load %arg7[%c0_44, %c0_45] : memref<73x8xf32, #tpu.memory_space<vmem>>, vector<64x8xf32>
    %cst_46 = arith.constant 0.000000e+00 : f32
    %63 = vector.shape_cast %18 : vector<64x1xi1> to vector<64x1xi1>
    %64 = vector.broadcast %63 : vector<64x1xi1> to vector<64x8xi1>
    %65 = vector.broadcast %cst_46 : f32 to vector<64x8xf32>
    %66 = arith.select %64, %62, %65 : vector<64x8xi1>, vector<64x8xf32>
    %67 = arith.truncf %66 : vector<64x8xf32> to vector<64x8xbf16>
    %c0_47 = arith.constant 0 : index
    %c0_48 = arith.constant 0 : index
    %c0_49 = arith.constant 0 : index
    %68 = vector.load %arg2[%c0_47, %c0_48, %c0_49] : memref<9x8x13xbf16, #tpu.memory_space<vmem>>, vector<1x8x13xbf16>
    %69 = vector.shape_cast %68 : vector<1x8x13xbf16> to vector<8x13xbf16>
    %cst_50 = arith.constant dense<0.000000e+00> : vector<64x13xf32>
    %70 = tpu.matmul %67, %69, %cst_50 {dimension_numbers = #tpu.dot_dimension_numbers<[1], [0], [0], [1], [0, 0, 1, 1], [], []>} : vector<64x8xbf16>, vector<8x13xbf16>, vector<64x13xf32> -> vector<64x13xf32>
    %71 = arith.addf %59, %70 : vector<64x13xf32>
    %c1_51 = arith.constant 1 : index
    %c0_52 = arith.constant 0 : index
    %72 = vector.load %arg7[%c1_51, %c0_52] : memref<73x8xf32, #tpu.memory_space<vmem>>, vector<64x8xf32>
    %73 = arith.truncf %72 : vector<64x8xf32> to vector<64x8xbf16>
    %c2_53 = arith.constant 2 : index
    %c0_54 = arith.constant 0 : index
    %c0_55 = arith.constant 0 : index
    %74 = vector.load %arg2[%c2_53, %c0_54, %c0_55] : memref<9x8x13xbf16, #tpu.memory_space<vmem>>, vector<1x8x13xbf16>
    %75 = vector.shape_cast %74 : vector<1x8x13xbf16> to vector<8x13xbf16>
    %cst_56 = arith.constant dense<0.000000e+00> : vector<64x13xf32>
    %76 = tpu.matmul %73, %75, %cst_56 {dimension_numbers = #tpu.dot_dimension_numbers<[1], [0], [0], [1], [0, 0, 1, 1], [], []>} : vector<64x8xbf16>, vector<8x13xbf16>, vector<64x13xf32> -> vector<64x13xf32>
    %77 = arith.addf %71, %76 : vector<64x13xf32>
    %c8_57 = arith.constant 8 : index
    %c0_58 = arith.constant 0 : index
    %78 = vector.load %arg7[%c8_57, %c0_58] : memref<73x8xf32, #tpu.memory_space<vmem>>, vector<64x8xf32>
    %cst_59 = arith.constant 0.000000e+00 : f32
    %79 = vector.shape_cast %18 : vector<64x1xi1> to vector<64x1xi1>
    %80 = vector.broadcast %79 : vector<64x1xi1> to vector<64x8xi1>
    %81 = vector.broadcast %cst_59 : f32 to vector<64x8xf32>
    %82 = arith.select %80, %78, %81 : vector<64x8xi1>, vector<64x8xf32>
    %83 = arith.truncf %82 : vector<64x8xf32> to vector<64x8xbf16>
    %c6 = arith.constant 6 : index
    %c0_60 = arith.constant 0 : index
    %c0_61 = arith.constant 0 : index
    %84 = vector.load %arg2[%c6, %c0_60, %c0_61] : memref<9x8x13xbf16, #tpu.memory_space<vmem>>, vector<1x8x13xbf16>
    %85 = vector.shape_cast %84 : vector<1x8x13xbf16> to vector<8x13xbf16>
    %cst_62 = arith.constant dense<0.000000e+00> : vector<64x13xf32>
    %86 = tpu.matmul %83, %85, %cst_62 {dimension_numbers = #tpu.dot_dimension_numbers<[1], [0], [0], [1], [0, 0, 1, 1], [], []>} : vector<64x8xbf16>, vector<8x13xbf16>, vector<64x13xf32> -> vector<64x13xf32>
    %87 = arith.addf %77, %86 : vector<64x13xf32>
    %c8_63 = arith.constant 8 : index
    %c0_64 = arith.constant 0 : index
    %c0_65 = arith.constant 0 : index
    %88 = vector.load %arg2[%c8_63, %c0_64, %c0_65] : memref<9x8x13xbf16, #tpu.memory_space<vmem>>, vector<1x8x13xbf16>
    %89 = vector.shape_cast %88 : vector<1x8x13xbf16> to vector<8x13xbf16>
    %cst_66 = arith.constant dense<0.000000e+00> : vector<64x13xf32>
    %90 = tpu.matmul %28, %89, %cst_66 {dimension_numbers = #tpu.dot_dimension_numbers<[1], [0], [0], [1], [0, 0, 1, 1], [], []>} : vector<64x8xbf16>, vector<8x13xbf16>, vector<64x13xf32> -> vector<64x13xf32>
    %91 = arith.addf %87, %90 : vector<64x13xf32>
    %c0_67 = arith.constant 0 : index
    %c0_68 = arith.constant 0 : index
    %92 = vector.load %arg3[%c0_67, %c0_68] : memref<1x13xf32, #tpu.memory_space<vmem>>, vector<1x13xf32>
    %93 = vector.broadcast %92 : vector<1x13xf32> to vector<64x13xf32>
    %94 = arith.addf %91, %93 : vector<64x13xf32>
    %cst_69 = arith.constant 0.000000e+00 : f32
    %95 = vector.broadcast %cst_69 : f32 to vector<64x13xf32>
    %96 = arith.maximumf %94, %95 : vector<64x13xf32>
    %97 = arith.truncf %96 : vector<64x13xf32> to vector<64x13xbf16>
    %c0_70 = arith.constant 0 : index
    %c0_71 = arith.constant 0 : index
    %c0_72 = arith.constant 0 : index
    %98 = vector.load %arg6[%c0_70, %c0_71, %c0_72] : memref<1x64x16xbf16, #tpu.memory_space<vmem>>, vector<1x64x13xbf16>
    %99 = vector.shape_cast %98 : vector<1x64x13xbf16> to vector<64x13xbf16>
    %100 = vector.shape_cast %97 : vector<64x13xbf16> to vector<1x64x13xbf16>
    tpu.vector_store %arg6[%c0_70, %c0_71, %c0_72], %100 {strides = array<i32>} : memref<1x64x16xbf16, #tpu.memory_space<vmem>>, vector<1x64x13xbf16>,
    %101 = arith.maximumf %22, %24 : vector<64x8xbf16>
    %102 = arith.maximumf %26, %28 : vector<64x8xbf16>
    %103 = arith.maximumf %101, %102 : vector<64x8xbf16>
    %104 = vector.extract_strided_slice %103 {offsets = [0, 0], sizes = [64, 3], strides = [1, 1]} : vector<64x8xbf16> to vector<64x3xbf16>
    %105 = arith.extf %104 : vector<64x3xbf16> to vector<64x3xf32>
    %c0_73 = arith.constant 0 : index
    %c0_74 = arith.constant 0 : index
    %106 = vector.load %arg4[%c0_73, %c0_74] : memref<1x3xf32, #tpu.memory_space<vmem>>, vector<1x3xf32>
    %107 = vector.broadcast %106 : vector<1x3xf32> to vector<64x3xf32>
    %108 = arith.mulf %105, %107 : vector<64x3xf32>
    %c0_75 = arith.constant 0 : index
    %c0_76 = arith.constant 0 : index
    %109 = vector.load %arg5[%c0_75, %c0_76] : memref<1x3xf32, #tpu.memory_space<vmem>>, vector<1x3xf32>
    %110 = vector.broadcast %109 : vector<1x3xf32> to vector<64x3xf32>
    %111 = arith.addf %108, %110 : vector<64x3xf32>
    %cst_77 = arith.constant 0.000000e+00 : f32
    %112 = vector.broadcast %cst_77 : f32 to vector<64x3xf32>
    %113 = arith.maximumf %111, %112 : vector<64x3xf32>
    %114 = arith.truncf %113 : vector<64x3xf32> to vector<64x3xbf16>
    %c0_78 = arith.constant 0 : index
    %c0_79 = arith.constant 0 : index
    %c13 = arith.constant 13 : index
    %115 = vector.load %arg6[%c0_78, %c0_79, %c13] : memref<1x64x16xbf16, #tpu.memory_space<vmem>>, vector<1x64x3xbf16>
    %116 = vector.shape_cast %115 : vector<1x64x3xbf16> to vector<64x3xbf16>
    %117 = vector.shape_cast %114 : vector<64x3xbf16> to vector<1x64x3xbf16>
    tpu.vector_store %arg6[%c0_78, %c0_79, %c13], %117 {strides = array<i32>} : memref<1x64x16xbf16, #tpu.memory_space<vmem>>, vector<1x64x3xbf16>,
    return
  }
  func.func @transform_0(%arg0: i32) -> (i32, i32, i32, i32) {
    %c0_i32 = arith.constant 0 : i32
    %c0_i32_0 = arith.constant 0 : i32
    %c0_i32_1 = arith.constant 0 : i32
    %c0_i32_2 = arith.constant 0 : i32
    return %arg0, %c0_i32, %c0_i32_0, %c0_i32_1 : i32, i32, i32, i32
  }
  func.func @transform_1(%arg0: i32) -> (i32, i32, i32) {
    %c0_i32 = arith.constant 0 : i32
    %c0_i32_0 = arith.constant 0 : i32
    %c0_i32_1 = arith.constant 0 : i32
    %c0_i32_2 = arith.constant 0 : i32
    return %c0_i32, %c0_i32_0, %c0_i32_1 : i32, i32, i32
  }
  func.func @transform_2(%arg0: i32) -> (i32, i32) {
    %c0_i32 = arith.constant 0 : i32
    %c0_i32_0 = arith.constant 0 : i32
    %c0_i32_1 = arith.constant 0 : i32
    return %c0_i32, %c0_i32_0 : i32, i32
  }
  func.func @transform_3(%arg0: i32) -> (i32, i32) {
    %c0_i32 = arith.constant 0 : i32
    %c0_i32_0 = arith.constant 0 : i32
    %c0_i32_1 = arith.constant 0 : i32
    return %c0_i32, %c0_i32_0 : i32, i32
  }
  func.func @transform_4(%arg0: i32) -> (i32, i32) {
    %c0_i32 = arith.constant 0 : i32
    %c0_i32_0 = arith.constant 0 : i32
    %c0_i32_1 = arith.constant 0 : i32
    return %c0_i32, %c0_i32_0 : i32, i32
  }
  func.func @transform_5(%arg0: i32) -> (i32, i32, i32) {
    %c0_i32 = arith.constant 0 : i32
    %c0_i32_0 = arith.constant 0 : i32
    %c0_i32_1 = arith.constant 0 : i32
    return %arg0, %c0_i32, %c0_i32_0 : i32, i32, i32
  }
}

module attributes {stable_mosaic.version = 11 : i64} {
  func.func @_down_kernel(%arg0: i32, %arg1: memref<1x4x16x16xbf16, #tpu.memory_space<vmem>>, %arg2: memref<9x16x48xbf16, #tpu.memory_space<vmem>>, %arg3: memref<1x48xf32, #tpu.memory_space<vmem>>, %arg4: memref<1x16xf32, #tpu.memory_space<vmem>>, %arg5: memref<1x16xf32, #tpu.memory_space<vmem>>, %arg6: memref<1x16x64xbf16, #tpu.memory_space<vmem>>, %arg7: memref<21x16xf32, #tpu.memory_space<vmem>>) attributes {dimension_semantics = [#tpu.dimension_semantics<parallel>], iteration_bounds = array<i64: 2>, scalar_prefetch = 0 : i64, scratch_operands = 1 : i64, tpu.core_type = #tpu.core_type<tc>, window_params = [{transform_indices = @transform_0, window_bounds = array<i64: 1, 4, 16, 16>}, {pipeline_mode = #tpu.pipeline_mode<synchronous>, transform_indices = @transform_1, window_bounds = array<i64: 9, 16, 48>}, {pipeline_mode = #tpu.pipeline_mode<synchronous>, transform_indices = @transform_2, window_bounds = array<i64: 1, 48>}, {pipeline_mode = #tpu.pipeline_mode<synchronous>, transform_indices = @transform_3, window_bounds = array<i64: 1, 16>}, {pipeline_mode = #tpu.pipeline_mode<synchronous>, transform_indices = @transform_4, window_bounds = array<i64: 1, 16>}, {transform_indices = @transform_5, window_bounds = array<i64: 1, 16, 64>}]} {
    %0 = tpu.iota {dimensions = array<i32: 0>} : vector<16x1xi32>
    %c4_i32 = arith.constant 4 : i32
    %c0_i32 = arith.constant 0 : i32
    %1 = arith.cmpi eq, %c4_i32, %c0_i32 : i32
    %c1_i32 = arith.constant 1 : i32
    %2 = arith.select %1, %c1_i32, %c4_i32 : i32
    %3 = vector.broadcast %2 : i32 to vector<16x1xi32>
    %4 = arith.remsi %0, %3 : vector<16x1xi32>
    %c0_i32_0 = arith.constant 0 : i32
    %5 = vector.broadcast %c0_i32_0 : i32 to vector<16x1xi32>
    %6 = arith.cmpi ne, %4, %5 : vector<16x1xi32>
    %c0_i32_1 = arith.constant 0 : i32
    %7 = vector.broadcast %c0_i32_1 : i32 to vector<16x1xi32>
    %8 = arith.cmpi slt, %4, %7 : vector<16x1xi32>
    %c0_i32_2 = arith.constant 0 : i32
    %9 = arith.cmpi slt, %2, %c0_i32_2 : i32
    %10 = vector.broadcast %9 : i1 to vector<16x1xi1>
    %11 = vector.broadcast %10 : vector<16x1xi1> to vector<16x1xi1>
    %12 = arith.xori %8, %11 : vector<16x1xi1>
    %13 = arith.andi %12, %6 : vector<16x1xi1>
    %14 = vector.broadcast %2 : i32 to vector<16x1xi32>
    %15 = arith.addi %4, %14 : vector<16x1xi32>
    %16 = arith.select %13, %15, %4 : vector<16x1xi1>, vector<16x1xi32>
    %c1_i32_3 = arith.constant 1 : i32
    %17 = vector.broadcast %c1_i32_3 : i32 to vector<16x1xi32>
    %18 = arith.cmpi sge, %16, %17 : vector<16x1xi32>
    %cst = arith.constant 0.000000e+00 : f32
    %19 = vector.broadcast %cst : f32 to vector<5x16xf32>
    %c0 = arith.constant 0 : index
    %c0_4 = arith.constant 0 : index
    %20 = vector.load %arg7[%c0, %c0_4] : memref<21x16xf32, #tpu.memory_space<vmem>>, vector<5x16xf32>
    tpu.vector_store %arg7[%c0, %c0_4], %19 {strides = array<i32>} : memref<21x16xf32, #tpu.memory_space<vmem>>, vector<5x16xf32>,
    %c0_5 = arith.constant 0 : index
    %c0_6 = arith.constant 0 : index
    %c0_7 = arith.constant 0 : index
    %c0_8 = arith.constant 0 : index
    %21 = vector.load %arg1[%c0_5, %c0_6, %c0_7, %c0_8] : memref<1x4x16x16xbf16, #tpu.memory_space<vmem>>, vector<1x1x16x16xbf16>
    %22 = vector.shape_cast %21 : vector<1x1x16x16xbf16> to vector<16x16xbf16>
    %c0_9 = arith.constant 0 : index
    %c1 = arith.constant 1 : index
    %c0_10 = arith.constant 0 : index
    %c0_11 = arith.constant 0 : index
    %23 = vector.load %arg1[%c0_9, %c1, %c0_10, %c0_11] : memref<1x4x16x16xbf16, #tpu.memory_space<vmem>>, vector<1x1x16x16xbf16>
    %24 = vector.shape_cast %23 : vector<1x1x16x16xbf16> to vector<16x16xbf16>
    %c0_12 = arith.constant 0 : index
    %c2 = arith.constant 2 : index
    %c0_13 = arith.constant 0 : index
    %c0_14 = arith.constant 0 : index
    %25 = vector.load %arg1[%c0_12, %c2, %c0_13, %c0_14] : memref<1x4x16x16xbf16, #tpu.memory_space<vmem>>, vector<1x1x16x16xbf16>
    %26 = vector.shape_cast %25 : vector<1x1x16x16xbf16> to vector<16x16xbf16>
    %c0_15 = arith.constant 0 : index
    %c3 = arith.constant 3 : index
    %c0_16 = arith.constant 0 : index
    %c0_17 = arith.constant 0 : index
    %27 = vector.load %arg1[%c0_15, %c3, %c0_16, %c0_17] : memref<1x4x16x16xbf16, #tpu.memory_space<vmem>>, vector<1x1x16x16xbf16>
    %28 = vector.shape_cast %27 : vector<1x1x16x16xbf16> to vector<16x16xbf16>
    %c4 = arith.constant 4 : index
    %c0_18 = arith.constant 0 : index
    %c0_19 = arith.constant 0 : index
    %29 = vector.load %arg2[%c4, %c0_18, %c0_19] : memref<9x16x48xbf16, #tpu.memory_space<vmem>>, vector<1x16x48xbf16>
    %30 = vector.shape_cast %29 : vector<1x16x48xbf16> to vector<16x48xbf16>
    %cst_20 = arith.constant dense<0.000000e+00> : vector<16x48xf32>
    %31 = tpu.matmul %22, %30, %cst_20 {dimension_numbers = #tpu.dot_dimension_numbers<[1], [0], [0], [1], [0, 0, 1, 1], [], []>} : vector<16x16xbf16>, vector<16x48xbf16>, vector<16x48xf32> -> vector<16x48xf32>
    %32 = arith.extf %24 : vector<16x16xbf16> to vector<16x16xf32>
    %c5 = arith.constant 5 : index
    %c0_21 = arith.constant 0 : index
    %33 = vector.load %arg7[%c5, %c0_21] : memref<21x16xf32, #tpu.memory_space<vmem>>, vector<16x16xf32>
    tpu.vector_store %arg7[%c5, %c0_21], %32 {strides = array<i32>} : memref<21x16xf32, #tpu.memory_space<vmem>>, vector<16x16xf32>,
    %c4_22 = arith.constant 4 : index
    %c0_23 = arith.constant 0 : index
    %34 = vector.load %arg7[%c4_22, %c0_23] : memref<21x16xf32, #tpu.memory_space<vmem>>, vector<16x16xf32>
    %cst_24 = arith.constant 0.000000e+00 : f32
    %35 = vector.shape_cast %18 : vector<16x1xi1> to vector<16x1xi1>
    %36 = vector.broadcast %35 : vector<16x1xi1> to vector<16x16xi1>
    %37 = vector.broadcast %cst_24 : f32 to vector<16x16xf32>
    %38 = arith.select %36, %34, %37 : vector<16x16xi1>, vector<16x16xf32>
    %39 = arith.truncf %38 : vector<16x16xf32> to vector<16x16xbf16>
    %c3_25 = arith.constant 3 : index
    %c0_26 = arith.constant 0 : index
    %c0_27 = arith.constant 0 : index
    %40 = vector.load %arg2[%c3_25, %c0_26, %c0_27] : memref<9x16x48xbf16, #tpu.memory_space<vmem>>, vector<1x16x48xbf16>
    %41 = vector.shape_cast %40 : vector<1x16x48xbf16> to vector<16x48xbf16>
    %cst_28 = arith.constant dense<0.000000e+00> : vector<16x48xf32>
    %42 = tpu.matmul %39, %41, %cst_28 {dimension_numbers = #tpu.dot_dimension_numbers<[1], [0], [0], [1], [0, 0, 1, 1], [], []>} : vector<16x16xbf16>, vector<16x48xbf16>, vector<16x48xf32> -> vector<16x48xf32>
    %43 = arith.addf %31, %42 : vector<16x48xf32>
    %c5_29 = arith.constant 5 : index
    %c0_30 = arith.constant 0 : index
    %c0_31 = arith.constant 0 : index
    %44 = vector.load %arg2[%c5_29, %c0_30, %c0_31] : memref<9x16x48xbf16, #tpu.memory_space<vmem>>, vector<1x16x48xbf16>
    %45 = vector.shape_cast %44 : vector<1x16x48xbf16> to vector<16x48xbf16>
    %cst_32 = arith.constant dense<0.000000e+00> : vector<16x48xf32>
    %46 = tpu.matmul %24, %45, %cst_32 {dimension_numbers = #tpu.dot_dimension_numbers<[1], [0], [0], [1], [0, 0, 1, 1], [], []>} : vector<16x16xbf16>, vector<16x48xbf16>, vector<16x48xf32> -> vector<16x48xf32>
    %47 = arith.addf %43, %46 : vector<16x48xf32>
    %48 = arith.extf %26 : vector<16x16xbf16> to vector<16x16xf32>
    %c5_33 = arith.constant 5 : index
    %c0_34 = arith.constant 0 : index
    %49 = vector.load %arg7[%c5_33, %c0_34] : memref<21x16xf32, #tpu.memory_space<vmem>>, vector<16x16xf32>
    tpu.vector_store %arg7[%c5_33, %c0_34], %48 {strides = array<i32>} : memref<21x16xf32, #tpu.memory_space<vmem>>, vector<16x16xf32>,
    %c1_35 = arith.constant 1 : index
    %c0_36 = arith.constant 0 : index
    %50 = vector.load %arg7[%c1_35, %c0_36] : memref<21x16xf32, #tpu.memory_space<vmem>>, vector<16x16xf32>
    %51 = arith.truncf %50 : vector<16x16xf32> to vector<16x16xbf16>
    %c1_37 = arith.constant 1 : index
    %c0_38 = arith.constant 0 : index
    %c0_39 = arith.constant 0 : index
    %52 = vector.load %arg2[%c1_37, %c0_38, %c0_39] : memref<9x16x48xbf16, #tpu.memory_space<vmem>>, vector<1x16x48xbf16>
    %53 = vector.shape_cast %52 : vector<1x16x48xbf16> to vector<16x48xbf16>
    %cst_40 = arith.constant dense<0.000000e+00> : vector<16x48xf32>
    %54 = tpu.matmul %51, %53, %cst_40 {dimension_numbers = #tpu.dot_dimension_numbers<[1], [0], [0], [1], [0, 0, 1, 1], [], []>} : vector<16x16xbf16>, vector<16x48xbf16>, vector<16x48xf32> -> vector<16x48xf32>
    %55 = arith.addf %47, %54 : vector<16x48xf32>
    %c7 = arith.constant 7 : index
    %c0_41 = arith.constant 0 : index
    %c0_42 = arith.constant 0 : index
    %56 = vector.load %arg2[%c7, %c0_41, %c0_42] : memref<9x16x48xbf16, #tpu.memory_space<vmem>>, vector<1x16x48xbf16>
    %57 = vector.shape_cast %56 : vector<1x16x48xbf16> to vector<16x48xbf16>
    %cst_43 = arith.constant dense<0.000000e+00> : vector<16x48xf32>
    %58 = tpu.matmul %26, %57, %cst_43 {dimension_numbers = #tpu.dot_dimension_numbers<[1], [0], [0], [1], [0, 0, 1, 1], [], []>} : vector<16x16xbf16>, vector<16x48xbf16>, vector<16x48xf32> -> vector<16x48xf32>
    %59 = arith.addf %55, %58 : vector<16x48xf32>
    %60 = arith.extf %28 : vector<16x16xbf16> to vector<16x16xf32>
    %c5_44 = arith.constant 5 : index
    %c0_45 = arith.constant 0 : index
    %61 = vector.load %arg7[%c5_44, %c0_45] : memref<21x16xf32, #tpu.memory_space<vmem>>, vector<16x16xf32>
    tpu.vector_store %arg7[%c5_44, %c0_45], %60 {strides = array<i32>} : memref<21x16xf32, #tpu.memory_space<vmem>>, vector<16x16xf32>,
    %c0_46 = arith.constant 0 : index
    %c0_47 = arith.constant 0 : index
    %62 = vector.load %arg7[%c0_46, %c0_47] : memref<21x16xf32, #tpu.memory_space<vmem>>, vector<16x16xf32>
    %cst_48 = arith.constant 0.000000e+00 : f32
    %63 = vector.shape_cast %18 : vector<16x1xi1> to vector<16x1xi1>
    %64 = vector.broadcast %63 : vector<16x1xi1> to vector<16x16xi1>
    %65 = vector.broadcast %cst_48 : f32 to vector<16x16xf32>
    %66 = arith.select %64, %62, %65 : vector<16x16xi1>, vector<16x16xf32>
    %67 = arith.truncf %66 : vector<16x16xf32> to vector<16x16xbf16>
    %c0_49 = arith.constant 0 : index
    %c0_50 = arith.constant 0 : index
    %c0_51 = arith.constant 0 : index
    %68 = vector.load %arg2[%c0_49, %c0_50, %c0_51] : memref<9x16x48xbf16, #tpu.memory_space<vmem>>, vector<1x16x48xbf16>
    %69 = vector.shape_cast %68 : vector<1x16x48xbf16> to vector<16x48xbf16>
    %cst_52 = arith.constant dense<0.000000e+00> : vector<16x48xf32>
    %70 = tpu.matmul %67, %69, %cst_52 {dimension_numbers = #tpu.dot_dimension_numbers<[1], [0], [0], [1], [0, 0, 1, 1], [], []>} : vector<16x16xbf16>, vector<16x48xbf16>, vector<16x48xf32> -> vector<16x48xf32>
    %71 = arith.addf %59, %70 : vector<16x48xf32>
    %c1_53 = arith.constant 1 : index
    %c0_54 = arith.constant 0 : index
    %72 = vector.load %arg7[%c1_53, %c0_54] : memref<21x16xf32, #tpu.memory_space<vmem>>, vector<16x16xf32>
    %73 = arith.truncf %72 : vector<16x16xf32> to vector<16x16xbf16>
    %c2_55 = arith.constant 2 : index
    %c0_56 = arith.constant 0 : index
    %c0_57 = arith.constant 0 : index
    %74 = vector.load %arg2[%c2_55, %c0_56, %c0_57] : memref<9x16x48xbf16, #tpu.memory_space<vmem>>, vector<1x16x48xbf16>
    %75 = vector.shape_cast %74 : vector<1x16x48xbf16> to vector<16x48xbf16>
    %cst_58 = arith.constant dense<0.000000e+00> : vector<16x48xf32>
    %76 = tpu.matmul %73, %75, %cst_58 {dimension_numbers = #tpu.dot_dimension_numbers<[1], [0], [0], [1], [0, 0, 1, 1], [], []>} : vector<16x16xbf16>, vector<16x48xbf16>, vector<16x48xf32> -> vector<16x48xf32>
    %77 = arith.addf %71, %76 : vector<16x48xf32>
    %c4_59 = arith.constant 4 : index
    %c0_60 = arith.constant 0 : index
    %78 = vector.load %arg7[%c4_59, %c0_60] : memref<21x16xf32, #tpu.memory_space<vmem>>, vector<16x16xf32>
    %cst_61 = arith.constant 0.000000e+00 : f32
    %79 = vector.shape_cast %18 : vector<16x1xi1> to vector<16x1xi1>
    %80 = vector.broadcast %79 : vector<16x1xi1> to vector<16x16xi1>
    %81 = vector.broadcast %cst_61 : f32 to vector<16x16xf32>
    %82 = arith.select %80, %78, %81 : vector<16x16xi1>, vector<16x16xf32>
    %83 = arith.truncf %82 : vector<16x16xf32> to vector<16x16xbf16>
    %c6 = arith.constant 6 : index
    %c0_62 = arith.constant 0 : index
    %c0_63 = arith.constant 0 : index
    %84 = vector.load %arg2[%c6, %c0_62, %c0_63] : memref<9x16x48xbf16, #tpu.memory_space<vmem>>, vector<1x16x48xbf16>
    %85 = vector.shape_cast %84 : vector<1x16x48xbf16> to vector<16x48xbf16>
    %cst_64 = arith.constant dense<0.000000e+00> : vector<16x48xf32>
    %86 = tpu.matmul %83, %85, %cst_64 {dimension_numbers = #tpu.dot_dimension_numbers<[1], [0], [0], [1], [0, 0, 1, 1], [], []>} : vector<16x16xbf16>, vector<16x48xbf16>, vector<16x48xf32> -> vector<16x48xf32>
    %87 = arith.addf %77, %86 : vector<16x48xf32>
    %c8 = arith.constant 8 : index
    %c0_65 = arith.constant 0 : index
    %c0_66 = arith.constant 0 : index
    %88 = vector.load %arg2[%c8, %c0_65, %c0_66] : memref<9x16x48xbf16, #tpu.memory_space<vmem>>, vector<1x16x48xbf16>
    %89 = vector.shape_cast %88 : vector<1x16x48xbf16> to vector<16x48xbf16>
    %cst_67 = arith.constant dense<0.000000e+00> : vector<16x48xf32>
    %90 = tpu.matmul %28, %89, %cst_67 {dimension_numbers = #tpu.dot_dimension_numbers<[1], [0], [0], [1], [0, 0, 1, 1], [], []>} : vector<16x16xbf16>, vector<16x48xbf16>, vector<16x48xf32> -> vector<16x48xf32>
    %91 = arith.addf %87, %90 : vector<16x48xf32>
    %c0_68 = arith.constant 0 : index
    %c0_69 = arith.constant 0 : index
    %92 = vector.load %arg3[%c0_68, %c0_69] : memref<1x48xf32, #tpu.memory_space<vmem>>, vector<1x48xf32>
    %93 = vector.broadcast %92 : vector<1x48xf32> to vector<16x48xf32>
    %94 = arith.addf %91, %93 : vector<16x48xf32>
    %cst_70 = arith.constant 0.000000e+00 : f32
    %95 = vector.broadcast %cst_70 : f32 to vector<16x48xf32>
    %96 = arith.maximumf %94, %95 : vector<16x48xf32>
    %97 = arith.truncf %96 : vector<16x48xf32> to vector<16x48xbf16>
    %c0_71 = arith.constant 0 : index
    %c0_72 = arith.constant 0 : index
    %c0_73 = arith.constant 0 : index
    %98 = vector.load %arg6[%c0_71, %c0_72, %c0_73] : memref<1x16x64xbf16, #tpu.memory_space<vmem>>, vector<1x16x48xbf16>
    %99 = vector.shape_cast %98 : vector<1x16x48xbf16> to vector<16x48xbf16>
    %100 = vector.shape_cast %97 : vector<16x48xbf16> to vector<1x16x48xbf16>
    tpu.vector_store %arg6[%c0_71, %c0_72, %c0_73], %100 {strides = array<i32>} : memref<1x16x64xbf16, #tpu.memory_space<vmem>>, vector<1x16x48xbf16>,
    %101 = arith.maximumf %22, %24 : vector<16x16xbf16>
    %102 = arith.maximumf %26, %28 : vector<16x16xbf16>
    %103 = arith.maximumf %101, %102 : vector<16x16xbf16>
    %104 = arith.extf %103 : vector<16x16xbf16> to vector<16x16xf32>
    %c0_74 = arith.constant 0 : index
    %c0_75 = arith.constant 0 : index
    %105 = vector.load %arg4[%c0_74, %c0_75] : memref<1x16xf32, #tpu.memory_space<vmem>>, vector<1x16xf32>
    %106 = vector.broadcast %105 : vector<1x16xf32> to vector<16x16xf32>
    %107 = arith.mulf %104, %106 : vector<16x16xf32>
    %c0_76 = arith.constant 0 : index
    %c0_77 = arith.constant 0 : index
    %108 = vector.load %arg5[%c0_76, %c0_77] : memref<1x16xf32, #tpu.memory_space<vmem>>, vector<1x16xf32>
    %109 = vector.broadcast %108 : vector<1x16xf32> to vector<16x16xf32>
    %110 = arith.addf %107, %109 : vector<16x16xf32>
    %cst_78 = arith.constant 0.000000e+00 : f32
    %111 = vector.broadcast %cst_78 : f32 to vector<16x16xf32>
    %112 = arith.maximumf %110, %111 : vector<16x16xf32>
    %113 = arith.truncf %112 : vector<16x16xf32> to vector<16x16xbf16>
    %c0_79 = arith.constant 0 : index
    %c0_80 = arith.constant 0 : index
    %c48 = arith.constant 48 : index
    %114 = vector.load %arg6[%c0_79, %c0_80, %c48] : memref<1x16x64xbf16, #tpu.memory_space<vmem>>, vector<1x16x16xbf16>
    %115 = vector.shape_cast %114 : vector<1x16x16xbf16> to vector<16x16xbf16>
    %116 = vector.shape_cast %113 : vector<16x16xbf16> to vector<1x16x16xbf16>
    tpu.vector_store %arg6[%c0_79, %c0_80, %c48], %116 {strides = array<i32>} : memref<1x16x64xbf16, #tpu.memory_space<vmem>>, vector<1x16x16xbf16>,
    return
  }
  func.func @transform_0(%arg0: i32) -> (i32, i32, i32, i32) {
    %c0_i32 = arith.constant 0 : i32
    %c0_i32_0 = arith.constant 0 : i32
    %c0_i32_1 = arith.constant 0 : i32
    %c0_i32_2 = arith.constant 0 : i32
    return %arg0, %c0_i32, %c0_i32_0, %c0_i32_1 : i32, i32, i32, i32
  }
  func.func @transform_1(%arg0: i32) -> (i32, i32, i32) {
    %c0_i32 = arith.constant 0 : i32
    %c0_i32_0 = arith.constant 0 : i32
    %c0_i32_1 = arith.constant 0 : i32
    %c0_i32_2 = arith.constant 0 : i32
    return %c0_i32, %c0_i32_0, %c0_i32_1 : i32, i32, i32
  }
  func.func @transform_2(%arg0: i32) -> (i32, i32) {
    %c0_i32 = arith.constant 0 : i32
    %c0_i32_0 = arith.constant 0 : i32
    %c0_i32_1 = arith.constant 0 : i32
    return %c0_i32, %c0_i32_0 : i32, i32
  }
  func.func @transform_3(%arg0: i32) -> (i32, i32) {
    %c0_i32 = arith.constant 0 : i32
    %c0_i32_0 = arith.constant 0 : i32
    %c0_i32_1 = arith.constant 0 : i32
    return %c0_i32, %c0_i32_0 : i32, i32
  }
  func.func @transform_4(%arg0: i32) -> (i32, i32) {
    %c0_i32 = arith.constant 0 : i32
    %c0_i32_0 = arith.constant 0 : i32
    %c0_i32_1 = arith.constant 0 : i32
    return %c0_i32, %c0_i32_0 : i32, i32
  }
  func.func @transform_5(%arg0: i32) -> (i32, i32, i32) {
    %c0_i32 = arith.constant 0 : i32
    %c0_i32_0 = arith.constant 0 : i32
    %c0_i32_1 = arith.constant 0 : i32
    return %arg0, %c0_i32, %c0_i32_0 : i32, i32, i32
  }
}

module attributes {stable_mosaic.version = 11 : i64} {
  func.func @_nb_kernel(%arg0: i32, %arg1: memref<1x16x64xbf16, #tpu.memory_space<vmem>>, %arg2: memref<3x64x64xbf16, #tpu.memory_space<vmem>>, %arg3: memref<3x64x64xbf16, #tpu.memory_space<vmem>>, %arg4: memref<3x64x64xbf16, #tpu.memory_space<vmem>>, %arg5: memref<3x64x64xbf16, #tpu.memory_space<vmem>>, %arg6: memref<1x64xf32, #tpu.memory_space<vmem>>, %arg7: memref<1x64xf32, #tpu.memory_space<vmem>>, %arg8: memref<1x16x64xbf16, #tpu.memory_space<vmem>>, %arg9: memref<24x64xf32, #tpu.memory_space<vmem>>) attributes {dimension_semantics = [#tpu.dimension_semantics<parallel>], iteration_bounds = array<i64: 2>, scalar_prefetch = 0 : i64, scratch_operands = 1 : i64, tpu.core_type = #tpu.core_type<tc>, window_params = [{transform_indices = @transform_0, window_bounds = array<i64: 1, 16, 64>}, {pipeline_mode = #tpu.pipeline_mode<synchronous>, transform_indices = @transform_1, window_bounds = array<i64: 3, 64, 64>}, {pipeline_mode = #tpu.pipeline_mode<synchronous>, transform_indices = @transform_2, window_bounds = array<i64: 3, 64, 64>}, {pipeline_mode = #tpu.pipeline_mode<synchronous>, transform_indices = @transform_3, window_bounds = array<i64: 3, 64, 64>}, {pipeline_mode = #tpu.pipeline_mode<synchronous>, transform_indices = @transform_4, window_bounds = array<i64: 3, 64, 64>}, {pipeline_mode = #tpu.pipeline_mode<synchronous>, transform_indices = @transform_5, window_bounds = array<i64: 1, 64>}, {pipeline_mode = #tpu.pipeline_mode<synchronous>, transform_indices = @transform_6, window_bounds = array<i64: 1, 64>}, {transform_indices = @transform_7, window_bounds = array<i64: 1, 16, 64>}]} {
    %0 = tpu.iota {dimensions = array<i32: 0>} : vector<16x1xi32>
    %c4_i32 = arith.constant 4 : i32
    %c0_i32 = arith.constant 0 : i32
    %1 = arith.cmpi eq, %c4_i32, %c0_i32 : i32
    %c1_i32 = arith.constant 1 : i32
    %2 = arith.select %1, %c1_i32, %c4_i32 : i32
    %3 = vector.broadcast %2 : i32 to vector<16x1xi32>
    %4 = arith.remsi %0, %3 : vector<16x1xi32>
    %c0_i32_0 = arith.constant 0 : i32
    %5 = vector.broadcast %c0_i32_0 : i32 to vector<16x1xi32>
    %6 = arith.cmpi ne, %4, %5 : vector<16x1xi32>
    %c0_i32_1 = arith.constant 0 : i32
    %7 = vector.broadcast %c0_i32_1 : i32 to vector<16x1xi32>
    %8 = arith.cmpi slt, %4, %7 : vector<16x1xi32>
    %c0_i32_2 = arith.constant 0 : i32
    %9 = arith.cmpi slt, %2, %c0_i32_2 : i32
    %10 = vector.broadcast %9 : i1 to vector<16x1xi1>
    %11 = vector.broadcast %10 : vector<16x1xi1> to vector<16x1xi1>
    %12 = arith.xori %8, %11 : vector<16x1xi1>
    %13 = arith.andi %12, %6 : vector<16x1xi1>
    %14 = vector.broadcast %2 : i32 to vector<16x1xi32>
    %15 = arith.addi %4, %14 : vector<16x1xi32>
    %16 = arith.select %13, %15, %4 : vector<16x1xi1>, vector<16x1xi32>
    %cst = arith.constant 0.000000e+00 : f32
    %17 = vector.broadcast %cst : f32 to vector<4x64xf32>
    %c0 = arith.constant 0 : index
    %c0_3 = arith.constant 0 : index
    %18 = vector.load %arg9[%c0, %c0_3] : memref<24x64xf32, #tpu.memory_space<vmem>>, vector<4x64xf32>
    tpu.vector_store %arg9[%c0, %c0_3], %17 {strides = array<i32>} : memref<24x64xf32, #tpu.memory_space<vmem>>, vector<4x64xf32>,
    %cst_4 = arith.constant 0.000000e+00 : f32
    %19 = vector.broadcast %cst_4 : f32 to vector<4x64xf32>
    %c20 = arith.constant 20 : index
    %c0_5 = arith.constant 0 : index
    %20 = vector.load %arg9[%c20, %c0_5] : memref<24x64xf32, #tpu.memory_space<vmem>>, vector<4x64xf32>
    tpu.vector_store %arg9[%c20, %c0_5], %19 {strides = array<i32>} : memref<24x64xf32, #tpu.memory_space<vmem>>, vector<4x64xf32>,
    %c0_6 = arith.constant 0 : index
    %c0_7 = arith.constant 0 : index
    %c0_8 = arith.constant 0 : index
    %21 = vector.load %arg1[%c0_6, %c0_7, %c0_8] : memref<1x16x64xbf16, #tpu.memory_space<vmem>>, vector<1x16x64xbf16>
    %22 = vector.shape_cast %21 : vector<1x16x64xbf16> to vector<16x64xbf16>
    %23 = arith.extf %22 : vector<16x64xbf16> to vector<16x64xf32>
    %c1 = arith.constant 1 : index
    %c0_9 = arith.constant 0 : index
    %c0_10 = arith.constant 0 : index
    %24 = vector.load %arg2[%c1, %c0_9, %c0_10] : memref<3x64x64xbf16, #tpu.memory_space<vmem>>, vector<1x64x64xbf16>
    %25 = vector.shape_cast %24 : vector<1x64x64xbf16> to vector<64x64xbf16>
    %cst_11 = arith.constant dense<0.000000e+00> : vector<16x64xf32>
    %26 = tpu.matmul %22, %25, %cst_11 {dimension_numbers = #tpu.dot_dimension_numbers<[1], [0], [0], [1], [0, 0, 1, 1], [], []>} : vector<16x64xbf16>, vector<64x64xbf16>, vector<16x64xf32> -> vector<16x64xf32>
    %c4 = arith.constant 4 : index
    %c0_12 = arith.constant 0 : index
    %27 = vector.load %arg9[%c4, %c0_12] : memref<24x64xf32, #tpu.memory_space<vmem>>, vector<16x64xf32>
    tpu.vector_store %arg9[%c4, %c0_12], %23 {strides = array<i32>} : memref<24x64xf32, #tpu.memory_space<vmem>>, vector<16x64xf32>,
    %c0_13 = arith.constant 0 : index
    %c0_14 = arith.constant 0 : index
    %28 = vector.load %arg9[%c0_13, %c0_14] : memref<24x64xf32, #tpu.memory_space<vmem>>, vector<16x64xf32>
    %29 = arith.truncf %28 : vector<16x64xf32> to vector<16x64xbf16>
    %c0_15 = arith.constant 0 : index
    %c0_16 = arith.constant 0 : index
    %c0_17 = arith.constant 0 : index
    %30 = vector.load %arg2[%c0_15, %c0_16, %c0_17] : memref<3x64x64xbf16, #tpu.memory_space<vmem>>, vector<1x64x64xbf16>
    %31 = vector.shape_cast %30 : vector<1x64x64xbf16> to vector<64x64xbf16>
    %cst_18 = arith.constant dense<0.000000e+00> : vector<16x64xf32>
    %32 = tpu.matmul %29, %31, %cst_18 {dimension_numbers = #tpu.dot_dimension_numbers<[1], [0], [0], [1], [0, 0, 1, 1], [], []>} : vector<16x64xbf16>, vector<64x64xbf16>, vector<16x64xf32> -> vector<16x64xf32>
    %33 = arith.addf %26, %32 : vector<16x64xf32>
    %c8 = arith.constant 8 : index
    %c0_19 = arith.constant 0 : index
    %34 = vector.load %arg9[%c8, %c0_19] : memref<24x64xf32, #tpu.memory_space<vmem>>, vector<16x64xf32>
    %35 = arith.truncf %34 : vector<16x64xf32> to vector<16x64xbf16>
    %c2 = arith.constant 2 : index
    %c0_20 = arith.constant 0 : index
    %c0_21 = arith.constant 0 : index
    %36 = vector.load %arg2[%c2, %c0_20, %c0_21] : memref<3x64x64xbf16, #tpu.memory_space<vmem>>, vector<1x64x64xbf16>
    %37 = vector.shape_cast %36 : vector<1x64x64xbf16> to vector<64x64xbf16>
    %cst_22 = arith.constant dense<0.000000e+00> : vector<16x64xf32>
    %38 = tpu.matmul %35, %37, %cst_22 {dimension_numbers = #tpu.dot_dimension_numbers<[1], [0], [0], [1], [0, 0, 1, 1], [], []>} : vector<16x64xbf16>, vector<64x64xbf16>, vector<16x64xf32> -> vector<16x64xf32>
    %39 = arith.addf %33, %38 : vector<16x64xf32>
    %cst_23 = arith.constant 0.000000e+00 : f32
    %40 = vector.broadcast %cst_23 : f32 to vector<16x64xf32>
    %41 = arith.maximumf %39, %40 : vector<16x64xf32>
    %c1_i32_24 = arith.constant 1 : i32
    %42 = vector.broadcast %c1_i32_24 : i32 to vector<16x1xi32>
    %43 = arith.cmpi sge, %16, %42 : vector<16x1xi32>
    %c3_i32 = arith.constant 3 : i32
    %44 = vector.broadcast %c3_i32 : i32 to vector<16x1xi32>
    %45 = arith.cmpi slt, %16, %44 : vector<16x1xi32>
    %46 = arith.truncf %41 : vector<16x64xf32> to vector<16x64xbf16>
    %c1_25 = arith.constant 1 : index
    %c0_26 = arith.constant 0 : index
    %c0_27 = arith.constant 0 : index
    %47 = vector.load %arg3[%c1_25, %c0_26, %c0_27] : memref<3x64x64xbf16, #tpu.memory_space<vmem>>, vector<1x64x64xbf16>
    %48 = vector.shape_cast %47 : vector<1x64x64xbf16> to vector<64x64xbf16>
    %cst_28 = arith.constant dense<0.000000e+00> : vector<16x64xf32>
    %49 = tpu.matmul %46, %48, %cst_28 {dimension_numbers = #tpu.dot_dimension_numbers<[1], [0], [0], [1], [0, 0, 1, 1], [], []>} : vector<16x64xbf16>, vector<64x64xbf16>, vector<16x64xf32> -> vector<16x64xf32>
    %c4_29 = arith.constant 4 : index
    %c0_30 = arith.constant 0 : index
    %50 = vector.load %arg9[%c4_29, %c0_30] : memref<24x64xf32, #tpu.memory_space<vmem>>, vector<16x64xf32>
    tpu.vector_store %arg9[%c4_29, %c0_30], %41 {strides = array<i32>} : memref<24x64xf32, #tpu.memory_space<vmem>>, vector<16x64xf32>,
    %c3 = arith.constant 3 : index
    %c0_31 = arith.constant 0 : index
    %51 = vector.load %arg9[%c3, %c0_31] : memref<24x64xf32, #tpu.memory_space<vmem>>, vector<16x64xf32>
    %cst_32 = arith.constant 0.000000e+00 : f32
    %52 = vector.shape_cast %43 : vector<16x1xi1> to vector<16x1xi1>
    %53 = vector.broadcast %52 : vector<16x1xi1> to vector<16x64xi1>
    %54 = vector.broadcast %cst_32 : f32 to vector<16x64xf32>
    %55 = arith.select %53, %51, %54 : vector<16x64xi1>, vector<16x64xf32>
    %56 = arith.truncf %55 : vector<16x64xf32> to vector<16x64xbf16>
    %c0_33 = arith.constant 0 : index
    %c0_34 = arith.constant 0 : index
    %c0_35 = arith.constant 0 : index
    %57 = vector.load %arg3[%c0_33, %c0_34, %c0_35] : memref<3x64x64xbf16, #tpu.memory_space<vmem>>, vector<1x64x64xbf16>
    %58 = vector.shape_cast %57 : vector<1x64x64xbf16> to vector<64x64xbf16>
    %cst_36 = arith.constant dense<0.000000e+00> : vector<16x64xf32>
    %59 = tpu.matmul %56, %58, %cst_36 {dimension_numbers = #tpu.dot_dimension_numbers<[1], [0], [0], [1], [0, 0, 1, 1], [], []>} : vector<16x64xbf16>, vector<64x64xbf16>, vector<16x64xf32> -> vector<16x64xf32>
    %60 = arith.addf %49, %59 : vector<16x64xf32>
    %c5 = arith.constant 5 : index
    %c0_37 = arith.constant 0 : index
    %61 = vector.load %arg9[%c5, %c0_37] : memref<24x64xf32, #tpu.memory_space<vmem>>, vector<16x64xf32>
    %cst_38 = arith.constant 0.000000e+00 : f32
    %62 = vector.shape_cast %45 : vector<16x1xi1> to vector<16x1xi1>
    %63 = vector.broadcast %62 : vector<16x1xi1> to vector<16x64xi1>
    %64 = vector.broadcast %cst_38 : f32 to vector<16x64xf32>
    %65 = arith.select %63, %61, %64 : vector<16x64xi1>, vector<16x64xf32>
    %66 = arith.truncf %65 : vector<16x64xf32> to vector<16x64xbf16>
    %c2_39 = arith.constant 2 : index
    %c0_40 = arith.constant 0 : index
    %c0_41 = arith.constant 0 : index
    %67 = vector.load %arg3[%c2_39, %c0_40, %c0_41] : memref<3x64x64xbf16, #tpu.memory_space<vmem>>, vector<1x64x64xbf16>
    %68 = vector.shape_cast %67 : vector<1x64x64xbf16> to vector<64x64xbf16>
    %cst_42 = arith.constant dense<0.000000e+00> : vector<16x64xf32>
    %69 = tpu.matmul %66, %68, %cst_42 {dimension_numbers = #tpu.dot_dimension_numbers<[1], [0], [0], [1], [0, 0, 1, 1], [], []>} : vector<16x64xbf16>, vector<64x64xbf16>, vector<16x64xf32> -> vector<16x64xf32>
    %70 = arith.addf %60, %69 : vector<16x64xf32>
    %c0_43 = arith.constant 0 : index
    %c0_44 = arith.constant 0 : index
    %71 = vector.load %arg6[%c0_43, %c0_44] : memref<1x64xf32, #tpu.memory_space<vmem>>, vector<1x64xf32>
    %72 = vector.broadcast %71 : vector<1x64xf32> to vector<16x64xf32>
    %73 = arith.addf %70, %72 : vector<16x64xf32>
    %cst_45 = arith.constant 0.000000e+00 : f32
    %74 = vector.broadcast %cst_45 : f32 to vector<16x64xf32>
    %75 = arith.maximumf %73, %74 : vector<16x64xf32>
    %76 = arith.truncf %75 : vector<16x64xf32> to vector<16x64xbf16>
    %c1_46 = arith.constant 1 : index
    %c0_47 = arith.constant 0 : index
    %c0_48 = arith.constant 0 : index
    %77 = vector.load %arg4[%c1_46, %c0_47, %c0_48] : memref<3x64x64xbf16, #tpu.memory_space<vmem>>, vector<1x64x64xbf16>
    %78 = vector.shape_cast %77 : vector<1x64x64xbf16> to vector<64x64xbf16>
    %cst_49 = arith.constant dense<0.000000e+00> : vector<16x64xf32>
    %79 = tpu.matmul %76, %78, %cst_49 {dimension_numbers = #tpu.dot_dimension_numbers<[1], [0], [0], [1], [0, 0, 1, 1], [], []>} : vector<16x64xbf16>, vector<64x64xbf16>, vector<16x64xf32> -> vector<16x64xf32>
    %c4_50 = arith.constant 4 : index
    %c0_51 = arith.constant 0 : index
    %80 = vector.load %arg9[%c4_50, %c0_51] : memref<24x64xf32, #tpu.memory_space<vmem>>, vector<16x64xf32>
    tpu.vector_store %arg9[%c4_50, %c0_51], %75 {strides = array<i32>} : memref<24x64xf32, #tpu.memory_space<vmem>>, vector<16x64xf32>,
    %c0_52 = arith.constant 0 : index
    %c0_53 = arith.constant 0 : index
    %81 = vector.load %arg9[%c0_52, %c0_53] : memref<24x64xf32, #tpu.memory_space<vmem>>, vector<16x64xf32>
    %82 = arith.truncf %81 : vector<16x64xf32> to vector<16x64xbf16>
    %c0_54 = arith.constant 0 : index
    %c0_55 = arith.constant 0 : index
    %c0_56 = arith.constant 0 : index
    %83 = vector.load %arg4[%c0_54, %c0_55, %c0_56] : memref<3x64x64xbf16, #tpu.memory_space<vmem>>, vector<1x64x64xbf16>
    %84 = vector.shape_cast %83 : vector<1x64x64xbf16> to vector<64x64xbf16>
    %cst_57 = arith.constant dense<0.000000e+00> : vector<16x64xf32>
    %85 = tpu.matmul %82, %84, %cst_57 {dimension_numbers = #tpu.dot_dimension_numbers<[1], [0], [0], [1], [0, 0, 1, 1], [], []>} : vector<16x64xbf16>, vector<64x64xbf16>, vector<16x64xf32> -> vector<16x64xf32>
    %86 = arith.addf %79, %85 : vector<16x64xf32>
    %c8_58 = arith.constant 8 : index
    %c0_59 = arith.constant 0 : index
    %87 = vector.load %arg9[%c8_58, %c0_59] : memref<24x64xf32, #tpu.memory_space<vmem>>, vector<16x64xf32>
    %88 = arith.truncf %87 : vector<16x64xf32> to vector<16x64xbf16>
    %c2_60 = arith.constant 2 : index
    %c0_61 = arith.constant 0 : index
    %c0_62 = arith.constant 0 : index
    %89 = vector.load %arg4[%c2_60, %c0_61, %c0_62] : memref<3x64x64xbf16, #tpu.memory_space<vmem>>, vector<1x64x64xbf16>
    %90 = vector.shape_cast %89 : vector<1x64x64xbf16> to vector<64x64xbf16>
    %cst_63 = arith.constant dense<0.000000e+00> : vector<16x64xf32>
    %91 = tpu.matmul %88, %90, %cst_63 {dimension_numbers = #tpu.dot_dimension_numbers<[1], [0], [0], [1], [0, 0, 1, 1], [], []>} : vector<16x64xbf16>, vector<64x64xbf16>, vector<16x64xf32> -> vector<16x64xf32>
    %92 = arith.addf %86, %91 : vector<16x64xf32>
    %cst_64 = arith.constant 0.000000e+00 : f32
    %93 = vector.broadcast %cst_64 : f32 to vector<16x64xf32>
    %94 = arith.maximumf %92, %93 : vector<16x64xf32>
    %c1_i32_65 = arith.constant 1 : i32
    %95 = vector.broadcast %c1_i32_65 : i32 to vector<16x1xi32>
    %96 = arith.cmpi sge, %16, %95 : vector<16x1xi32>
    %c3_i32_66 = arith.constant 3 : i32
    %97 = vector.broadcast %c3_i32_66 : i32 to vector<16x1xi32>
    %98 = arith.cmpi slt, %16, %97 : vector<16x1xi32>
    %99 = arith.truncf %94 : vector<16x64xf32> to vector<16x64xbf16>
    %c1_67 = arith.constant 1 : index
    %c0_68 = arith.constant 0 : index
    %c0_69 = arith.constant 0 : index
    %100 = vector.load %arg5[%c1_67, %c0_68, %c0_69] : memref<3x64x64xbf16, #tpu.memory_space<vmem>>, vector<1x64x64xbf16>
    %101 = vector.shape_cast %100 : vector<1x64x64xbf16> to vector<64x64xbf16>
    %cst_70 = arith.constant dense<0.000000e+00> : vector<16x64xf32>
    %102 = tpu.matmul %99, %101, %cst_70 {dimension_numbers = #tpu.dot_dimension_numbers<[1], [0], [0], [1], [0, 0, 1, 1], [], []>} : vector<16x64xbf16>, vector<64x64xbf16>, vector<16x64xf32> -> vector<16x64xf32>
    %c4_71 = arith.constant 4 : index
    %c0_72 = arith.constant 0 : index
    %103 = vector.load %arg9[%c4_71, %c0_72] : memref<24x64xf32, #tpu.memory_space<vmem>>, vector<16x64xf32>
    tpu.vector_store %arg9[%c4_71, %c0_72], %94 {strides = array<i32>} : memref<24x64xf32, #tpu.memory_space<vmem>>, vector<16x64xf32>,
    %c3_73 = arith.constant 3 : index
    %c0_74 = arith.constant 0 : index
    %104 = vector.load %arg9[%c3_73, %c0_74] : memref<24x64xf32, #tpu.memory_space<vmem>>, vector<16x64xf32>
    %cst_75 = arith.constant 0.000000e+00 : f32
    %105 = vector.shape_cast %96 : vector<16x1xi1> to vector<16x1xi1>
    %106 = vector.broadcast %105 : vector<16x1xi1> to vector<16x64xi1>
    %107 = vector.broadcast %cst_75 : f32 to vector<16x64xf32>
    %108 = arith.select %106, %104, %107 : vector<16x64xi1>, vector<16x64xf32>
    %109 = arith.truncf %108 : vector<16x64xf32> to vector<16x64xbf16>
    %c0_76 = arith.constant 0 : index
    %c0_77 = arith.constant 0 : index
    %c0_78 = arith.constant 0 : index
    %110 = vector.load %arg5[%c0_76, %c0_77, %c0_78] : memref<3x64x64xbf16, #tpu.memory_space<vmem>>, vector<1x64x64xbf16>
    %111 = vector.shape_cast %110 : vector<1x64x64xbf16> to vector<64x64xbf16>
    %cst_79 = arith.constant dense<0.000000e+00> : vector<16x64xf32>
    %112 = tpu.matmul %109, %111, %cst_79 {dimension_numbers = #tpu.dot_dimension_numbers<[1], [0], [0], [1], [0, 0, 1, 1], [], []>} : vector<16x64xbf16>, vector<64x64xbf16>, vector<16x64xf32> -> vector<16x64xf32>
    %113 = arith.addf %102, %112 : vector<16x64xf32>
    %c5_80 = arith.constant 5 : index
    %c0_81 = arith.constant 0 : index
    %114 = vector.load %arg9[%c5_80, %c0_81] : memref<24x64xf32, #tpu.memory_space<vmem>>, vector<16x64xf32>
    %cst_82 = arith.constant 0.000000e+00 : f32
    %115 = vector.shape_cast %98 : vector<16x1xi1> to vector<16x1xi1>
    %116 = vector.broadcast %115 : vector<16x1xi1> to vector<16x64xi1>
    %117 = vector.broadcast %cst_82 : f32 to vector<16x64xf32>
    %118 = arith.select %116, %114, %117 : vector<16x64xi1>, vector<16x64xf32>
    %119 = arith.truncf %118 : vector<16x64xf32> to vector<16x64xbf16>
    %c2_83 = arith.constant 2 : index
    %c0_84 = arith.constant 0 : index
    %c0_85 = arith.constant 0 : index
    %120 = vector.load %arg5[%c2_83, %c0_84, %c0_85] : memref<3x64x64xbf16, #tpu.memory_space<vmem>>, vector<1x64x64xbf16>
    %121 = vector.shape_cast %120 : vector<1x64x64xbf16> to vector<64x64xbf16>
    %cst_86 = arith.constant dense<0.000000e+00> : vector<16x64xf32>
    %122 = tpu.matmul %119, %121, %cst_86 {dimension_numbers = #tpu.dot_dimension_numbers<[1], [0], [0], [1], [0, 0, 1, 1], [], []>} : vector<16x64xbf16>, vector<64x64xbf16>, vector<16x64xf32> -> vector<16x64xf32>
    %123 = arith.addf %113, %122 : vector<16x64xf32>
    %c0_87 = arith.constant 0 : index
    %c0_88 = arith.constant 0 : index
    %124 = vector.load %arg7[%c0_87, %c0_88] : memref<1x64xf32, #tpu.memory_space<vmem>>, vector<1x64xf32>
    %125 = vector.broadcast %124 : vector<1x64xf32> to vector<16x64xf32>
    %126 = arith.addf %123, %125 : vector<16x64xf32>
    %127 = arith.addf %126, %23 : vector<16x64xf32>
    %cst_89 = arith.constant 0.000000e+00 : f32
    %128 = vector.broadcast %cst_89 : f32 to vector<16x64xf32>
    %129 = arith.maximumf %127, %128 : vector<16x64xf32>
    %130 = arith.truncf %129 : vector<16x64xf32> to vector<16x64xbf16>
    %c0_90 = arith.constant 0 : index
    %c0_91 = arith.constant 0 : index
    %c0_92 = arith.constant 0 : index
    %131 = vector.load %arg8[%c0_90, %c0_91, %c0_92] : memref<1x16x64xbf16, #tpu.memory_space<vmem>>, vector<1x16x64xbf16>
    %132 = vector.shape_cast %131 : vector<1x16x64xbf16> to vector<16x64xbf16>
    %133 = vector.shape_cast %130 : vector<16x64xbf16> to vector<1x16x64xbf16>
    tpu.vector_store %arg8[%c0_90, %c0_91, %c0_92], %133 {strides = array<i32>} : memref<1x16x64xbf16, #tpu.memory_space<vmem>>, vector<1x16x64xbf16>,
    return
  }
  func.func @transform_0(%arg0: i32) -> (i32, i32, i32) {
    %c0_i32 = arith.constant 0 : i32
    %c0_i32_0 = arith.constant 0 : i32
    %c0_i32_1 = arith.constant 0 : i32
    return %arg0, %c0_i32, %c0_i32_0 : i32, i32, i32
  }
  func.func @transform_1(%arg0: i32) -> (i32, i32, i32) {
    %c0_i32 = arith.constant 0 : i32
    %c0_i32_0 = arith.constant 0 : i32
    %c0_i32_1 = arith.constant 0 : i32
    %c0_i32_2 = arith.constant 0 : i32
    return %c0_i32, %c0_i32_0, %c0_i32_1 : i32, i32, i32
  }
  func.func @transform_2(%arg0: i32) -> (i32, i32, i32) {
    %c0_i32 = arith.constant 0 : i32
    %c0_i32_0 = arith.constant 0 : i32
    %c0_i32_1 = arith.constant 0 : i32
    %c0_i32_2 = arith.constant 0 : i32
    return %c0_i32, %c0_i32_0, %c0_i32_1 : i32, i32, i32
  }
  func.func @transform_3(%arg0: i32) -> (i32, i32, i32) {
    %c0_i32 = arith.constant 0 : i32
    %c0_i32_0 = arith.constant 0 : i32
    %c0_i32_1 = arith.constant 0 : i32
    %c0_i32_2 = arith.constant 0 : i32
    return %c0_i32, %c0_i32_0, %c0_i32_1 : i32, i32, i32
  }
  func.func @transform_4(%arg0: i32) -> (i32, i32, i32) {
    %c0_i32 = arith.constant 0 : i32
    %c0_i32_0 = arith.constant 0 : i32
    %c0_i32_1 = arith.constant 0 : i32
    %c0_i32_2 = arith.constant 0 : i32
    return %c0_i32, %c0_i32_0, %c0_i32_1 : i32, i32, i32
  }
  func.func @transform_5(%arg0: i32) -> (i32, i32) {
    %c0_i32 = arith.constant 0 : i32
    %c0_i32_0 = arith.constant 0 : i32
    %c0_i32_1 = arith.constant 0 : i32
    return %c0_i32, %c0_i32_0 : i32, i32
  }
  func.func @transform_6(%arg0: i32) -> (i32, i32) {
    %c0_i32 = arith.constant 0 : i32
    %c0_i32_0 = arith.constant 0 : i32
    %c0_i32_1 = arith.constant 0 : i32
    return %c0_i32, %c0_i32_0 : i32, i32
  }
  func.func @transform_7(%arg0: i32) -> (i32, i32, i32) {
    %c0_i32 = arith.constant 0 : i32
    %c0_i32_0 = arith.constant 0 : i32
    %c0_i32_1 = arith.constant 0 : i32
    return %arg0, %c0_i32, %c0_i32_0 : i32, i32, i32
  }
}

module attributes {stable_mosaic.version = 11 : i64} {
  func.func @_down_kernel(%arg0: i32, %arg1: memref<1x4x4x64xbf16, #tpu.memory_space<vmem>>, %arg2: memref<9x64x64xbf16, #tpu.memory_space<vmem>>, %arg3: memref<1x64xf32, #tpu.memory_space<vmem>>, %arg4: memref<1x64xf32, #tpu.memory_space<vmem>>, %arg5: memref<1x64xf32, #tpu.memory_space<vmem>>, %arg6: memref<1x4x128xbf16, #tpu.memory_space<vmem>>, %arg7: memref<7x64xf32, #tpu.memory_space<vmem>>) attributes {dimension_semantics = [#tpu.dimension_semantics<parallel>], iteration_bounds = array<i64: 2>, scalar_prefetch = 0 : i64, scratch_operands = 1 : i64, tpu.core_type = #tpu.core_type<tc>, window_params = [{transform_indices = @transform_0, window_bounds = array<i64: 1, 4, 4, 64>}, {pipeline_mode = #tpu.pipeline_mode<synchronous>, transform_indices = @transform_1, window_bounds = array<i64: 9, 64, 64>}, {pipeline_mode = #tpu.pipeline_mode<synchronous>, transform_indices = @transform_2, window_bounds = array<i64: 1, 64>}, {pipeline_mode = #tpu.pipeline_mode<synchronous>, transform_indices = @transform_3, window_bounds = array<i64: 1, 64>}, {pipeline_mode = #tpu.pipeline_mode<synchronous>, transform_indices = @transform_4, window_bounds = array<i64: 1, 64>}, {transform_indices = @transform_5, window_bounds = array<i64: 1, 4, 128>}]} {
    %0 = tpu.iota {dimensions = array<i32: 0>} : vector<4x1xi32>
    %c2_i32 = arith.constant 2 : i32
    %c0_i32 = arith.constant 0 : i32
    %1 = arith.cmpi eq, %c2_i32, %c0_i32 : i32
    %c1_i32 = arith.constant 1 : i32
    %2 = arith.select %1, %c1_i32, %c2_i32 : i32
    %3 = vector.broadcast %2 : i32 to vector<4x1xi32>
    %4 = arith.remsi %0, %3 : vector<4x1xi32>
    %c0_i32_0 = arith.constant 0 : i32
    %5 = vector.broadcast %c0_i32_0 : i32 to vector<4x1xi32>
    %6 = arith.cmpi ne, %4, %5 : vector<4x1xi32>
    %c0_i32_1 = arith.constant 0 : i32
    %7 = vector.broadcast %c0_i32_1 : i32 to vector<4x1xi32>
    %8 = arith.cmpi slt, %4, %7 : vector<4x1xi32>
    %c0_i32_2 = arith.constant 0 : i32
    %9 = arith.cmpi slt, %2, %c0_i32_2 : i32
    %10 = vector.broadcast %9 : i1 to vector<4x1xi1>
    %11 = vector.broadcast %10 : vector<4x1xi1> to vector<4x1xi1>
    %12 = arith.xori %8, %11 : vector<4x1xi1>
    %13 = arith.andi %12, %6 : vector<4x1xi1>
    %14 = vector.broadcast %2 : i32 to vector<4x1xi32>
    %15 = arith.addi %4, %14 : vector<4x1xi32>
    %16 = arith.select %13, %15, %4 : vector<4x1xi1>, vector<4x1xi32>
    %c1_i32_3 = arith.constant 1 : i32
    %17 = vector.broadcast %c1_i32_3 : i32 to vector<4x1xi32>
    %18 = arith.cmpi sge, %16, %17 : vector<4x1xi32>
    %cst = arith.constant 0.000000e+00 : f32
    %19 = vector.broadcast %cst : f32 to vector<3x64xf32>
    %c0 = arith.constant 0 : index
    %c0_4 = arith.constant 0 : index
    %20 = vector.load %arg7[%c0, %c0_4] : memref<7x64xf32, #tpu.memory_space<vmem>>, vector<3x64xf32>
    tpu.vector_store %arg7[%c0, %c0_4], %19 {strides = array<i32>} : memref<7x64xf32, #tpu.memory_space<vmem>>, vector<3x64xf32>,
    %c0_5 = arith.constant 0 : index
    %c0_6 = arith.constant 0 : index
    %c0_7 = arith.constant 0 : index
    %c0_8 = arith.constant 0 : index
    %21 = vector.load %arg1[%c0_5, %c0_6, %c0_7, %c0_8] : memref<1x4x4x64xbf16, #tpu.memory_space<vmem>>, vector<1x1x4x64xbf16>
    %22 = vector.shape_cast %21 : vector<1x1x4x64xbf16> to vector<4x64xbf16>
    %c0_9 = arith.constant 0 : index
    %c1 = arith.constant 1 : index
    %c0_10 = arith.constant 0 : index
    %c0_11 = arith.constant 0 : index
    %23 = vector.load %arg1[%c0_9, %c1, %c0_10, %c0_11] : memref<1x4x4x64xbf16, #tpu.memory_space<vmem>>, vector<1x1x4x64xbf16>
    %24 = vector.shape_cast %23 : vector<1x1x4x64xbf16> to vector<4x64xbf16>
    %c0_12 = arith.constant 0 : index
    %c2 = arith.constant 2 : index
    %c0_13 = arith.constant 0 : index
    %c0_14 = arith.constant 0 : index
    %25 = vector.load %arg1[%c0_12, %c2, %c0_13, %c0_14] : memref<1x4x4x64xbf16, #tpu.memory_space<vmem>>, vector<1x1x4x64xbf16>
    %26 = vector.shape_cast %25 : vector<1x1x4x64xbf16> to vector<4x64xbf16>
    %c0_15 = arith.constant 0 : index
    %c3 = arith.constant 3 : index
    %c0_16 = arith.constant 0 : index
    %c0_17 = arith.constant 0 : index
    %27 = vector.load %arg1[%c0_15, %c3, %c0_16, %c0_17] : memref<1x4x4x64xbf16, #tpu.memory_space<vmem>>, vector<1x1x4x64xbf16>
    %28 = vector.shape_cast %27 : vector<1x1x4x64xbf16> to vector<4x64xbf16>
    %c4 = arith.constant 4 : index
    %c0_18 = arith.constant 0 : index
    %c0_19 = arith.constant 0 : index
    %29 = vector.load %arg2[%c4, %c0_18, %c0_19] : memref<9x64x64xbf16, #tpu.memory_space<vmem>>, vector<1x64x64xbf16>
    %30 = vector.shape_cast %29 : vector<1x64x64xbf16> to vector<64x64xbf16>
    %cst_20 = arith.constant dense<0.000000e+00> : vector<4x64xf32>
    %31 = tpu.matmul %22, %30, %cst_20 {dimension_numbers = #tpu.dot_dimension_numbers<[1], [0], [0], [1], [0, 0, 1, 1], [], []>} : vector<4x64xbf16>, vector<64x64xbf16>, vector<4x64xf32> -> vector<4x64xf32>
    %32 = arith.extf %24 : vector<4x64xbf16> to vector<4x64xf32>
    %c3_21 = arith.constant 3 : index
    %c0_22 = arith.constant 0 : index
    %33 = vector.load %arg7[%c3_21, %c0_22] : memref<7x64xf32, #tpu.memory_space<vmem>>, vector<4x64xf32>
    tpu.vector_store %arg7[%c3_21, %c0_22], %32 {strides = array<i32>} : memref<7x64xf32, #tpu.memory_space<vmem>>, vector<4x64xf32>,
    %c2_23 = arith.constant 2 : index
    %c0_24 = arith.constant 0 : index
    %34 = vector.load %arg7[%c2_23, %c0_24] : memref<7x64xf32, #tpu.memory_space<vmem>>, vector<4x64xf32>
    %cst_25 = arith.constant 0.000000e+00 : f32
    %35 = vector.shape_cast %18 : vector<4x1xi1> to vector<4x1xi1>
    %36 = vector.broadcast %35 : vector<4x1xi1> to vector<4x64xi1>
    %37 = vector.broadcast %cst_25 : f32 to vector<4x64xf32>
    %38 = arith.select %36, %34, %37 : vector<4x64xi1>, vector<4x64xf32>
    %39 = arith.truncf %38 : vector<4x64xf32> to vector<4x64xbf16>
    %c3_26 = arith.constant 3 : index
    %c0_27 = arith.constant 0 : index
    %c0_28 = arith.constant 0 : index
    %40 = vector.load %arg2[%c3_26, %c0_27, %c0_28] : memref<9x64x64xbf16, #tpu.memory_space<vmem>>, vector<1x64x64xbf16>
    %41 = vector.shape_cast %40 : vector<1x64x64xbf16> to vector<64x64xbf16>
    %cst_29 = arith.constant dense<0.000000e+00> : vector<4x64xf32>
    %42 = tpu.matmul %39, %41, %cst_29 {dimension_numbers = #tpu.dot_dimension_numbers<[1], [0], [0], [1], [0, 0, 1, 1], [], []>} : vector<4x64xbf16>, vector<64x64xbf16>, vector<4x64xf32> -> vector<4x64xf32>
    %43 = arith.addf %31, %42 : vector<4x64xf32>
    %c5 = arith.constant 5 : index
    %c0_30 = arith.constant 0 : index
    %c0_31 = arith.constant 0 : index
    %44 = vector.load %arg2[%c5, %c0_30, %c0_31] : memref<9x64x64xbf16, #tpu.memory_space<vmem>>, vector<1x64x64xbf16>
    %45 = vector.shape_cast %44 : vector<1x64x64xbf16> to vector<64x64xbf16>
    %cst_32 = arith.constant dense<0.000000e+00> : vector<4x64xf32>
    %46 = tpu.matmul %24, %45, %cst_32 {dimension_numbers = #tpu.dot_dimension_numbers<[1], [0], [0], [1], [0, 0, 1, 1], [], []>} : vector<4x64xbf16>, vector<64x64xbf16>, vector<4x64xf32> -> vector<4x64xf32>
    %47 = arith.addf %43, %46 : vector<4x64xf32>
    %48 = arith.extf %26 : vector<4x64xbf16> to vector<4x64xf32>
    %c3_33 = arith.constant 3 : index
    %c0_34 = arith.constant 0 : index
    %49 = vector.load %arg7[%c3_33, %c0_34] : memref<7x64xf32, #tpu.memory_space<vmem>>, vector<4x64xf32>
    tpu.vector_store %arg7[%c3_33, %c0_34], %48 {strides = array<i32>} : memref<7x64xf32, #tpu.memory_space<vmem>>, vector<4x64xf32>,
    %c1_35 = arith.constant 1 : index
    %c0_36 = arith.constant 0 : index
    %50 = vector.load %arg7[%c1_35, %c0_36] : memref<7x64xf32, #tpu.memory_space<vmem>>, vector<4x64xf32>
    %51 = arith.truncf %50 : vector<4x64xf32> to vector<4x64xbf16>
    %c1_37 = arith.constant 1 : index
    %c0_38 = arith.constant 0 : index
    %c0_39 = arith.constant 0 : index
    %52 = vector.load %arg2[%c1_37, %c0_38, %c0_39] : memref<9x64x64xbf16, #tpu.memory_space<vmem>>, vector<1x64x64xbf16>
    %53 = vector.shape_cast %52 : vector<1x64x64xbf16> to vector<64x64xbf16>
    %cst_40 = arith.constant dense<0.000000e+00> : vector<4x64xf32>
    %54 = tpu.matmul %51, %53, %cst_40 {dimension_numbers = #tpu.dot_dimension_numbers<[1], [0], [0], [1], [0, 0, 1, 1], [], []>} : vector<4x64xbf16>, vector<64x64xbf16>, vector<4x64xf32> -> vector<4x64xf32>
    %55 = arith.addf %47, %54 : vector<4x64xf32>
    %c7 = arith.constant 7 : index
    %c0_41 = arith.constant 0 : index
    %c0_42 = arith.constant 0 : index
    %56 = vector.load %arg2[%c7, %c0_41, %c0_42] : memref<9x64x64xbf16, #tpu.memory_space<vmem>>, vector<1x64x64xbf16>
    %57 = vector.shape_cast %56 : vector<1x64x64xbf16> to vector<64x64xbf16>
    %cst_43 = arith.constant dense<0.000000e+00> : vector<4x64xf32>
    %58 = tpu.matmul %26, %57, %cst_43 {dimension_numbers = #tpu.dot_dimension_numbers<[1], [0], [0], [1], [0, 0, 1, 1], [], []>} : vector<4x64xbf16>, vector<64x64xbf16>, vector<4x64xf32> -> vector<4x64xf32>
    %59 = arith.addf %55, %58 : vector<4x64xf32>
    %60 = arith.extf %28 : vector<4x64xbf16> to vector<4x64xf32>
    %c3_44 = arith.constant 3 : index
    %c0_45 = arith.constant 0 : index
    %61 = vector.load %arg7[%c3_44, %c0_45] : memref<7x64xf32, #tpu.memory_space<vmem>>, vector<4x64xf32>
    tpu.vector_store %arg7[%c3_44, %c0_45], %60 {strides = array<i32>} : memref<7x64xf32, #tpu.memory_space<vmem>>, vector<4x64xf32>,
    %c0_46 = arith.constant 0 : index
    %c0_47 = arith.constant 0 : index
    %62 = vector.load %arg7[%c0_46, %c0_47] : memref<7x64xf32, #tpu.memory_space<vmem>>, vector<4x64xf32>
    %cst_48 = arith.constant 0.000000e+00 : f32
    %63 = vector.shape_cast %18 : vector<4x1xi1> to vector<4x1xi1>
    %64 = vector.broadcast %63 : vector<4x1xi1> to vector<4x64xi1>
    %65 = vector.broadcast %cst_48 : f32 to vector<4x64xf32>
    %66 = arith.select %64, %62, %65 : vector<4x64xi1>, vector<4x64xf32>
    %67 = arith.truncf %66 : vector<4x64xf32> to vector<4x64xbf16>
    %c0_49 = arith.constant 0 : index
    %c0_50 = arith.constant 0 : index
    %c0_51 = arith.constant 0 : index
    %68 = vector.load %arg2[%c0_49, %c0_50, %c0_51] : memref<9x64x64xbf16, #tpu.memory_space<vmem>>, vector<1x64x64xbf16>
    %69 = vector.shape_cast %68 : vector<1x64x64xbf16> to vector<64x64xbf16>
    %cst_52 = arith.constant dense<0.000000e+00> : vector<4x64xf32>
    %70 = tpu.matmul %67, %69, %cst_52 {dimension_numbers = #tpu.dot_dimension_numbers<[1], [0], [0], [1], [0, 0, 1, 1], [], []>} : vector<4x64xbf16>, vector<64x64xbf16>, vector<4x64xf32> -> vector<4x64xf32>
    %71 = arith.addf %59, %70 : vector<4x64xf32>
    %c1_53 = arith.constant 1 : index
    %c0_54 = arith.constant 0 : index
    %72 = vector.load %arg7[%c1_53, %c0_54] : memref<7x64xf32, #tpu.memory_space<vmem>>, vector<4x64xf32>
    %73 = arith.truncf %72 : vector<4x64xf32> to vector<4x64xbf16>
    %c2_55 = arith.constant 2 : index
    %c0_56 = arith.constant 0 : index
    %c0_57 = arith.constant 0 : index
    %74 = vector.load %arg2[%c2_55, %c0_56, %c0_57] : memref<9x64x64xbf16, #tpu.memory_space<vmem>>, vector<1x64x64xbf16>
    %75 = vector.shape_cast %74 : vector<1x64x64xbf16> to vector<64x64xbf16>
    %cst_58 = arith.constant dense<0.000000e+00> : vector<4x64xf32>
    %76 = tpu.matmul %73, %75, %cst_58 {dimension_numbers = #tpu.dot_dimension_numbers<[1], [0], [0], [1], [0, 0, 1, 1], [], []>} : vector<4x64xbf16>, vector<64x64xbf16>, vector<4x64xf32> -> vector<4x64xf32>
    %77 = arith.addf %71, %76 : vector<4x64xf32>
    %c2_59 = arith.constant 2 : index
    %c0_60 = arith.constant 0 : index
    %78 = vector.load %arg7[%c2_59, %c0_60] : memref<7x64xf32, #tpu.memory_space<vmem>>, vector<4x64xf32>
    %cst_61 = arith.constant 0.000000e+00 : f32
    %79 = vector.shape_cast %18 : vector<4x1xi1> to vector<4x1xi1>
    %80 = vector.broadcast %79 : vector<4x1xi1> to vector<4x64xi1>
    %81 = vector.broadcast %cst_61 : f32 to vector<4x64xf32>
    %82 = arith.select %80, %78, %81 : vector<4x64xi1>, vector<4x64xf32>
    %83 = arith.truncf %82 : vector<4x64xf32> to vector<4x64xbf16>
    %c6 = arith.constant 6 : index
    %c0_62 = arith.constant 0 : index
    %c0_63 = arith.constant 0 : index
    %84 = vector.load %arg2[%c6, %c0_62, %c0_63] : memref<9x64x64xbf16, #tpu.memory_space<vmem>>, vector<1x64x64xbf16>
    %85 = vector.shape_cast %84 : vector<1x64x64xbf16> to vector<64x64xbf16>
    %cst_64 = arith.constant dense<0.000000e+00> : vector<4x64xf32>
    %86 = tpu.matmul %83, %85, %cst_64 {dimension_numbers = #tpu.dot_dimension_numbers<[1], [0], [0], [1], [0, 0, 1, 1], [], []>} : vector<4x64xbf16>, vector<64x64xbf16>, vector<4x64xf32> -> vector<4x64xf32>
    %87 = arith.addf %77, %86 : vector<4x64xf32>
    %c8 = arith.constant 8 : index
    %c0_65 = arith.constant 0 : index
    %c0_66 = arith.constant 0 : index
    %88 = vector.load %arg2[%c8, %c0_65, %c0_66] : memref<9x64x64xbf16, #tpu.memory_space<vmem>>, vector<1x64x64xbf16>
    %89 = vector.shape_cast %88 : vector<1x64x64xbf16> to vector<64x64xbf16>
    %cst_67 = arith.constant dense<0.000000e+00> : vector<4x64xf32>
    %90 = tpu.matmul %28, %89, %cst_67 {dimension_numbers = #tpu.dot_dimension_numbers<[1], [0], [0], [1], [0, 0, 1, 1], [], []>} : vector<4x64xbf16>, vector<64x64xbf16>, vector<4x64xf32> -> vector<4x64xf32>
    %91 = arith.addf %87, %90 : vector<4x64xf32>
    %c0_68 = arith.constant 0 : index
    %c0_69 = arith.constant 0 : index
    %92 = vector.load %arg3[%c0_68, %c0_69] : memref<1x64xf32, #tpu.memory_space<vmem>>, vector<1x64xf32>
    %93 = vector.broadcast %92 : vector<1x64xf32> to vector<4x64xf32>
    %94 = arith.addf %91, %93 : vector<4x64xf32>
    %cst_70 = arith.constant 0.000000e+00 : f32
    %95 = vector.broadcast %cst_70 : f32 to vector<4x64xf32>
    %96 = arith.maximumf %94, %95 : vector<4x64xf32>
    %97 = arith.truncf %96 : vector<4x64xf32> to vector<4x64xbf16>
    %c0_71 = arith.constant 0 : index
    %c0_72 = arith.constant 0 : index
    %c0_73 = arith.constant 0 : index
    %98 = vector.load %arg6[%c0_71, %c0_72, %c0_73] : memref<1x4x128xbf16, #tpu.memory_space<vmem>>, vector<1x4x64xbf16>
    %99 = vector.shape_cast %98 : vector<1x4x64xbf16> to vector<4x64xbf16>
    %100 = vector.shape_cast %97 : vector<4x64xbf16> to vector<1x4x64xbf16>
    tpu.vector_store %arg6[%c0_71, %c0_72, %c0_73], %100 {strides = array<i32>} : memref<1x4x128xbf16, #tpu.memory_space<vmem>>, vector<1x4x64xbf16>,
    %101 = arith.maximumf %22, %24 : vector<4x64xbf16>
    %102 = arith.maximumf %26, %28 : vector<4x64xbf16>
    %103 = arith.maximumf %101, %102 : vector<4x64xbf16>
    %104 = arith.extf %103 : vector<4x64xbf16> to vector<4x64xf32>
    %c0_74 = arith.constant 0 : index
    %c0_75 = arith.constant 0 : index
    %105 = vector.load %arg4[%c0_74, %c0_75] : memref<1x64xf32, #tpu.memory_space<vmem>>, vector<1x64xf32>
    %106 = vector.broadcast %105 : vector<1x64xf32> to vector<4x64xf32>
    %107 = arith.mulf %104, %106 : vector<4x64xf32>
    %c0_76 = arith.constant 0 : index
    %c0_77 = arith.constant 0 : index
    %108 = vector.load %arg5[%c0_76, %c0_77] : memref<1x64xf32, #tpu.memory_space<vmem>>, vector<1x64xf32>
    %109 = vector.broadcast %108 : vector<1x64xf32> to vector<4x64xf32>
    %110 = arith.addf %107, %109 : vector<4x64xf32>
    %cst_78 = arith.constant 0.000000e+00 : f32
    %111 = vector.broadcast %cst_78 : f32 to vector<4x64xf32>
    %112 = arith.maximumf %110, %111 : vector<4x64xf32>
    %113 = arith.truncf %112 : vector<4x64xf32> to vector<4x64xbf16>
    %c0_79 = arith.constant 0 : index
    %c0_80 = arith.constant 0 : index
    %c64 = arith.constant 64 : index
    %114 = vector.load %arg6[%c0_79, %c0_80, %c64] : memref<1x4x128xbf16, #tpu.memory_space<vmem>>, vector<1x4x64xbf16>
    %115 = vector.shape_cast %114 : vector<1x4x64xbf16> to vector<4x64xbf16>
    %116 = vector.shape_cast %113 : vector<4x64xbf16> to vector<1x4x64xbf16>
    tpu.vector_store %arg6[%c0_79, %c0_80, %c64], %116 {strides = array<i32>} : memref<1x4x128xbf16, #tpu.memory_space<vmem>>, vector<1x4x64xbf16>,
    return
  }
  func.func @transform_0(%arg0: i32) -> (i32, i32, i32, i32) {
    %c0_i32 = arith.constant 0 : i32
    %c0_i32_0 = arith.constant 0 : i32
    %c0_i32_1 = arith.constant 0 : i32
    %c0_i32_2 = arith.constant 0 : i32
    return %arg0, %c0_i32, %c0_i32_0, %c0_i32_1 : i32, i32, i32, i32
  }
  func.func @transform_1(%arg0: i32) -> (i32, i32, i32) {
    %c0_i32 = arith.constant 0 : i32
    %c0_i32_0 = arith.constant 0 : i32
    %c0_i32_1 = arith.constant 0 : i32
    %c0_i32_2 = arith.constant 0 : i32
    return %c0_i32, %c0_i32_0, %c0_i32_1 : i32, i32, i32
  }
  func.func @transform_2(%arg0: i32) -> (i32, i32) {
    %c0_i32 = arith.constant 0 : i32
    %c0_i32_0 = arith.constant 0 : i32
    %c0_i32_1 = arith.constant 0 : i32
    return %c0_i32, %c0_i32_0 : i32, i32
  }
  func.func @transform_3(%arg0: i32) -> (i32, i32) {
    %c0_i32 = arith.constant 0 : i32
    %c0_i32_0 = arith.constant 0 : i32
    %c0_i32_1 = arith.constant 0 : i32
    return %c0_i32, %c0_i32_0 : i32, i32
  }
  func.func @transform_4(%arg0: i32) -> (i32, i32) {
    %c0_i32 = arith.constant 0 : i32
    %c0_i32_0 = arith.constant 0 : i32
    %c0_i32_1 = arith.constant 0 : i32
    return %c0_i32, %c0_i32_0 : i32, i32
  }
  func.func @transform_5(%arg0: i32) -> (i32, i32, i32) {
    %c0_i32 = arith.constant 0 : i32
    %c0_i32_0 = arith.constant 0 : i32
    %c0_i32_1 = arith.constant 0 : i32
    return %arg0, %c0_i32, %c0_i32_0 : i32, i32, i32
  }
}

module attributes {stable_mosaic.version = 11 : i64} {
  func.func @_nb_kernel(%arg0: i32, %arg1: memref<1x4x128xbf16, #tpu.memory_space<vmem>>, %arg2: memref<3x128x128xbf16, #tpu.memory_space<vmem>>, %arg3: memref<3x128x128xbf16, #tpu.memory_space<vmem>>, %arg4: memref<3x128x128xbf16, #tpu.memory_space<vmem>>, %arg5: memref<3x128x128xbf16, #tpu.memory_space<vmem>>, %arg6: memref<1x128xf32, #tpu.memory_space<vmem>>, %arg7: memref<1x128xf32, #tpu.memory_space<vmem>>, %arg8: memref<1x4x128xbf16, #tpu.memory_space<vmem>>, %arg9: memref<8x128xf32, #tpu.memory_space<vmem>>) attributes {dimension_semantics = [#tpu.dimension_semantics<parallel>], iteration_bounds = array<i64: 2>, scalar_prefetch = 0 : i64, scratch_operands = 1 : i64, tpu.core_type = #tpu.core_type<tc>, window_params = [{transform_indices = @transform_0, window_bounds = array<i64: 1, 4, 128>}, {pipeline_mode = #tpu.pipeline_mode<synchronous>, transform_indices = @transform_1, window_bounds = array<i64: 3, 128, 128>}, {pipeline_mode = #tpu.pipeline_mode<synchronous>, transform_indices = @transform_2, window_bounds = array<i64: 3, 128, 128>}, {pipeline_mode = #tpu.pipeline_mode<synchronous>, transform_indices = @transform_3, window_bounds = array<i64: 3, 128, 128>}, {pipeline_mode = #tpu.pipeline_mode<synchronous>, transform_indices = @transform_4, window_bounds = array<i64: 3, 128, 128>}, {pipeline_mode = #tpu.pipeline_mode<synchronous>, transform_indices = @transform_5, window_bounds = array<i64: 1, 128>}, {pipeline_mode = #tpu.pipeline_mode<synchronous>, transform_indices = @transform_6, window_bounds = array<i64: 1, 128>}, {transform_indices = @transform_7, window_bounds = array<i64: 1, 4, 128>}]} {
    %0 = tpu.iota {dimensions = array<i32: 0>} : vector<4x1xi32>
    %c2_i32 = arith.constant 2 : i32
    %c0_i32 = arith.constant 0 : i32
    %1 = arith.cmpi eq, %c2_i32, %c0_i32 : i32
    %c1_i32 = arith.constant 1 : i32
    %2 = arith.select %1, %c1_i32, %c2_i32 : i32
    %3 = vector.broadcast %2 : i32 to vector<4x1xi32>
    %4 = arith.remsi %0, %3 : vector<4x1xi32>
    %c0_i32_0 = arith.constant 0 : i32
    %5 = vector.broadcast %c0_i32_0 : i32 to vector<4x1xi32>
    %6 = arith.cmpi ne, %4, %5 : vector<4x1xi32>
    %c0_i32_1 = arith.constant 0 : i32
    %7 = vector.broadcast %c0_i32_1 : i32 to vector<4x1xi32>
    %8 = arith.cmpi slt, %4, %7 : vector<4x1xi32>
    %c0_i32_2 = arith.constant 0 : i32
    %9 = arith.cmpi slt, %2, %c0_i32_2 : i32
    %10 = vector.broadcast %9 : i1 to vector<4x1xi1>
    %11 = vector.broadcast %10 : vector<4x1xi1> to vector<4x1xi1>
    %12 = arith.xori %8, %11 : vector<4x1xi1>
    %13 = arith.andi %12, %6 : vector<4x1xi1>
    %14 = vector.broadcast %2 : i32 to vector<4x1xi32>
    %15 = arith.addi %4, %14 : vector<4x1xi32>
    %16 = arith.select %13, %15, %4 : vector<4x1xi1>, vector<4x1xi32>
    %cst = arith.constant 0.000000e+00 : f32
    %17 = vector.broadcast %cst : f32 to vector<2x128xf32>
    %c0 = arith.constant 0 : index
    %c0_3 = arith.constant 0 : index
    %18 = vector.load %arg9[%c0, %c0_3] : memref<8x128xf32, #tpu.memory_space<vmem>>, vector<2x128xf32>
    tpu.vector_store %arg9[%c0, %c0_3], %17 {strides = array<i32>} : memref<8x128xf32, #tpu.memory_space<vmem>>, vector<2x128xf32>,
    %cst_4 = arith.constant 0.000000e+00 : f32
    %19 = vector.broadcast %cst_4 : f32 to vector<2x128xf32>
    %c6 = arith.constant 6 : index
    %c0_5 = arith.constant 0 : index
    %20 = vector.load %arg9[%c6, %c0_5] : memref<8x128xf32, #tpu.memory_space<vmem>>, vector<2x128xf32>
    tpu.vector_store %arg9[%c6, %c0_5], %19 {strides = array<i32>} : memref<8x128xf32, #tpu.memory_space<vmem>>, vector<2x128xf32>,
    %c0_6 = arith.constant 0 : index
    %c0_7 = arith.constant 0 : index
    %c0_8 = arith.constant 0 : index
    %21 = vector.load %arg1[%c0_6, %c0_7, %c0_8] : memref<1x4x128xbf16, #tpu.memory_space<vmem>>, vector<1x4x128xbf16>
    %22 = vector.shape_cast %21 : vector<1x4x128xbf16> to vector<4x128xbf16>
    %23 = arith.extf %22 : vector<4x128xbf16> to vector<4x128xf32>
    %c1 = arith.constant 1 : index
    %c0_9 = arith.constant 0 : index
    %c0_10 = arith.constant 0 : index
    %24 = vector.load %arg2[%c1, %c0_9, %c0_10] : memref<3x128x128xbf16, #tpu.memory_space<vmem>>, vector<1x128x128xbf16>
    %25 = vector.shape_cast %24 : vector<1x128x128xbf16> to vector<128x128xbf16>
    %cst_11 = arith.constant dense<0.000000e+00> : vector<4x128xf32>
    %26 = tpu.matmul %22, %25, %cst_11 {dimension_numbers = #tpu.dot_dimension_numbers<[1], [0], [0], [1], [0, 0, 1, 1], [], []>} : vector<4x128xbf16>, vector<128x128xbf16>, vector<4x128xf32> -> vector<4x128xf32>
    %c2 = arith.constant 2 : index
    %c0_12 = arith.constant 0 : index
    %27 = vector.load %arg9[%c2, %c0_12] : memref<8x128xf32, #tpu.memory_space<vmem>>, vector<4x128xf32>
    tpu.vector_store %arg9[%c2, %c0_12], %23 {strides = array<i32>} : memref<8x128xf32, #tpu.memory_space<vmem>>, vector<4x128xf32>,
    %c0_13 = arith.constant 0 : index
    %c0_14 = arith.constant 0 : index
    %28 = vector.load %arg9[%c0_13, %c0_14] : memref<8x128xf32, #tpu.memory_space<vmem>>, vector<4x128xf32>
    %29 = arith.truncf %28 : vector<4x128xf32> to vector<4x128xbf16>
    %c0_15 = arith.constant 0 : index
    %c0_16 = arith.constant 0 : index
    %c0_17 = arith.constant 0 : index
    %30 = vector.load %arg2[%c0_15, %c0_16, %c0_17] : memref<3x128x128xbf16, #tpu.memory_space<vmem>>, vector<1x128x128xbf16>
    %31 = vector.shape_cast %30 : vector<1x128x128xbf16> to vector<128x128xbf16>
    %cst_18 = arith.constant dense<0.000000e+00> : vector<4x128xf32>
    %32 = tpu.matmul %29, %31, %cst_18 {dimension_numbers = #tpu.dot_dimension_numbers<[1], [0], [0], [1], [0, 0, 1, 1], [], []>} : vector<4x128xbf16>, vector<128x128xbf16>, vector<4x128xf32> -> vector<4x128xf32>
    %33 = arith.addf %26, %32 : vector<4x128xf32>
    %c4 = arith.constant 4 : index
    %c0_19 = arith.constant 0 : index
    %34 = vector.load %arg9[%c4, %c0_19] : memref<8x128xf32, #tpu.memory_space<vmem>>, vector<4x128xf32>
    %35 = arith.truncf %34 : vector<4x128xf32> to vector<4x128xbf16>
    %c2_20 = arith.constant 2 : index
    %c0_21 = arith.constant 0 : index
    %c0_22 = arith.constant 0 : index
    %36 = vector.load %arg2[%c2_20, %c0_21, %c0_22] : memref<3x128x128xbf16, #tpu.memory_space<vmem>>, vector<1x128x128xbf16>
    %37 = vector.shape_cast %36 : vector<1x128x128xbf16> to vector<128x128xbf16>
    %cst_23 = arith.constant dense<0.000000e+00> : vector<4x128xf32>
    %38 = tpu.matmul %35, %37, %cst_23 {dimension_numbers = #tpu.dot_dimension_numbers<[1], [0], [0], [1], [0, 0, 1, 1], [], []>} : vector<4x128xbf16>, vector<128x128xbf16>, vector<4x128xf32> -> vector<4x128xf32>
    %39 = arith.addf %33, %38 : vector<4x128xf32>
    %cst_24 = arith.constant 0.000000e+00 : f32
    %40 = vector.broadcast %cst_24 : f32 to vector<4x128xf32>
    %41 = arith.maximumf %39, %40 : vector<4x128xf32>
    %c1_i32_25 = arith.constant 1 : i32
    %42 = vector.broadcast %c1_i32_25 : i32 to vector<4x1xi32>
    %43 = arith.cmpi sge, %16, %42 : vector<4x1xi32>
    %c1_i32_26 = arith.constant 1 : i32
    %44 = vector.broadcast %c1_i32_26 : i32 to vector<4x1xi32>
    %45 = arith.cmpi slt, %16, %44 : vector<4x1xi32>
    %46 = arith.truncf %41 : vector<4x128xf32> to vector<4x128xbf16>
    %c1_27 = arith.constant 1 : index
    %c0_28 = arith.constant 0 : index
    %c0_29 = arith.constant 0 : index
    %47 = vector.load %arg3[%c1_27, %c0_28, %c0_29] : memref<3x128x128xbf16, #tpu.memory_space<vmem>>, vector<1x128x128xbf16>
    %48 = vector.shape_cast %47 : vector<1x128x128xbf16> to vector<128x128xbf16>
    %cst_30 = arith.constant dense<0.000000e+00> : vector<4x128xf32>
    %49 = tpu.matmul %46, %48, %cst_30 {dimension_numbers = #tpu.dot_dimension_numbers<[1], [0], [0], [1], [0, 0, 1, 1], [], []>} : vector<4x128xbf16>, vector<128x128xbf16>, vector<4x128xf32> -> vector<4x128xf32>
    %c2_31 = arith.constant 2 : index
    %c0_32 = arith.constant 0 : index
    %50 = vector.load %arg9[%c2_31, %c0_32] : memref<8x128xf32, #tpu.memory_space<vmem>>, vector<4x128xf32>
    tpu.vector_store %arg9[%c2_31, %c0_32], %41 {strides = array<i32>} : memref<8x128xf32, #tpu.memory_space<vmem>>, vector<4x128xf32>,
    %c1_33 = arith.constant 1 : index
    %c0_34 = arith.constant 0 : index
    %51 = vector.load %arg9[%c1_33, %c0_34] : memref<8x128xf32, #tpu.memory_space<vmem>>, vector<4x128xf32>
    %cst_35 = arith.constant 0.000000e+00 : f32
    %52 = vector.shape_cast %43 : vector<4x1xi1> to vector<4x1xi1>
    %53 = vector.broadcast %52 : vector<4x1xi1> to vector<4x128xi1>
    %54 = vector.broadcast %cst_35 : f32 to vector<4x128xf32>
    %55 = arith.select %53, %51, %54 : vector<4x128xi1>, vector<4x128xf32>
    %56 = arith.truncf %55 : vector<4x128xf32> to vector<4x128xbf16>
    %c0_36 = arith.constant 0 : index
    %c0_37 = arith.constant 0 : index
    %c0_38 = arith.constant 0 : index
    %57 = vector.load %arg3[%c0_36, %c0_37, %c0_38] : memref<3x128x128xbf16, #tpu.memory_space<vmem>>, vector<1x128x128xbf16>
    %58 = vector.shape_cast %57 : vector<1x128x128xbf16> to vector<128x128xbf16>
    %cst_39 = arith.constant dense<0.000000e+00> : vector<4x128xf32>
    %59 = tpu.matmul %56, %58, %cst_39 {dimension_numbers = #tpu.dot_dimension_numbers<[1], [0], [0], [1], [0, 0, 1, 1], [], []>} : vector<4x128xbf16>, vector<128x128xbf16>, vector<4x128xf32> -> vector<4x128xf32>
    %60 = arith.addf %49, %59 : vector<4x128xf32>
    %c3 = arith.constant 3 : index
    %c0_40 = arith.constant 0 : index
    %61 = vector.load %arg9[%c3, %c0_40] : memref<8x128xf32, #tpu.memory_space<vmem>>, vector<4x128xf32>
    %cst_41 = arith.constant 0.000000e+00 : f32
    %62 = vector.shape_cast %45 : vector<4x1xi1> to vector<4x1xi1>
    %63 = vector.broadcast %62 : vector<4x1xi1> to vector<4x128xi1>
    %64 = vector.broadcast %cst_41 : f32 to vector<4x128xf32>
    %65 = arith.select %63, %61, %64 : vector<4x128xi1>, vector<4x128xf32>
    %66 = arith.truncf %65 : vector<4x128xf32> to vector<4x128xbf16>
    %c2_42 = arith.constant 2 : index
    %c0_43 = arith.constant 0 : index
    %c0_44 = arith.constant 0 : index
    %67 = vector.load %arg3[%c2_42, %c0_43, %c0_44] : memref<3x128x128xbf16, #tpu.memory_space<vmem>>, vector<1x128x128xbf16>
    %68 = vector.shape_cast %67 : vector<1x128x128xbf16> to vector<128x128xbf16>
    %cst_45 = arith.constant dense<0.000000e+00> : vector<4x128xf32>
    %69 = tpu.matmul %66, %68, %cst_45 {dimension_numbers = #tpu.dot_dimension_numbers<[1], [0], [0], [1], [0, 0, 1, 1], [], []>} : vector<4x128xbf16>, vector<128x128xbf16>, vector<4x128xf32> -> vector<4x128xf32>
    %70 = arith.addf %60, %69 : vector<4x128xf32>
    %c0_46 = arith.constant 0 : index
    %c0_47 = arith.constant 0 : index
    %71 = vector.load %arg6[%c0_46, %c0_47] : memref<1x128xf32, #tpu.memory_space<vmem>>, vector<1x128xf32>
    %72 = vector.broadcast %71 : vector<1x128xf32> to vector<4x128xf32>
    %73 = arith.addf %70, %72 : vector<4x128xf32>
    %cst_48 = arith.constant 0.000000e+00 : f32
    %74 = vector.broadcast %cst_48 : f32 to vector<4x128xf32>
    %75 = arith.maximumf %73, %74 : vector<4x128xf32>
    %76 = arith.truncf %75 : vector<4x128xf32> to vector<4x128xbf16>
    %c1_49 = arith.constant 1 : index
    %c0_50 = arith.constant 0 : index
    %c0_51 = arith.constant 0 : index
    %77 = vector.load %arg4[%c1_49, %c0_50, %c0_51] : memref<3x128x128xbf16, #tpu.memory_space<vmem>>, vector<1x128x128xbf16>
    %78 = vector.shape_cast %77 : vector<1x128x128xbf16> to vector<128x128xbf16>
    %cst_52 = arith.constant dense<0.000000e+00> : vector<4x128xf32>
    %79 = tpu.matmul %76, %78, %cst_52 {dimension_numbers = #tpu.dot_dimension_numbers<[1], [0], [0], [1], [0, 0, 1, 1], [], []>} : vector<4x128xbf16>, vector<128x128xbf16>, vector<4x128xf32> -> vector<4x128xf32>
    %cst_53 = arith.constant 0.000000e+00 : f32
    %80 = vector.broadcast %cst_53 : f32 to vector<4x128xf32>
    %81 = arith.maximumf %79, %80 : vector<4x128xf32>
    %82 = arith.truncf %81 : vector<4x128xf32> to vector<4x128xbf16>
    %c1_54 = arith.constant 1 : index
    %c0_55 = arith.constant 0 : index
    %c0_56 = arith.constant 0 : index
    %83 = vector.load %arg5[%c1_54, %c0_55, %c0_56] : memref<3x128x128xbf16, #tpu.memory_space<vmem>>, vector<1x128x128xbf16>
    %84 = vector.shape_cast %83 : vector<1x128x128xbf16> to vector<128x128xbf16>
    %cst_57 = arith.constant dense<0.000000e+00> : vector<4x128xf32>
    %85 = tpu.matmul %82, %84, %cst_57 {dimension_numbers = #tpu.dot_dimension_numbers<[1], [0], [0], [1], [0, 0, 1, 1], [], []>} : vector<4x128xbf16>, vector<128x128xbf16>, vector<4x128xf32> -> vector<4x128xf32>
    %c0_58 = arith.constant 0 : index
    %c0_59 = arith.constant 0 : index
    %86 = vector.load %arg7[%c0_58, %c0_59] : memref<1x128xf32, #tpu.memory_space<vmem>>, vector<1x128xf32>
    %87 = vector.broadcast %86 : vector<1x128xf32> to vector<4x128xf32>
    %88 = arith.addf %85, %87 : vector<4x128xf32>
    %89 = arith.addf %88, %23 : vector<4x128xf32>
    %cst_60 = arith.constant 0.000000e+00 : f32
    %90 = vector.broadcast %cst_60 : f32 to vector<4x128xf32>
    %91 = arith.maximumf %89, %90 : vector<4x128xf32>
    %92 = arith.truncf %91 : vector<4x128xf32> to vector<4x128xbf16>
    %c0_61 = arith.constant 0 : index
    %c0_62 = arith.constant 0 : index
    %c0_63 = arith.constant 0 : index
    %93 = vector.load %arg8[%c0_61, %c0_62, %c0_63] : memref<1x4x128xbf16, #tpu.memory_space<vmem>>, vector<1x4x128xbf16>
    %94 = vector.shape_cast %93 : vector<1x4x128xbf16> to vector<4x128xbf16>
    %95 = vector.shape_cast %92 : vector<4x128xbf16> to vector<1x4x128xbf16>
    tpu.vector_store %arg8[%c0_61, %c0_62, %c0_63], %95 {strides = array<i32>} : memref<1x4x128xbf16, #tpu.memory_space<vmem>>, vector<1x4x128xbf16>,
    return
  }
  func.func @transform_0(%arg0: i32) -> (i32, i32, i32) {
    %c0_i32 = arith.constant 0 : i32
    %c0_i32_0 = arith.constant 0 : i32
    %c0_i32_1 = arith.constant 0 : i32
    return %arg0, %c0_i32, %c0_i32_0 : i32, i32, i32
  }
  func.func @transform_1(%arg0: i32) -> (i32, i32, i32) {
    %c0_i32 = arith.constant 0 : i32
    %c0_i32_0 = arith.constant 0 : i32
    %c0_i32_1 = arith.constant 0 : i32
    %c0_i32_2 = arith.constant 0 : i32
    return %c0_i32, %c0_i32_0, %c0_i32_1 : i32, i32, i32
  }
  func.func @transform_2(%arg0: i32) -> (i32, i32, i32) {
    %c0_i32 = arith.constant 0 : i32
    %c0_i32_0 = arith.constant 0 : i32
    %c0_i32_1 = arith.constant 0 : i32
    %c0_i32_2 = arith.constant 0 : i32
    return %c0_i32, %c0_i32_0, %c0_i32_1 : i32, i32, i32
  }
  func.func @transform_3(%arg0: i32) -> (i32, i32, i32) {
    %c0_i32 = arith.constant 0 : i32
    %c0_i32_0 = arith.constant 0 : i32
    %c0_i32_1 = arith.constant 0 : i32
    %c0_i32_2 = arith.constant 0 : i32
    return %c0_i32, %c0_i32_0, %c0_i32_1 : i32, i32, i32
  }
  func.func @transform_4(%arg0: i32) -> (i32, i32, i32) {
    %c0_i32 = arith.constant 0 : i32
    %c0_i32_0 = arith.constant 0 : i32
    %c0_i32_1 = arith.constant 0 : i32
    %c0_i32_2 = arith.constant 0 : i32
    return %c0_i32, %c0_i32_0, %c0_i32_1 : i32, i32, i32
  }
  func.func @transform_5(%arg0: i32) -> (i32, i32) {
    %c0_i32 = arith.constant 0 : i32
    %c0_i32_0 = arith.constant 0 : i32
    %c0_i32_1 = arith.constant 0 : i32
    return %c0_i32, %c0_i32_0 : i32, i32
  }
  func.func @transform_6(%arg0: i32) -> (i32, i32) {
    %c0_i32 = arith.constant 0 : i32
    %c0_i32_0 = arith.constant 0 : i32
    %c0_i32_1 = arith.constant 0 : i32
    return %c0_i32, %c0_i32_0 : i32, i32
  }
  func.func @transform_7(%arg0: i32) -> (i32, i32, i32) {
    %c0_i32 = arith.constant 0 : i32
    %c0_i32_0 = arith.constant 0 : i32
    %c0_i32_1 = arith.constant 0 : i32
    return %arg0, %c0_i32, %c0_i32_0 : i32, i32, i32
  }
}

module attributes {stable_mosaic.version = 11 : i64} {
  func.func @_up_kernel(%arg0: i32, %arg1: memref<1x4x128xbf16, #tpu.memory_space<vmem>>, %arg2: memref<9x128x64xbf16, #tpu.memory_space<vmem>>, %arg3: memref<1x64xf32, #tpu.memory_space<vmem>>, %arg4: memref<1x4x4x64xbf16, #tpu.memory_space<vmem>>, %arg5: memref<7x128xf32, #tpu.memory_space<vmem>>) attributes {dimension_semantics = [#tpu.dimension_semantics<parallel>], iteration_bounds = array<i64: 2>, scalar_prefetch = 0 : i64, scratch_operands = 1 : i64, tpu.core_type = #tpu.core_type<tc>, window_params = [{transform_indices = @transform_0, window_bounds = array<i64: 1, 4, 128>}, {pipeline_mode = #tpu.pipeline_mode<synchronous>, transform_indices = @transform_1, window_bounds = array<i64: 9, 128, 64>}, {pipeline_mode = #tpu.pipeline_mode<synchronous>, transform_indices = @transform_2, window_bounds = array<i64: 1, 64>}, {transform_indices = @transform_3, window_bounds = array<i64: 1, 4, 4, 64>}]} {
    %0 = tpu.iota {dimensions = array<i32: 0>} : vector<4x1xi32>
    %c2_i32 = arith.constant 2 : i32
    %c0_i32 = arith.constant 0 : i32
    %1 = arith.cmpi eq, %c2_i32, %c0_i32 : i32
    %c1_i32 = arith.constant 1 : i32
    %2 = arith.select %1, %c1_i32, %c2_i32 : i32
    %3 = vector.broadcast %2 : i32 to vector<4x1xi32>
    %4 = arith.remsi %0, %3 : vector<4x1xi32>
    %c0_i32_0 = arith.constant 0 : i32
    %5 = vector.broadcast %c0_i32_0 : i32 to vector<4x1xi32>
    %6 = arith.cmpi ne, %4, %5 : vector<4x1xi32>
    %c0_i32_1 = arith.constant 0 : i32
    %7 = vector.broadcast %c0_i32_1 : i32 to vector<4x1xi32>
    %8 = arith.cmpi slt, %4, %7 : vector<4x1xi32>
    %c0_i32_2 = arith.constant 0 : i32
    %9 = arith.cmpi slt, %2, %c0_i32_2 : i32
    %10 = vector.broadcast %9 : i1 to vector<4x1xi1>
    %11 = vector.broadcast %10 : vector<4x1xi1> to vector<4x1xi1>
    %12 = arith.xori %8, %11 : vector<4x1xi1>
    %13 = arith.andi %12, %6 : vector<4x1xi1>
    %14 = vector.broadcast %2 : i32 to vector<4x1xi32>
    %15 = arith.addi %4, %14 : vector<4x1xi32>
    %16 = arith.select %13, %15, %4 : vector<4x1xi1>, vector<4x1xi32>
    %c1_i32_3 = arith.constant 1 : i32
    %17 = vector.broadcast %c1_i32_3 : i32 to vector<4x1xi32>
    %18 = arith.cmpi slt, %16, %17 : vector<4x1xi32>
    %c0 = arith.constant 0 : index
    %c0_4 = arith.constant 0 : index
    %c0_5 = arith.constant 0 : index
    %19 = vector.load %arg1[%c0, %c0_4, %c0_5] : memref<1x4x128xbf16, #tpu.memory_space<vmem>>, vector<1x4x128xbf16>
    %20 = vector.shape_cast %19 : vector<1x4x128xbf16> to vector<4x128xbf16>
    %21 = arith.extf %20 : vector<4x128xbf16> to vector<4x128xf32>
    %c0_6 = arith.constant 0 : index
    %c0_7 = arith.constant 0 : index
    %22 = vector.load %arg5[%c0_6, %c0_7] : memref<7x128xf32, #tpu.memory_space<vmem>>, vector<4x128xf32>
    tpu.vector_store %arg5[%c0_6, %c0_7], %21 {strides = array<i32>} : memref<7x128xf32, #tpu.memory_space<vmem>>, vector<4x128xf32>,
    %cst = arith.constant 0.000000e+00 : f32
    %23 = vector.broadcast %cst : f32 to vector<3x128xf32>
    %c4 = arith.constant 4 : index
    %c0_8 = arith.constant 0 : index
    %24 = vector.load %arg5[%c4, %c0_8] : memref<7x128xf32, #tpu.memory_space<vmem>>, vector<3x128xf32>
    tpu.vector_store %arg5[%c4, %c0_8], %23 {strides = array<i32>} : memref<7x128xf32, #tpu.memory_space<vmem>>, vector<3x128xf32>,
    %c0_9 = arith.constant 0 : index
    %c0_10 = arith.constant 0 : index
    %25 = vector.load %arg3[%c0_9, %c0_10] : memref<1x64xf32, #tpu.memory_space<vmem>>, vector<1x64xf32>
    %c4_11 = arith.constant 4 : index
    %c0_12 = arith.constant 0 : index
    %c0_13 = arith.constant 0 : index
    %26 = vector.load %arg2[%c4_11, %c0_12, %c0_13] : memref<9x128x64xbf16, #tpu.memory_space<vmem>>, vector<1x128x64xbf16>
    %27 = vector.shape_cast %26 : vector<1x128x64xbf16> to vector<128x64xbf16>
    %cst_14 = arith.constant dense<0.000000e+00> : vector<4x64xf32>
    %28 = tpu.matmul %20, %27, %cst_14 {dimension_numbers = #tpu.dot_dimension_numbers<[1], [0], [0], [1], [0, 0, 1, 1], [], []>} : vector<4x128xbf16>, vector<128x64xbf16>, vector<4x64xf32> -> vector<4x64xf32>
    %29 = vector.broadcast %25 : vector<1x64xf32> to vector<4x64xf32>
    %30 = arith.addf %28, %29 : vector<4x64xf32>
    %cst_15 = arith.constant 0.000000e+00 : f32
    %31 = vector.broadcast %cst_15 : f32 to vector<4x64xf32>
    %32 = arith.maximumf %30, %31 : vector<4x64xf32>
    %33 = arith.truncf %32 : vector<4x64xf32> to vector<4x64xbf16>
    %c0_16 = arith.constant 0 : index
    %c0_17 = arith.constant 0 : index
    %c0_18 = arith.constant 0 : index
    %c0_19 = arith.constant 0 : index
    %34 = vector.load %arg4[%c0_16, %c0_17, %c0_18, %c0_19] : memref<1x4x4x64xbf16, #tpu.memory_space<vmem>>, vector<1x1x4x64xbf16>
    %35 = vector.shape_cast %34 : vector<1x1x4x64xbf16> to vector<4x64xbf16>
    %36 = vector.shape_cast %33 : vector<4x64xbf16> to vector<1x1x4x64xbf16>
    tpu.vector_store %arg4[%c0_16, %c0_17, %c0_18, %c0_19], %36 {strides = array<i32>} : memref<1x4x4x64xbf16, #tpu.memory_space<vmem>>, vector<1x1x4x64xbf16>,
    %c1 = arith.constant 1 : index
    %c0_20 = arith.constant 0 : index
    %37 = vector.load %arg5[%c1, %c0_20] : memref<7x128xf32, #tpu.memory_space<vmem>>, vector<4x128xf32>
    %cst_21 = arith.constant 0.000000e+00 : f32
    %38 = vector.shape_cast %18 : vector<4x1xi1> to vector<4x1xi1>
    %39 = vector.broadcast %38 : vector<4x1xi1> to vector<4x128xi1>
    %40 = vector.broadcast %cst_21 : f32 to vector<4x128xf32>
    %41 = arith.select %39, %37, %40 : vector<4x128xi1>, vector<4x128xf32>
    %42 = arith.truncf %41 : vector<4x128xf32> to vector<4x128xbf16>
    %c3 = arith.constant 3 : index
    %c0_22 = arith.constant 0 : index
    %c0_23 = arith.constant 0 : index
    %43 = vector.load %arg2[%c3, %c0_22, %c0_23] : memref<9x128x64xbf16, #tpu.memory_space<vmem>>, vector<1x128x64xbf16>
    %44 = vector.shape_cast %43 : vector<1x128x64xbf16> to vector<128x64xbf16>
    %cst_24 = arith.constant dense<0.000000e+00> : vector<4x64xf32>
    %45 = tpu.matmul %42, %44, %cst_24 {dimension_numbers = #tpu.dot_dimension_numbers<[1], [0], [0], [1], [0, 0, 1, 1], [], []>} : vector<4x128xbf16>, vector<128x64xbf16>, vector<4x64xf32> -> vector<4x64xf32>
    %c5 = arith.constant 5 : index
    %c0_25 = arith.constant 0 : index
    %c0_26 = arith.constant 0 : index
    %46 = vector.load %arg2[%c5, %c0_25, %c0_26] : memref<9x128x64xbf16, #tpu.memory_space<vmem>>, vector<1x128x64xbf16>
    %47 = vector.shape_cast %46 : vector<1x128x64xbf16> to vector<128x64xbf16>
    %cst_27 = arith.constant dense<0.000000e+00> : vector<4x64xf32>
    %48 = tpu.matmul %20, %47, %cst_27 {dimension_numbers = #tpu.dot_dimension_numbers<[1], [0], [0], [1], [0, 0, 1, 1], [], []>} : vector<4x128xbf16>, vector<128x64xbf16>, vector<4x64xf32> -> vector<4x64xf32>
    %49 = arith.addf %45, %48 : vector<4x64xf32>
    %50 = vector.broadcast %25 : vector<1x64xf32> to vector<4x64xf32>
    %51 = arith.addf %49, %50 : vector<4x64xf32>
    %cst_28 = arith.constant 0.000000e+00 : f32
    %52 = vector.broadcast %cst_28 : f32 to vector<4x64xf32>
    %53 = arith.maximumf %51, %52 : vector<4x64xf32>
    %54 = arith.truncf %53 : vector<4x64xf32> to vector<4x64xbf16>
    %c0_29 = arith.constant 0 : index
    %c1_30 = arith.constant 1 : index
    %c0_31 = arith.constant 0 : index
    %c0_32 = arith.constant 0 : index
    %55 = vector.load %arg4[%c0_29, %c1_30, %c0_31, %c0_32] : memref<1x4x4x64xbf16, #tpu.memory_space<vmem>>, vector<1x1x4x64xbf16>
    %56 = vector.shape_cast %55 : vector<1x1x4x64xbf16> to vector<4x64xbf16>
    %57 = vector.shape_cast %54 : vector<4x64xbf16> to vector<1x1x4x64xbf16>
    tpu.vector_store %arg4[%c0_29, %c1_30, %c0_31, %c0_32], %57 {strides = array<i32>} : memref<1x4x4x64xbf16, #tpu.memory_space<vmem>>, vector<1x1x4x64xbf16>,
    %c2 = arith.constant 2 : index
    %c0_33 = arith.constant 0 : index
    %58 = vector.load %arg5[%c2, %c0_33] : memref<7x128xf32, #tpu.memory_space<vmem>>, vector<4x128xf32>
    %59 = arith.truncf %58 : vector<4x128xf32> to vector<4x128xbf16>
    %c1_34 = arith.constant 1 : index
    %c0_35 = arith.constant 0 : index
    %c0_36 = arith.constant 0 : index
    %60 = vector.load %arg2[%c1_34, %c0_35, %c0_36] : memref<9x128x64xbf16, #tpu.memory_space<vmem>>, vector<1x128x64xbf16>
    %61 = vector.shape_cast %60 : vector<1x128x64xbf16> to vector<128x64xbf16>
    %cst_37 = arith.constant dense<0.000000e+00> : vector<4x64xf32>
    %62 = tpu.matmul %59, %61, %cst_37 {dimension_numbers = #tpu.dot_dimension_numbers<[1], [0], [0], [1], [0, 0, 1, 1], [], []>} : vector<4x128xbf16>, vector<128x64xbf16>, vector<4x64xf32> -> vector<4x64xf32>
    %c7 = arith.constant 7 : index
    %c0_38 = arith.constant 0 : index
    %c0_39 = arith.constant 0 : index
    %63 = vector.load %arg2[%c7, %c0_38, %c0_39] : memref<9x128x64xbf16, #tpu.memory_space<vmem>>, vector<1x128x64xbf16>
    %64 = vector.shape_cast %63 : vector<1x128x64xbf16> to vector<128x64xbf16>
    %cst_40 = arith.constant dense<0.000000e+00> : vector<4x64xf32>
    %65 = tpu.matmul %20, %64, %cst_40 {dimension_numbers = #tpu.dot_dimension_numbers<[1], [0], [0], [1], [0, 0, 1, 1], [], []>} : vector<4x128xbf16>, vector<128x64xbf16>, vector<4x64xf32> -> vector<4x64xf32>
    %66 = arith.addf %62, %65 : vector<4x64xf32>
    %67 = vector.broadcast %25 : vector<1x64xf32> to vector<4x64xf32>
    %68 = arith.addf %66, %67 : vector<4x64xf32>
    %cst_41 = arith.constant 0.000000e+00 : f32
    %69 = vector.broadcast %cst_41 : f32 to vector<4x64xf32>
    %70 = arith.maximumf %68, %69 : vector<4x64xf32>
    %71 = arith.truncf %70 : vector<4x64xf32> to vector<4x64xbf16>
    %c0_42 = arith.constant 0 : index
    %c2_43 = arith.constant 2 : index
    %c0_44 = arith.constant 0 : index
    %c0_45 = arith.constant 0 : index
    %72 = vector.load %arg4[%c0_42, %c2_43, %c0_44, %c0_45] : memref<1x4x4x64xbf16, #tpu.memory_space<vmem>>, vector<1x1x4x64xbf16>
    %73 = vector.shape_cast %72 : vector<1x1x4x64xbf16> to vector<4x64xbf16>
    %74 = vector.shape_cast %71 : vector<4x64xbf16> to vector<1x1x4x64xbf16>
    tpu.vector_store %arg4[%c0_42, %c2_43, %c0_44, %c0_45], %74 {strides = array<i32>} : memref<1x4x4x64xbf16, #tpu.memory_space<vmem>>, vector<1x1x4x64xbf16>,
    %c3_46 = arith.constant 3 : index
    %c0_47 = arith.constant 0 : index
    %75 = vector.load %arg5[%c3_46, %c0_47] : memref<7x128xf32, #tpu.memory_space<vmem>>, vector<4x128xf32>
    %cst_48 = arith.constant 0.000000e+00 : f32
    %76 = vector.shape_cast %18 : vector<4x1xi1> to vector<4x1xi1>
    %77 = vector.broadcast %76 : vector<4x1xi1> to vector<4x128xi1>
    %78 = vector.broadcast %cst_48 : f32 to vector<4x128xf32>
    %79 = arith.select %77, %75, %78 : vector<4x128xi1>, vector<4x128xf32>
    %80 = arith.truncf %79 : vector<4x128xf32> to vector<4x128xbf16>
    %c0_49 = arith.constant 0 : index
    %c0_50 = arith.constant 0 : index
    %c0_51 = arith.constant 0 : index
    %81 = vector.load %arg2[%c0_49, %c0_50, %c0_51] : memref<9x128x64xbf16, #tpu.memory_space<vmem>>, vector<1x128x64xbf16>
    %82 = vector.shape_cast %81 : vector<1x128x64xbf16> to vector<128x64xbf16>
    %cst_52 = arith.constant dense<0.000000e+00> : vector<4x64xf32>
    %83 = tpu.matmul %80, %82, %cst_52 {dimension_numbers = #tpu.dot_dimension_numbers<[1], [0], [0], [1], [0, 0, 1, 1], [], []>} : vector<4x128xbf16>, vector<128x64xbf16>, vector<4x64xf32> -> vector<4x64xf32>
    %c2_53 = arith.constant 2 : index
    %c0_54 = arith.constant 0 : index
    %84 = vector.load %arg5[%c2_53, %c0_54] : memref<7x128xf32, #tpu.memory_space<vmem>>, vector<4x128xf32>
    %85 = arith.truncf %84 : vector<4x128xf32> to vector<4x128xbf16>
    %c2_55 = arith.constant 2 : index
    %c0_56 = arith.constant 0 : index
    %c0_57 = arith.constant 0 : index
    %86 = vector.load %arg2[%c2_55, %c0_56, %c0_57] : memref<9x128x64xbf16, #tpu.memory_space<vmem>>, vector<1x128x64xbf16>
    %87 = vector.shape_cast %86 : vector<1x128x64xbf16> to vector<128x64xbf16>
    %cst_58 = arith.constant dense<0.000000e+00> : vector<4x64xf32>
    %88 = tpu.matmul %85, %87, %cst_58 {dimension_numbers = #tpu.dot_dimension_numbers<[1], [0], [0], [1], [0, 0, 1, 1], [], []>} : vector<4x128xbf16>, vector<128x64xbf16>, vector<4x64xf32> -> vector<4x64xf32>
    %89 = arith.addf %83, %88 : vector<4x64xf32>
    %c1_59 = arith.constant 1 : index
    %c0_60 = arith.constant 0 : index
    %90 = vector.load %arg5[%c1_59, %c0_60] : memref<7x128xf32, #tpu.memory_space<vmem>>, vector<4x128xf32>
    %cst_61 = arith.constant 0.000000e+00 : f32
    %91 = vector.shape_cast %18 : vector<4x1xi1> to vector<4x1xi1>
    %92 = vector.broadcast %91 : vector<4x1xi1> to vector<4x128xi1>
    %93 = vector.broadcast %cst_61 : f32 to vector<4x128xf32>
    %94 = arith.select %92, %90, %93 : vector<4x128xi1>, vector<4x128xf32>
    %95 = arith.truncf %94 : vector<4x128xf32> to vector<4x128xbf16>
    %c6 = arith.constant 6 : index
    %c0_62 = arith.constant 0 : index
    %c0_63 = arith.constant 0 : index
    %96 = vector.load %arg2[%c6, %c0_62, %c0_63] : memref<9x128x64xbf16, #tpu.memory_space<vmem>>, vector<1x128x64xbf16>
    %97 = vector.shape_cast %96 : vector<1x128x64xbf16> to vector<128x64xbf16>
    %cst_64 = arith.constant dense<0.000000e+00> : vector<4x64xf32>
    %98 = tpu.matmul %95, %97, %cst_64 {dimension_numbers = #tpu.dot_dimension_numbers<[1], [0], [0], [1], [0, 0, 1, 1], [], []>} : vector<4x128xbf16>, vector<128x64xbf16>, vector<4x64xf32> -> vector<4x64xf32>
    %99 = arith.addf %89, %98 : vector<4x64xf32>
    %c8 = arith.constant 8 : index
    %c0_65 = arith.constant 0 : index
    %c0_66 = arith.constant 0 : index
    %100 = vector.load %arg2[%c8, %c0_65, %c0_66] : memref<9x128x64xbf16, #tpu.memory_space<vmem>>, vector<1x128x64xbf16>
    %101 = vector.shape_cast %100 : vector<1x128x64xbf16> to vector<128x64xbf16>
    %cst_67 = arith.constant dense<0.000000e+00> : vector<4x64xf32>
    %102 = tpu.matmul %20, %101, %cst_67 {dimension_numbers = #tpu.dot_dimension_numbers<[1], [0], [0], [1], [0, 0, 1, 1], [], []>} : vector<4x128xbf16>, vector<128x64xbf16>, vector<4x64xf32> -> vector<4x64xf32>
    %103 = arith.addf %99, %102 : vector<4x64xf32>
    %104 = vector.broadcast %25 : vector<1x64xf32> to vector<4x64xf32>
    %105 = arith.addf %103, %104 : vector<4x64xf32>
    %cst_68 = arith.constant 0.000000e+00 : f32
    %106 = vector.broadcast %cst_68 : f32 to vector<4x64xf32>
    %107 = arith.maximumf %105, %106 : vector<4x64xf32>
    %108 = arith.truncf %107 : vector<4x64xf32> to vector<4x64xbf16>
    %c0_69 = arith.constant 0 : index
    %c3_70 = arith.constant 3 : index
    %c0_71 = arith.constant 0 : index
    %c0_72 = arith.constant 0 : index
    %109 = vector.load %arg4[%c0_69, %c3_70, %c0_71, %c0_72] : memref<1x4x4x64xbf16, #tpu.memory_space<vmem>>, vector<1x1x4x64xbf16>
    %110 = vector.shape_cast %109 : vector<1x1x4x64xbf16> to vector<4x64xbf16>
    %111 = vector.shape_cast %108 : vector<4x64xbf16> to vector<1x1x4x64xbf16>
    tpu.vector_store %arg4[%c0_69, %c3_70, %c0_71, %c0_72], %111 {strides = array<i32>} : memref<1x4x4x64xbf16, #tpu.memory_space<vmem>>, vector<1x1x4x64xbf16>,
    return
  }
  func.func @transform_0(%arg0: i32) -> (i32, i32, i32) {
    %c0_i32 = arith.constant 0 : i32
    %c0_i32_0 = arith.constant 0 : i32
    %c0_i32_1 = arith.constant 0 : i32
    return %arg0, %c0_i32, %c0_i32_0 : i32, i32, i32
  }
  func.func @transform_1(%arg0: i32) -> (i32, i32, i32) {
    %c0_i32 = arith.constant 0 : i32
    %c0_i32_0 = arith.constant 0 : i32
    %c0_i32_1 = arith.constant 0 : i32
    %c0_i32_2 = arith.constant 0 : i32
    return %c0_i32, %c0_i32_0, %c0_i32_1 : i32, i32, i32
  }
  func.func @transform_2(%arg0: i32) -> (i32, i32) {
    %c0_i32 = arith.constant 0 : i32
    %c0_i32_0 = arith.constant 0 : i32
    %c0_i32_1 = arith.constant 0 : i32
    return %c0_i32, %c0_i32_0 : i32, i32
  }
  func.func @transform_3(%arg0: i32) -> (i32, i32, i32, i32) {
    %c0_i32 = arith.constant 0 : i32
    %c0_i32_0 = arith.constant 0 : i32
    %c0_i32_1 = arith.constant 0 : i32
    %c0_i32_2 = arith.constant 0 : i32
    return %arg0, %c0_i32, %c0_i32_0, %c0_i32_1 : i32, i32, i32, i32
  }
}

</mosaic_0001>

<bundles_post_ra>
// kernel: encoder_forward.20
= control target key start
LH: loop header
LB: loop body
LE: loop exit
PB: predicated region body
PF: predicated region fallthrough
CT: control target
= control target key end

     0   :  { %s1138_s18 = smov 0   ;;  %s1288_s0 = inlined_call_operand.vmem [shape: bf16[2,4,16,16], index: 0, kind: input, shape index: {}]   ;;  %s1289_s1 = inlined_call_operand.vmem [shape: bf16[9,16,48], index: 1, kind: input, shape index: {}]   ;;  %s1290_s2 = inlined_call_operand.vmem [shape: f32[1,48], index: 2, kind: input, shape index: {}]   ;;  %s1291_s3 = inlined_call_operand.vmem [shape: f32[1,16], index: 3, kind: input, shape index: {}]   ;;  %s1292_s4 = inlined_call_operand.vmem [shape: f32[1,16], index: 4, kind: input, shape index: {}]   ;;  %s1293_s5 = inlined_call_operand.vmem [shape: bf16[2,16,64], index: 5, kind: output, shape index: {}]  }
   0x1 LB: > { %s936_s19 = sadd.s32 4294967295, %s1103_s18   ;;  %p940_p0 = scmp.ge.s32.totalorder %s1103_s18, 1  ;;  %s1103_s18 = sphi %s1138_s18, %s15_s18  }
   0x2   : > { %p187_p1 = scmp.lt.s32.totalorder %s1103_s18, 3 }
   0x4   : > { %p188_p2 = pnand %p940_p0, %p187_p1 }
   0x5   : > { %v1087_v0 = vld [vmem:[%s1289_s1 + $0x18] sm:$0xff] (!%p188_p2)   ;;  %v226_v1 = vlaneseq (!%p188_p2)  ;;  %v1105_v2 = vmov (!%p188_p2), 0.0   ;;  %v1088_v3 = vld [vmem:[%s1289_s1 + $0x20] sm:$0xff] (!%p188_p2)   ;;  %vm1106_vm0 = vmmov (!%p188_p2), 0   ;;  %p215_p3 = scmp.lt.s32.totalorder (!%p188_p2), %s936_s19, 1  ;;  %vm255_vm1 = vcmask (!%p188_p2), 126976  }
   0x6   : > { %191 = sbr.rel (%p188_p2) target bundleno = 286 (0x11e), region = 40  ;;  %1022 = vmatprep.subr.bf16.mxu0 (!%p188_p2), %v1105_v2  ;;  %1028 = vmatprep.subr.bf16.mxu1 (!%p188_p2), %v1105_v2  ;;  %256 = vst.msk [vmem:[#allocation2] sm:$0x1f] (!%p188_p2), %vm255_vm1, %v1105_v2  ;;  %vm273_vm2 = vcmask (!%p188_p2), 130048   ;;  %v1091_v12 = vld [vmem:[%s1289_s1 + $0x8] sm:$0xff] (!%p188_p2)   ;;  %v1093_v52 = vld [vmem:[%s1289_s1] sm:$0xff] (!%p188_p2)  }
   0x7   : > { %1023 = vmatpush3.bf16.msra.mxu0 (!%p188_p2), %v1087_v0  ;;  %1024 = vmatprep.mubr.msk.bf16.mxu0 (!%p188_p2), %vm1106_vm0, %v1105_v2  ;;  %v227_v4 = vshrl.u32 (!%p188_p2), %v226_v1, 7  ;;  %v992_v28 = vld [vmem:[%s1291_s3] ss:$0 sm:$0xff] (!%p188_p2)  ;;  %v1090_v40 = vld [vmem:[%s1289_s1 + $0x28] sm:$0xff] (!%p188_p2)   ;;  %s1107_s13 = smov (!%p188_p2), 48   ;;  %v1092_v53 = vld [vmem:[%s1289_s1 + $0x38] sm:$0xff] (!%p188_p2)  }
   0x8   : > { %1029 = vmatpush3.bf16.msra.mxu1 (!%p188_p2), %v1088_v3  ;;  %1030 = vmatprep.mubr.msk.bf16.mxu1 (!%p188_p2), %vm1106_vm0, %v1105_v2  ;;  %v993_v33 = vld [vmem:[%s1292_s4] ss:$0 sm:$0xff] (!%p188_p2)  ;;  %v1094_v59 = vld [vmem:[%s1289_s1 + $0x10] sm:$0xff] (!%p188_p2)   ;;  %vm835_vm5 = vcmask (!%p188_p2), 388096   ;;  %vm878_vm6 = vcmask (!%p188_p2), 519552  }
   0x9   : > { %1034 = vmatprep.subr.bf16.mxu0 (!%p188_p2), %v1105_v2  ;;  %1040 = vmatprep.subr.bf16.mxu1 (!%p188_p2), %v1105_v2  ;;  %v228_v5 = vadd.s32 (!%p188_p2), 8, %v227_v4  ;;  %v233_v20 = vand.u32 (!%p188_p2), 3, %v227_v4  ;;  %v1095_v62 = vld [vmem:[%s1289_s1 + $0x30] sm:$0xff] (!%p188_p2)  }
   0xb   : > { %v240_v21 = vand.u32 (!%p188_p2), 3, %v228_v5  ;;  %vm1201_vm3 = vcmp.ge.s32.totalorder (!%p188_p2), %v233_v20, 1 }
   0xd   : > { %s1299_s19 = smov (!%p215_p3, %s936_s19), 1  ;;  %vm1205_vm4 = vcmp.ge.s32.totalorder %v240_v21, 1 }
   0xe   : > { %s998_s24 = sshll.u32 %s1299_s19, 5  ;;  %s999_s26 = sshll.u32 %s1299_s19, 3 }
   0xf   : > { %s219_s27 = scalar_lea.vmem %s1288_s0, %s998_s24  ;;  %s224_s29 = scalar_lea.vmem %s1293_s5, %s999_s26 }
  0x10   : > { %v1167_v6 = vld [vmem:[%s219_s27 + $0x8] sm:$0xf]  ;;  %v1169_v7 = vld [vmem:[%s219_s27 + $0xc] sm:$0xf]  ;;  %v1171_v8 = vld [vmem:[%s219_s27 + $0x10] sm:$0xf] }
  0x11   : > { %v271_v9 = vunpack.c.l.bf16 %v1167_v6  ;;  %v272_v10 = vunpack.c.l.bf16 %v1169_v7  ;;  %v257_v11 = vld [vmem:[%s219_s27] sm:$0xf]  ;;  %v1178_v13 = vld [vmem:[%s219_s27 + $0x14] sm:$0xf]  ;;  %v258_v14 = vld [vmem:[%s219_s27 + $0x4] sm:$0xf]  ;;  %v453_v26 = vunpack.c.l.bf16 %v1171_v8  ;;  %v962_v49 = vcombine.low %v1167_v6, %v1169_v7 }
  0x12   : > { %v1180_v15 = vld [vmem:[%s219_s27 + $0x18] sm:$0xf]  ;;  %v838_v16 = vmax.bf16 %v1167_v6, %v257_v11  ;;  %v957_v17 = vcombine.low %v257_v11, %v258_v14  ;;  %v839_v18 = vmax.bf16 %v1169_v7, %v258_v14  ;;  %v1186_v19 = vld [vmem:[%s219_s27 + $0x1c] sm:$0xf]  ;;  %v454_v27 = vunpack.c.l.bf16 %v1178_v13 }
  0x13   : > { %274 = vst.msk [vmem:[#allocation2 + $0x5] sm:$0xff] %vm273_vm2, %v271_v9  ;;  %275 = vst.msk [vmem:[#allocation2 + $0xd] sm:$0xff] %vm273_vm2, %v272_v10  ;;  %v840_v22 = vmax.bf16 %v1180_v15, %v1171_v8  ;;  %v841_v23 = vmax.bf16 %v1186_v19, %v1178_v13  ;;  %v575_v45 = vunpack.c.l.bf16 %v1180_v15  ;;  %v576_v46 = vunpack.c.l.bf16 %v1186_v19  ;;  %v1096_v9 = vld [vmem:[%s1289_s1 + $0x40] sm:$0xff]  }
  0x14   : > { %1031 = vmatmul.mubr.msk.bf16.vlgmr.msra.gmra.mrb[0].mxu1 %vm273_vm2, %v957_v17  ;;  %v971_v56 = vcombine.low %v1171_v8, %v1178_v13  ;;  %v986_v10 = vcombine.low %v1180_v15, %v1186_v19 }
  0x15   : > { %1041 = vmatpush3.bf16.msra.mxu1 %v1091_v12  ;;  %1042 = vmatprep.mubr.msk.bf16.mxu1 %vm1106_vm0, %v1105_v2  ;;  %v842_v24 = vmax.bf16 %v840_v22, %v838_v16  ;;  %v843_v25 = vmax.bf16 %v841_v23, %v839_v18 }
  0x16   : > { %1052 = vmatprep.subr.bf16.mxu1 %v1105_v2 }
  0x17   : > { %v844_v31 = vunpack.c.l.bf16 %v842_v24  ;;  %v845_v32 = vunpack.c.l.bf16 %v843_v25 }
  0x19   : > { %v853_v36 = vmul.f32 %v992_v28, %v844_v31  ;;  %v854_v37 = vmul.f32 %v992_v28, %v845_v32 }
  0x1a   : > { %v276_v34 = vld [vmem:[#allocation2 + $0x4] sm:$0xff]  ;;  %v277_v35 = vld [vmem:[#allocation2 + $0xc] sm:$0xff] }
  0x1b   : > { %v282_v38 = vsel %vm1201_vm3, %v276_v34, 0.0  ;;  %v283_v39 = vsel %vm1205_vm4, %v277_v35, 0.0  ;;  %455 = vst.msk [vmem:[#allocation2 + $0x5] sm:$0xff] %vm273_vm2, %v453_v26  ;;  %456 = vst.msk [vmem:[#allocation2 + $0xd] sm:$0xff] %vm273_vm2, %v454_v27  ;;  %v862_v42 = vadd.f32 %v993_v33, %v853_v36  ;;  %v863_v43 = vadd.f32 %v993_v33, %v854_v37 }
  0x1c   : > { %v284_v41 = vpack.c.bf16 %v283_v39, %v282_v38 }
  0x1d   : > { %v864_v44 = vmax.f32 %v862_v42, 0.0  ;;  %v865_v48 = vmax.f32 %v863_v43, 0.0 }
  0x1e   : > { %1025 = vmatmul.mubr.msk.bf16.vlgmr.msra.gmra.mrb[0].mxu0 %vm273_vm2, %v284_v41 }
  0x1f   : > { %1035 = vmatpush3.bf16.msra.mxu0 %v1090_v40  ;;  %1036 = vmatprep.mubr.msk.bf16.mxu0 %vm1106_vm0, %v1105_v2  ;;  %v1002_v47 = vpack.c.bf16 %v864_v44, %v864_v44  ;;  %v1003_v55 = vpack.c.bf16 %v865_v48, %v865_v48 }
  0x20   : > { %1046 = vmatprep.subr.bf16.mxu0 %v1105_v2 }
  0x21   : > { %872 = vrot.lane.b32.xlu0 %v1002_v47, %s1107_s13 }
  0x22   : > { %v457_v50 = vld [vmem:[#allocation2 + $0x1] sm:$0xff]  ;;  %v458_v51 = vld [vmem:[#allocation2 + $0x9] sm:$0xff] }
  0x23   : > { %v459_v54 = vpack.c.bf16 %v458_v51, %v457_v50  ;;  %577 = vst.msk [vmem:[#allocation2 + $0x5] sm:$0xff] %vm273_vm2, %v575_v45  ;;  %578 = vst.msk [vmem:[#allocation2 + $0xd] sm:$0xff] %vm273_vm2, %v576_v46 }
  0x25   : > { %1043 = vmatmul.mubr.msk.bf16.vlgmr.msra.gmra.mrb[4].mxu1 %vm273_vm2, %v459_v54  ;;  %874 = vrot.lane.b32.xlu0 %v1003_v55, %s1107_s13 }
  0x26   : > { %1037 = vmatmul.mubr.msk.bf16.vlgmr.msra.gmra.mrb[4].mxu0 %vm273_vm2, %v962_v49  ;;  %1053 = vmatpush3.bf16.msra.mxu1 %v1093_v52 }
  0x27   : > { %1047 = vmatpush3.bf16.msra.mxu0 %v1092_v53  ;;  %1048 = vmatprep.mubr.msk.bf16.mxu0 %vm1106_vm0, %v1105_v2 }
  0x28   : > { %1058 = vmatprep.subr.bf16.mxu0 %v1105_v2  ;;  %1054 = vmatprep.mubr.msk.bf16.mxu1 %vm1106_vm0, %v1105_v2 }
  0x29   : > { %1064 = vmatprep.subr.bf16.mxu1 %v1105_v2 }
  0x2a   : > { %v579_v57 = vld [vmem:[#allocation2] sm:$0xff]  ;;  %v580_v58 = vld [vmem:[#allocation2 + $0x8] sm:$0xff] }
  0x2b   : > { %v581_v60 = vsel %vm1201_vm3, %v579_v57, 0.0  ;;  %v582_v61 = vsel %vm1205_vm4, %v580_v58, 0.0  ;;  %v696_v0 = vld [vmem:[#allocation2 + $0x4] sm:$0xff]  ;;  %v697_v1 = vld [vmem:[#allocation2 + $0xc] sm:$0xff]  ;;  %v989_v57 = vld [vmem:[%s1290_s2] ss:$0 sm:$0xff] }
  0x2c   : > { %v583_v63 = vpack.c.bf16 %v582_v61, %v581_v60  ;;  %v638_v3 = vld [vmem:[#allocation2 + $0x1] sm:$0xff]  ;;  %v639_v4 = vld [vmem:[#allocation2 + $0x9] sm:$0xff]  ;;  %v698_v5 = vsel %vm1201_vm3, %v696_v0, 0.0  ;;  %v699_v6 = vsel %vm1205_vm4, %v697_v1, 0.0 }
  0x2d   : > { %v640_v7 = vpack.c.bf16 %v639_v4, %v638_v3  ;;  %v700_v8 = vpack.c.bf16 %v699_v6, %v698_v5 }
  0x2e   : > { %1049 = vmatmul.mubr.msk.bf16.vlgmr.msra.gmra.mrb[8].mxu0 %vm273_vm2, %v971_v56  ;;  %1055 = vmatmul.mubr.msk.bf16.vlgmr.msra.gmra.mrb[8].mxu1 %vm273_vm2, %v583_v63 }
  0x2f   : > { %1059 = vmatpush3.bf16.msra.mxu0 %v1094_v59  ;;  %1065 = vmatpush3.bf16.msra.mxu1 %v1095_v62 }
  0x30   : > { %1060 = vmatprep.mubr.msk.bf16.mxu0 %vm1106_vm0, %v1105_v2  ;;  %1070 = vmatprep.subr.bf16.mxu0 %v1105_v2 }
  0x31   : > { %1066 = vmatprep.mubr.msk.bf16.mxu1 %vm1106_vm0, %v1105_v2 }
  0x36   : > { %1061 = vmatmul.mubr.msk.bf16.vlgmr.msra.gmra.mrb[12].mxu0 %vm273_vm2, %v640_v7  ;;  %1067 = vmatmul.mubr.msk.bf16.vlgmr.msra.gmra.mrb[12].mxu1 %vm273_vm2, %v700_v8 }
  0x37   : > { %1071 = vmatpush3.bf16.msra.mxu0 %v1096_v9  ;;  %1072 = vmatprep.mubr.msk.bf16.mxu0 %vm1106_vm0, %v1105_v2 }
  0x3e   : > { %1073 = vmatmul.mubr.msk.bf16.vlgmr.msra.gmra.mrb[16].mxu0 %vm273_vm2, %v986_v10 }
  0x93   : > { %v873_v0 = vpop.permute.xlu0 %872 }
  0x97   : > { %v875_v7 = vpop.permute.xlu0 %874 }
  0xe7   : > { %v386_v11 = vpop.f32.mrb[0].mxu1 }
  0xe8   : > { %v1032_v12 = vpop.f32.mrb[1].mxu1 }
  0xe9   : > { %v389_v13 = vpop.f32.mrb[2].mxu1 }
  0xea   : > { %v1033_v14 = vpop.f32.mrb[3].mxu1 }
  0xf1   : > { %v331_v16 = vpop.f32.mrb[0].mxu0 }
  0xf2   : > { %v387_v17 = vadd.f32 %v386_v11, %v331_v16  ;;  %v1026_v18 = vpop.f32.mrb[1].mxu0 }
  0xf3   : > { %v334_v20 = vpop.f32.mrb[2].mxu0 }
  0xf4   : > { %v390_v21 = vadd.f32 %v389_v13, %v334_v20  ;;  %v1027_v22 = vpop.f32.mrb[3].mxu0 }
  0xf8   : > { %v506_v23 = vpop.f32.mrb[4].mxu1 }
  0xf9   : > { %v444_v24 = vpop.f32.mrb[4].mxu0  ;;  %v1044_v25 = vpop.f32.mrb[5].mxu1 }
  0xfa   : > { %v451_v26 = vadd.f32 %v444_v24, %v387_v17  ;;  %v1038_v2 = vpop.f32.mrb[5].mxu0  ;;  %v509_v27 = vpop.f32.mrb[6].mxu1 }
  0xfb   : > { %v447_v28 = vpop.f32.mrb[6].mxu0  ;;  %v1045_v15 = vpop.f32.mrb[7].mxu1 }
  0xfc   : > { %v452_v19 = vadd.f32 %v447_v28, %v390_v21  ;;  %v513_v29 = vadd.f32 %v506_v23, %v451_v26  ;;  %v1039_v30 = vpop.f32.mrb[7].mxu0 }
  0xfe   : > { %v514_v31 = vadd.f32 %v509_v27, %v452_v19 }
 0x101   : > { %v566_v32 = vpop.f32.mrb[8].mxu0  ;;  %v629_v33 = vpop.f32.mrb[8].mxu1 }
 0x102   : > { %v573_v34 = vadd.f32 %v566_v32, %v513_v29  ;;  %v1050_v35 = vpop.f32.mrb[9].mxu0  ;;  %v1056_v36 = vpop.f32.mrb[9].mxu1 }
 0x103   : > { %v569_v37 = vpop.f32.mrb[10].mxu0  ;;  %v632_v38 = vpop.f32.mrb[10].mxu1 }
 0x104   : > { %v574_v39 = vadd.f32 %v569_v37, %v514_v31  ;;  %v636_v40 = vadd.f32 %v629_v33, %v573_v34  ;;  %v1051_v41 = vpop.f32.mrb[11].mxu0  ;;  %v1057_v42 = vpop.f32.mrb[11].mxu1 }
 0x106   : > { %v637_v43 = vadd.f32 %v632_v38, %v574_v39 }
 0x109   : > { %v687_v44 = vpop.f32.mrb[12].mxu0  ;;  %v747_v45 = vpop.f32.mrb[12].mxu1 }
 0x10a   : > { %v694_v46 = vadd.f32 %v687_v44, %v636_v40  ;;  %v1062_v47 = vpop.f32.mrb[13].mxu0  ;;  %v1068_v48 = vpop.f32.mrb[13].mxu1 }
 0x10b   : > { %v690_v49 = vpop.f32.mrb[14].mxu0  ;;  %v750_v50 = vpop.f32.mrb[14].mxu1 }
 0x10c   : > { %v695_v51 = vadd.f32 %v690_v49, %v637_v43  ;;  %v754_v52 = vadd.f32 %v747_v45, %v694_v46  ;;  %v1063_v53 = vpop.f32.mrb[15].mxu0  ;;  %v1069_v54 = vpop.f32.mrb[15].mxu1 }
 0x10e   : > { %v755_v55 = vadd.f32 %v750_v50, %v695_v51 }
 0x111   : > { %v807_v56 = vpop.f32.mrb[16].mxu0 }
 0x112   : > { %v814_v58 = vadd.f32 %v807_v56, %v754_v52  ;;  %v1074_v59 = vpop.f32.mrb[17].mxu0 }
 0x113   : > { %v810_v60 = vpop.f32.mrb[18].mxu0 }
 0x114   : > { %v823_v61 = vadd.f32 %v989_v57, %v814_v58  ;;  %v815_v62 = vadd.f32 %v810_v60, %v755_v55  ;;  %v1075_v63 = vpop.f32.mrb[19].mxu0 }
 0x116   : > { %v825_v1 = vmax.f32 %v823_v61, 0.0  ;;  %v824_v3 = vadd.f32 %v989_v57, %v815_v62 }
 0x118   : > { %v1000_v4 = vpack.c.bf16 %v825_v1, %v825_v1  ;;  %v826_v5 = vmax.f32 %v824_v3, 0.0 }
 0x11a   : > { %v1001_v6 = vpack.c.bf16 %v826_v5, %v826_v5  ;;  %836 = vst.msk [vmem:[%s224_s29] sm:$0xf] %vm835_vm5, %v1000_v4 }
 0x11b   : > { %879 = vst.msk [vmem:[%s224_s29] sm:$0xf] %vm878_vm6, %v873_v0 }
 0x11c   : > { %837 = vst.msk [vmem:[%s224_s29 + $0x4] sm:$0xf] %vm835_vm5, %v1001_v6 }
 0x11d   : > { %880 = vst.msk [vmem:[%s224_s29 + $0x4] sm:$0xf] %vm878_vm6, %v875_v7 }
 0x11e PF: > { %s15_s18 = sadd.s32 1, %s1103_s18  }
 0x11f   : > { %p12_p4 = scmp.ge.s32.totalorder %s15_s18, 4  }
 0x121   :  { %14 = sbr.rel (!%p12_p4) target bundleno = 1 (0x1), region = 81 }

// kernel: encoder_forward.19
= control target key start
LH: loop header
LB: loop body
LE: loop exit
PB: predicated region body
PF: predicated region fallthrough
CT: control target
= control target key end

     0   :  { %s2042_s18 = smov 0   ;;  %s2591_s0 = inlined_call_operand.vmem [shape: bf16[2,4,64,8], index: 0, kind: input, shape index: {}]   ;;  %s2592_s1 = inlined_call_operand.vmem [shape: bf16[9,8,13], index: 1, kind: input, shape index: {}]   ;;  %s2593_s2 = inlined_call_operand.vmem [shape: f32[1,13], index: 2, kind: input, shape index: {}]   ;;  %s2594_s3 = inlined_call_operand.vmem [shape: f32[1,3], index: 3, kind: input, shape index: {}]   ;;  %s2595_s4 = inlined_call_operand.vmem [shape: f32[1,3], index: 4, kind: input, shape index: {}]   ;;  %s2596_s5 = inlined_call_operand.vmem [shape: bf16[2,64,16], index: 5, kind: output, shape index: {}]  }
   0x1 LB: > { %s1646_s19 = sadd.s32 4294967295, %s2008_s18   ;;  %p1650_p0 = scmp.ge.s32.totalorder %s2008_s18, 1  ;;  %s2008_s18 = sphi %s2042_s18, %s15_s18  }
   0x2   : > { %p187_p1 = scmp.lt.s32.totalorder %s2008_s18, 3 }
   0x4   : > { %p188_p2 = pnand %p1650_p0, %p187_p1 }
   0x6   : > { %191 = sbr.rel (%p188_p2) target bundleno = 331 (0x14b), region = 40 }
   0xd   : > { %v1680_v0 = vld [vmem:[%s2592_s1 + $0xc] sm:$0xf]  ;;  %vm446_vm0 = vcmask 1043456   ;;  %p215_p3 = scmp.lt.s32.totalorder %s1646_s19, 1  ;;  %v226_v1 = vlaneseq  ;;  %vm339_vm1 = vcmask 64512   ;;  %v2010_v3 = vmov 0.0  }
   0xe   : > { %1979 = vmatprep.subr.msk.bf16.mxu1 %vm446_vm0, %v1680_v0  ;;  %v448_v2 = vsel %vm446_vm0, %v1680_v0, 0  ;;  %340 = vst.msk [vmem:[#allocation2] sm:$0xff] %vm339_vm1, %v2010_v3  ;;  %vm341_vm2 = vcmask 57344   ;;  %v2059_v4 = vld [vmem:[%s2592_s1 + $0x1c] sm:$0xf]  ;;  %s2011_s21 = smov 13  }
   0xf   : > { %v2064_v5 = vld [vmem:[%s2592_s1 + $0x10] sm:$0xf]  ;;  %1824 = vmatpush3.bf16.msra.mxu1 %v448_v2  ;;  %s2639_s19 = smov (!%p215_p3, %s1646_s19), 1  ;;  %v227_v6 = vshrl.u32 %v226_v1, 7  ;;  %342 = vst.msk [vmem:[#allocation2 + $0x8] sm:$0x1] %vm341_vm2, %v2010_v3  ;;  %1983 = vmatprep.subr.msk.bf16.mxu0 %vm446_vm0, %v2059_v4 }
  0x10   : > { %v2072_v7 = vsel %vm446_vm0, %v2059_v4, 0  ;;  %v989_v8 = vld [vmem:[%s2592_s1] sm:$0xf]  ;;  %1980 = vmatprep.subr.msk.bf16.mxu1 %vm446_vm0, %v2064_v5  ;;  %s1760_s28 = sshll.u32 %s2639_s19, 7  ;;  %v2143_v39 = vld [vmem:[%s2592_s1 + $0x8] sm:$0xf] }
  0x11   : > { %1864 = vmatpush3.bf16.msra.mxu0 %v2072_v7  ;;  %s2085_s6 = scalar_lea.vmem %s2591_s0, %s1760_s28  ;;  %v228_v9 = vadd.s32 8, %v227_v6  ;;  %v229_v12 = vadd.s32 16, %v227_v6  ;;  %v230_v13 = vadd.s32 24, %v227_v6  ;;  %v239_v20 = vand.u32 7, %v227_v6  ;;  %v2198_v2 = vld [vmem:[%s2592_s1 + $0x14] sm:$0xf] }
  0x12   : > { %1985 = vmatprep.subr.msk.bf16.mxu0 %vm446_vm0, %v989_v8  ;;  %v2088_v10 = vld [vmem:[%s2085_s6 + $0x20] sm:$0xf]  ;;  %v2091_v11 = vld [vmem:[%s2085_s6 + $0x24] sm:$0xf]  ;;  %v2096_v16 = vld [vmem:[%s2085_s6 + $0x28] sm:$0xf] }
  0x13   : > { %v380_v14 = vunpack.c.l.bf16 %v2088_v10  ;;  %v381_v15 = vunpack.c.l.bf16 %v2091_v11  ;;  %v2099_v17 = vld [vmem:[%s2085_s6 + $0x2c] sm:$0xf]  ;;  %v382_v18 = vunpack.c.l.bf16 %v2096_v16  ;;  %v2106_v21 = vld [vmem:[%s2085_s6 + $0x40] sm:$0xf]  ;;  %v2109_v22 = vld [vmem:[%s2085_s6 + $0x44] sm:$0xf] }
  0x14   : > { %v383_v19 = vunpack.c.l.bf16 %v2099_v17  ;;  %v246_v23 = vand.u32 7, %v228_v9  ;;  %v253_v24 = vand.u32 7, %v229_v12  ;;  %v260_v25 = vand.u32 7, %v230_v13  ;;  %v2116_v27 = vld [vmem:[%s2085_s6 + $0x48] sm:$0xf]  ;;  %s1761_s26 = sshll.u32 %s2639_s19, 5 }
  0x15   : > { %388 = vst.msk [vmem:[#allocation2 + $0x9] sm:$0xff] %vm339_vm1, %v380_v14  ;;  %389 = vst.msk [vmem:[#allocation2 + $0x11] sm:$0xff] %vm339_vm1, %v381_v15  ;;  %v1708_v26 = vcombine.low %v2106_v21, %v2109_v22  ;;  %v2119_v28 = vld [vmem:[%s2085_s6 + $0x4c] sm:$0xf]  ;;  %v2122_v29 = vld [vmem:[%s2085_s6 + $0x30] sm:$0xf]  ;;  %v725_v35 = vunpack.c.l.bf16 %v2106_v21  ;;  %v726_v41 = vunpack.c.l.bf16 %v2109_v22  ;;  %v727_v42 = vunpack.c.l.bf16 %v2116_v27  ;;  %s2554_s29 = scalar_lea.vmem %s2596_s5, %s1761_s26 }
  0x16   : > { %390 = vst.msk [vmem:[#allocation2 + $0x19] sm:$0xff] %vm339_vm1, %v382_v18  ;;  %391 = vst.msk [vmem:[#allocation2 + $0x21] sm:$0xff] %vm339_vm1, %v383_v19  ;;  %v1709_v30 = vcombine.low %v2116_v27, %v2119_v28  ;;  %v1003_v31 = vsel %vm446_vm0, %v989_v8, 0  ;;  %v231_v32 = vadd.s32 32, %v227_v6  ;;  %v2129_v33 = vld [vmem:[%s2085_s6 + $0x34] sm:$0xf]  ;;  %v384_v37 = vunpack.c.l.bf16 %v2122_v29 }
  0x17   : > { %1865 = vmatprep.mubr.msk.bf16.mxu0 %vm339_vm1, %v1708_v26  ;;  %vm2131_vm3 = vcmp.ge.s32.totalorder %v239_v20, 1  ;;  %v232_v36 = vadd.s32 40, %v227_v6  ;;  %v2138_v38 = vld [vmem:[%s2085_s6 + $0x38] sm:$0xf]  ;;  %vm2145_vm4 = vcmp.ge.s32.totalorder %v246_v23, 1  ;;  %v385_v43 = vunpack.c.l.bf16 %v2129_v33  ;;  %v2232_v26 = vld [vmem:[#allocation2] sm:$0xff] }
  0x18   : > { %1866 = vmatmul.mubr.msk.bf16.vlgmr.msra.gmra.mrb[0].mxu0 %vm339_vm1, %v1709_v30  ;;  %v2154_v44 = vld [vmem:[%s2085_s6 + $0x3c] sm:$0xf]  ;;  %vm2156_vm5 = vcmp.ge.s32.totalorder %v253_v24, 1  ;;  %vm2160_vm6 = vcmp.ge.s32.totalorder %v260_v25, 1  ;;  %392 = vst.msk [vmem:[#allocation2 + $0x29] sm:$0xff] %vm339_vm1, %v384_v37  ;;  %v233_v47 = vadd.s32 48, %v227_v6  ;;  %v386_v53 = vunpack.c.l.bf16 %v2138_v38 }
  0x19   : > { %1874 = vmatpush3.bf16.msra.mxu0 %v1003_v31  ;;  %v267_v50 = vand.u32 7, %v231_v32  ;;  %v2166_v51 = vld [vmem:[%s2085_s6 + $0x50] sm:$0xf]  ;;  %393 = vst.msk [vmem:[#allocation2 + $0x31] sm:$0xff] %vm339_vm1, %v385_v43  ;;  %v234_v52 = vadd.s32 56, %v227_v6  ;;  %v387_v54 = vunpack.c.l.bf16 %v2154_v44  ;;  %v274_v59 = vand.u32 7, %v232_v36 }
  0x1a   : > { %1986 = vmatprep.subr.msk.bf16.mxu0 %vm446_vm0, %v2143_v39  ;;  %v2183_v63 = vld [vmem:[%s2085_s6 + $0x4] sm:$0xf]  ;;  %v2186_v0 = vld [vmem:[%s2085_s6 + $0x60] sm:$0xf]  ;;  %394 = vst.msk [vmem:[#allocation2 + $0x39] sm:$0xff] %vm339_vm1, %v386_v53  ;;  %v548_v6 = vsel %vm446_vm0, %v2064_v5, 0  ;;  %v728_v9 = vunpack.c.l.bf16 %v2119_v28  ;;  %v729_v15 = vunpack.c.l.bf16 %v2166_v51 }
  0x1b   : > { %v2189_v1 = vld [vmem:[%s2085_s6 + $0x64] sm:$0xf]  ;;  %395 = vst.msk [vmem:[#allocation2 + $0x41] sm:$0xff] %vm339_vm1, %v387_v54  ;;  %v2203_v8 = vld [vmem:[%s2085_s6 + $0x68] sm:$0xf]  ;;  %v281_v12 = vand.u32 7, %v233_v47  ;;  %v953_v20 = vunpack.c.l.bf16 %v2186_v0  ;;  %v1465_v23 = vmax.bf16 %v2091_v11, %v2183_v63 }
  0x1c   : > { %v396_v48 = vld [vmem:[#allocation2 + $0x8] sm:$0xff]  ;;  %v397_v49 = vld [vmem:[#allocation2 + $0x10] sm:$0xff]  ;;  %2613 = vst [vmem:[#allocation3_spill] sm:$0xff] %v2203_v8  ;;  %vm2210_vm7 = vcmp.ge.s32.totalorder %v267_v50, 1  ;;  %v288_v18 = vand.u32 7, %v234_v52  ;;  %vm2225_vm8 = vcmp.ge.s32.totalorder %v274_v59, 1  ;;  %v954_v30 = vunpack.c.l.bf16 %v2189_v1 }
  0x1d   : > { %v420_v55 = vsel %vm2131_vm3, %v396_v48, 0.0  ;;  %v421_v56 = vsel %vm2145_vm4, %v397_v49, 0.0  ;;  %v398_v57 = vld [vmem:[#allocation2 + $0x18] sm:$0xff]  ;;  %v399_v58 = vld [vmem:[#allocation2 + $0x20] sm:$0xff]  ;;  %733 = vst.msk [vmem:[#allocation2 + $0x9] sm:$0xff] %vm339_vm1, %v725_v35  ;;  %v1473_v31 = vmax.bf16 %v2189_v1, %v2109_v22  ;;  %v955_v32 = vunpack.c.l.bf16 %v2203_v8 }
  0x1e   : > { %v428_v60 = vpack.c.bf16 %v421_v56, %v420_v55  ;;  %v422_v61 = vsel %vm2156_vm5, %v398_v57, 0.0  ;;  %v423_v62 = vsel %vm2160_vm6, %v399_v58, 0.0  ;;  %734 = vst.msk [vmem:[#allocation2 + $0x11] sm:$0xff] %vm339_vm1, %v726_v41  ;;  %735 = vst.msk [vmem:[#allocation2 + $0x19] sm:$0xff] %vm339_vm1, %v727_v42  ;;  %v2207_v13 = vld [vmem:[%s2085_s6 + $0x54] sm:$0xf]  ;;  %v1472_v57 = vmax.bf16 %v2186_v0, %v2106_v21 }
  0x1f   : > { %v429_v3 = vpack.c.bf16 %v423_v62, %v422_v61  ;;  %v2216_v19 = vld [vmem:[%s2085_s6 + $0x58] sm:$0xf]  ;;  %v2219_v5 = vld [vmem:[%s2085_s6 + $0x5c] sm:$0xf]  ;;  %v2239_v35 = vld [vmem:[%s2085_s6 + $0x6c] sm:$0xf]  ;;  %v730_v37 = vunpack.c.l.bf16 %v2207_v13  ;;  %v2278_v61 = vmax.bf16 %v1473_v31, %v1465_v23 }
  0x20   : > { %1825 = vmatprep.mubr.msk.bf16.mxu1 %vm339_vm1, %v428_v60  ;;  %2616 = vst [vmem:[#allocation4_spill] sm:$0xff] %v2216_v19  ;;  %2617 = vst [vmem:[#allocation5_spill] sm:$0xff] %v2219_v5  ;;  %v2230_v25 = vld [vmem:[%s2085_s6 + $0x7c] sm:$0xf]  ;;  %v400_v36 = vld [vmem:[#allocation2 + $0x28] sm:$0xff]  ;;  %vm2245_vm9 = vcmp.ge.s32.totalorder %v281_v12, 1  ;;  %v731_v22 = vunpack.c.l.bf16 %v2216_v19  ;;  %v732_v47 = vunpack.c.l.bf16 %v2219_v5  ;;  %v956_v62 = vunpack.c.l.bf16 %v2239_v35 }
  0x21   : > { %1826 = vmatmul.mubr.msk.bf16.vlgmr.msra.gmra.mrb[0].mxu1 %vm339_vm1, %v429_v3  ;;  %2620 = vst [vmem:[#allocation6_spill] sm:$0xff] %v2230_v25  ;;  %2621 = vst [vmem:[#allocation7_spill] sm:$0xff] %v2239_v35  ;;  %v401_v41 = vld [vmem:[#allocation2 + $0x30] sm:$0xff]  ;;  %v424_v42 = vsel %vm2210_vm7, %v400_v36, 0.0  ;;  %v343_v48 = vld [vmem:[%s2085_s6] sm:$0xf]  ;;  %v960_v54 = vunpack.c.l.bf16 %v2230_v25 }
  0x22   : > { %1834 = vmatpush3.bf16.msra.mxu1 %v548_v6  ;;  %736 = vst.msk [vmem:[#allocation2 + $0x21] sm:$0xff] %vm339_vm1, %v728_v9  ;;  %v2257_v50 = vld [vmem:[%s2085_s6 + $0x70] sm:$0xf]  ;;  %v425_v52 = vsel %vm2225_vm8, %v401_v41, 0.0  ;;  %737 = vst.msk [vmem:[#allocation2 + $0x29] sm:$0xff] %vm339_vm1, %v729_v15  ;;  %vm2262_vm10 = vcmp.ge.s32.totalorder %v288_v18, 1  ;;  %v1685_v21 = vcombine.low %v343_v48, %v2183_v63  ;;  %v1474_v63 = vmax.bf16 %v2203_v8, %v2116_v27 }
  0x23   : > { %1981 = vmatprep.subr.msk.bf16.mxu1 %vm446_vm0, %v2198_v2  ;;  %2624 = vst [vmem:[#allocation8_spill] sm:$0xff] %v2257_v50  ;;  %v430_v59 = vpack.c.bf16 %v425_v52, %v424_v42  ;;  %v402_v60 = vld [vmem:[#allocation2 + $0x38] sm:$0xff]  ;;  %v403_v3 = vld [vmem:[#allocation2 + $0x40] sm:$0xff]  ;;  %v2287_v9 = vld [vmem:[%s2085_s6 + $0x8] sm:$0xf]  ;;  %v1464_v23 = vmax.bf16 %v2088_v10, %v343_v48  ;;  %v1475_v41 = vmax.bf16 %v2239_v35, %v2119_v28  ;;  %vm1455_vm11 = vcmask 101376  }
  0x24   : > { %v2254_v49 = vld [vmem:[#allocation2 + $0x9] sm:$0xff]  ;;  %v426_v6 = vsel %vm2245_vm9, %v402_v60, 0.0  ;;  %738 = vst.msk [vmem:[#allocation2 + $0x31] sm:$0xff] %vm339_vm1, %v730_v37  ;;  %v2291_v12 = vld [vmem:[%s2085_s6 + $0x74] sm:$0xf]  ;;  %v427_v15 = vsel %vm2262_vm10, %v403_v3, 0.0  ;;  %v1489_v3 = vunpack.c.l.bf16 %v2278_v61 }
  0x25   : > { %v2270_v56 = vld [vmem:[#allocation2 + $0x11] sm:$0xff]  ;;  %961 = vst.msk [vmem:[#allocation2 + $0x9] sm:$0xff] %vm339_vm1, %v953_v20  ;;  %v2275_v58 = vld [vmem:[#allocation2 + $0x19] sm:$0xff]  ;;  %1829 = vmatprep.mubr.msk.bf16.mxu1 %vm339_vm1, %v430_v59  ;;  %2627 = vst [vmem:[#allocation9_spill] sm:$0xff] %v2291_v12  ;;  %v1466_v20 = vmax.bf16 %v2096_v16, %v2287_v9  ;;  %v1477_v48 = vmax.bf16 %v2291_v12, %v2207_v13  ;;  %vm1582_vm12 = vcmask 126056  }
  0x26   : > { %962 = vst.msk [vmem:[#allocation2 + $0x11] sm:$0xff] %vm339_vm1, %v954_v30  ;;  %963 = vst.msk [vmem:[#allocation2 + $0x19] sm:$0xff] %vm339_vm1, %v955_v32  ;;  %v2298_v18 = vld [vmem:[%s2085_s6 + $0xc] sm:$0xf]  ;;  %v957_v30 = vunpack.c.l.bf16 %v2257_v50  ;;  %v2307_v31 = vld [vmem:[%s2085_s6 + $0x78] sm:$0xf]  ;;  %v431_v32 = vpack.c.bf16 %v427_v15, %v426_v6 }
  0x27   : > { %739 = vst.msk [vmem:[#allocation2 + $0x39] sm:$0xff] %vm339_vm1, %v731_v22  ;;  %740 = vst.msk [vmem:[#allocation2 + $0x41] sm:$0xff] %vm339_vm1, %v732_v47  ;;  %v2311_v36 = vld [vmem:[%s2085_s6 + $0x14] sm:$0xf]  ;;  %v1467_v37 = vmax.bf16 %v2099_v17, %v2298_v18  ;;  %v2318_v42 = vld [vmem:[%s2085_s6 + $0x10] sm:$0xf]  ;;  %v1482_v22 = vmax.bf16 %v1474_v63, %v1466_v20  ;;  %v1480_v47 = vmax.bf16 %v1472_v57, %v1464_v23  ;;  %v959_v15 = vunpack.c.l.bf16 %v2307_v31 }
  0x28   : > { %2628 = vst [vmem:[#allocation10_spill] sm:$0xff] %v2307_v31  ;;  %968 = vst.msk [vmem:[#allocation2 + $0x41] sm:$0xff] %vm339_vm1, %v960_v54  ;;  %v1469_v27 = vmax.bf16 %v2129_v33, %v2311_v36  ;;  %v958_v54 = vunpack.c.l.bf16 %v2291_v12  ;;  %v1468_v28 = vmax.bf16 %v2122_v29, %v2318_v42  ;;  %v2333_v59 = vld [vmem:[%s2594_s3] ss:$0 sm:$0xff]  ;;  %v1476_v57 = vmax.bf16 %v2257_v50, %v2166_v51  ;;  %v2346_v63 = vld [vmem:[%s2085_s6 + $0x1c] sm:$0xf] }
  0x29   : > { %v2324_v52 = vld [vmem:[#allocation2 + $0x21] sm:$0xff]  ;;  %1830 = vmatmul.mubr.msk.bf16.gmra.mrb[4].mxu1 %vm339_vm1, %v431_v32  ;;  %v1483_v60 = vmax.bf16 %v1475_v41, %v1467_v37  ;;  %v2338_v6 = vld [vmem:[#allocation2 + $0x29] sm:$0xff]  ;;  %v1105_v20 = vsel %vm446_vm0, %v2143_v39, 0  ;;  %v1490_v23 = vunpack.c.l.bf16 %v1482_v22  ;;  %v1471_v61 = vmax.bf16 %v2154_v44, %v2346_v63 }
  0x2a   : > { %964 = vst.msk [vmem:[#allocation2 + $0x21] sm:$0xff] %vm339_vm1, %v956_v62  ;;  %1835 = vmatprep.mubr.msk.bf16.mxu1 %vm339_vm1, %v1685_v21  ;;  %965 = vst.msk [vmem:[#allocation2 + $0x29] sm:$0xff] %vm339_vm1, %v957_v30  ;;  %v2356_v62 = vld [vmem:[%s2595_s4] ss:$0 sm:$0xff]  ;;  %v1488_v37 = vunpack.c.l.bf16 %v1480_v47  ;;  %v1479_v39 = vmax.bf16 %v2230_v25, %v2219_v5  ;;  %v1686_v22 = vcombine.low %v2287_v9, %v2298_v18  ;;  %v2629_v25 = vsel %vm2131_vm3, %v2232_v26, 0.0  ;;  %v2630_v43 = vld [vmem:[#allocation7_spill] sm:$0xff] }
  0x2b   : > { %v1491_v21 = vunpack.c.l.bf16 %v1483_v60  ;;  %v2360_v41 = vld [vmem:[#allocation2 + $0x31] sm:$0xff]  ;;  %v1505_v47 = vmul.f32 %v2333_v59, %v1490_v23  ;;  %v1485_v60 = vmax.bf16 %v1477_v48, %v1469_v27  ;;  %v1484_v8 = vmax.bf16 %v1476_v57, %v1468_v28 }
  0x2c   : > { %v2349_v32 = vld [vmem:[#allocation2 + $0x8] sm:$0xff]  ;;  %966 = vst.msk [vmem:[#allocation2 + $0x31] sm:$0xff] %vm339_vm1, %v958_v54  ;;  %v650_v48 = vsel %vm446_vm0, %v2198_v2, 0  ;;  %v1687_v54 = vcombine.low %v2318_v42, %v2311_v36  ;;  %v349_v26 = vld [vmem:[%s2085_s6 + $0x18] sm:$0xf]  ;;  %v1487_v57 = vmax.bf16 %v1479_v39, %v1471_v61  ;;  %v1478_v42 = vmax.bf16 %v2307_v31, %v2216_v19  ;;  %v2631_v53 = vld [vmem:[#allocation3_spill] sm:$0xff] }
  0x2d   : > { %v978_v30 = vsel %vm2145_vm4, %v2349_v32, 0.0  ;;  %v2367_v55 = vld [vmem:[#allocation2 + $0x10] sm:$0xff]  ;;  %v2369_v50 = vld [vmem:[#allocation2 + $0x18] sm:$0xff]  ;;  %v1520_v23 = vadd.f32 %v2356_v62, %v1505_v47  ;;  %v1506_v28 = vmul.f32 %v2333_v59, %v1491_v21  ;;  %v1493_v36 = vunpack.c.l.bf16 %v1485_v60 }
  0x2e   : > { %v2372_v12 = vld [vmem:[#allocation2 + $0x39] sm:$0xff]  ;;  %v985_v5 = vpack.c.bf16 %v978_v30, %v2629_v25  ;;  %v979_v9 = vsel %vm2156_vm5, %v2367_v55, 0.0  ;;  %v980_v18 = vsel %vm2160_vm6, %v2369_v50, 0.0  ;;  %v1504_v25 = vmul.f32 %v2333_v59, %v1489_v3 }
  0x2f   : > { %967 = vst.msk [vmem:[#allocation2 + $0x39] sm:$0xff] %vm339_vm1, %v959_v15  ;;  %v986_v27 = vpack.c.bf16 %v980_v18, %v979_v9  ;;  %v1503_v30 = vmul.f32 %v2333_v59, %v1488_v37  ;;  %v1470_v15 = vmax.bf16 %v2138_v38, %v349_v26  ;;  %v2401_v2 = vld [vmem:[%s2592_s1 + $0x18] sm:$0xf]  ;;  %v1528_v61 = vmax.f32 %v1520_v23, 0.0  ;;  %v2426_v18 = vld [vmem:[#allocation2 + $0x1] sm:$0xff] }
  0x30   : > { %1875 = vmatprep.mubr.msk.bf16.mxu0 %vm339_vm1, %v985_v5  ;;  %v2406_v5 = vld [vmem:[%s2592_s1 + $0x4] sm:$0xf]  ;;  %v1521_v21 = vadd.f32 %v2356_v62, %v1506_v28  ;;  %v1492_v39 = vunpack.c.l.bf16 %v1484_v8  ;;  %v1688_v9 = vcombine.low %v349_v26, %v2346_v63  ;;  %v1079_v8 = vld [vmem:[#allocation2 + $0x9] sm:$0xff]  ;;  %v749_v34 = vpack.c.bf16 %v2254_v49, %v2426_v18 }
  0x31   : > { %1876 = vmatmul.mubr.msk.bf16.vlgmr.msra.gmra.mrb[0].mxu0 %vm339_vm1, %v986_v27  ;;  %1836 = vmatmul.mubr.msk.bf16.vlgmr.msra.gmra.mrb[0].mxu1 %vm339_vm1, %v1686_v22  ;;  %v2411_v3 = vld [vmem:[#allocation2 + $0x20] sm:$0xff]  ;;  %v1518_v37 = vadd.f32 %v2356_v62, %v1503_v30  ;;  %v2416_v47 = vld [vmem:[#allocation2 + $0x28] sm:$0xff]  ;;  %v1508_v22 = vmul.f32 %v2333_v59, %v1493_v36  ;;  %v1519_v27 = vadd.f32 %v2356_v62, %v1504_v25 }
  0x32   : > { %1884 = vmatpush3.bf16.msra.mxu0 %v1105_v20  ;;  %1844 = vmatpush3.bf16.msra.mxu1 %v650_v48  ;;  %v981_v60 = vsel %vm2210_vm7, %v2411_v3, 0.0  ;;  %v982_v20 = vsel %vm2225_vm8, %v2416_v47, 0.0  ;;  %v1495_v48 = vunpack.c.l.bf16 %v1487_v57  ;;  %v1772_v30 = vpack.c.bf16 %v1528_v61, %v1528_v61 }
  0x33   : > { %1839 = vmatprep.mubr.msk.bf16.mxu1 %vm339_vm1, %v1687_v54  ;;  %1987 = vmatprep.subr.msk.bf16.mxu0 %vm446_vm0, %v2401_v2  ;;  %v987_v54 = vpack.c.bf16 %v982_v20, %v981_v60  ;;  %v2433_v23 = vld [vmem:[#allocation2 + $0x30] sm:$0xff]  ;;  %v1526_v28 = vmax.f32 %v1518_v37, 0.0  ;;  %v1529_v36 = vmax.f32 %v1521_v21, 0.0  ;;  %v1523_v26 = vadd.f32 %v2356_v62, %v1508_v22 }
  0x34   : > { %1982 = vmatprep.subr.msk.bf16.mxu1 %vm446_vm0, %v2406_v5  ;;  %v983_v63 = vsel %vm2245_vm9, %v2433_v23, 0.0  ;;  %v1507_v19 = vmul.f32 %v2333_v59, %v1492_v39  ;;  %v1486_v35 = vmax.bf16 %v1478_v42, %v1470_v15  ;;  %v1694_v57 = vcombine.low %v2088_v10, %v2091_v11  ;;  %1562 = vrot.lane.b32.xlu1 %v1772_v30, %s2011_s21  ;;  %v1080_v10 = vld [vmem:[#allocation2 + $0x11] sm:$0xff]  ;;  %v1081_v11 = vld [vmem:[#allocation2 + $0x19] sm:$0xff]  ;;  %v1083_v30 = vld [vmem:[#allocation2 + $0x29] sm:$0xff] }
  0x35   : > { %1879 = vmatprep.mubr.msk.bf16.mxu0 %vm339_vm1, %v987_v54  ;;  %v1086_v61 = vpack.c.bf16 %v1079_v8, %v2426_v18  ;;  %v1770_v21 = vpack.c.bf16 %v1526_v28, %v1526_v28  ;;  %v1773_v60 = vpack.c.bf16 %v1529_v36, %v1529_v36  ;;  %v1527_v22 = vmax.f32 %v1519_v27, 0.0  ;;  %v1082_v54 = vld [vmem:[#allocation2 + $0x21] sm:$0xff] }
  0x36   : > { %v2435_v31 = vld [vmem:[#allocation2 + $0x38] sm:$0xff]  ;;  %v1531_v39 = vmax.f32 %v1523_v26, 0.0  ;;  %v1510_v15 = vmul.f32 %v2333_v59, %v1495_v48  ;;  %v1522_v42 = vadd.f32 %v2356_v62, %v1507_v19  ;;  %v1494_v20 = vunpack.c.l.bf16 %v1486_v35 }
  0x37   : > { %v984_v25 = vsel %vm2262_vm10, %v2435_v31, 0.0  ;;  %1558 = vrot.lane.b32.xlu0 %v1770_v21, %s2011_s21  ;;  %v1771_v27 = vpack.c.bf16 %v1527_v22, %v1527_v22  ;;  %v1695_v19 = vcombine.low %v2096_v16, %v2099_v17  ;;  %v1087_v35 = vpack.c.bf16 %v1081_v11, %v1080_v10  ;;  %v1730_v16 = vld [vmem:[%s2592_s1 + $0x20] sm:$0xf] }
  0x38   : > { %v988_v37 = vpack.c.bf16 %v984_v25, %v983_v63  ;;  %v1525_v8 = vadd.f32 %v2356_v62, %v1510_v15  ;;  %1564 = vrot.lane.b32.xlu1 %v1773_v60, %s2011_s21  ;;  %v1775_v48 = vpack.c.bf16 %v1531_v39, %v1531_v39  ;;  %v1530_v28 = vmax.f32 %v1522_v42, 0.0  ;;  %v1739_v11 = vld [vmem:[%s2593_s2] ss:$0 sm:$0xff] }
  0x39   : > { %1840 = vmatmul.mubr.msk.bf16.gmra.mrb[4].mxu1 %vm339_vm1, %v1688_v9  ;;  %v1509_v9 = vmul.f32 %v2333_v59, %v1494_v20  ;;  %v1696_v63 = vcombine.low %v2122_v29, %v2129_v33  ;;  %v1215_v26 = vsel %vm446_vm0, %v2401_v2, 0  ;;  %v768_v25 = vsel %vm446_vm0, %v2406_v5, 0  ;;  %v1084_v33 = vld [vmem:[#allocation2 + $0x31] sm:$0xff]  ;;  %v1085_v2 = vld [vmem:[#allocation2 + $0x39] sm:$0xff] }
  0x3a   : > { %1880 = vmatmul.mubr.msk.bf16.gmra.mrb[4].mxu0 %vm339_vm1, %v988_v37  ;;  %1845 = vmatprep.mubr.msk.bf16.mxu1 %vm339_vm1, %v1694_v57  ;;  %v1533_v36 = vmax.f32 %v1525_v8, 0.0  ;;  %v1088_v57 = vpack.c.bf16 %v1083_v30, %v1082_v54  ;;  %v1774_v17 = vpack.c.bf16 %v1530_v28, %v1530_v28  ;;  %v1189_v5 = vsel %vm2145_vm4, %v2367_v55, 0.0 }
  0x3b   : > { %1885 = vmatprep.mubr.msk.bf16.mxu0 %vm339_vm1, %v1086_v61  ;;  %1560 = vrot.lane.b32.xlu0 %v1771_v27, %s2011_s21  ;;  %v1524_v59 = vadd.f32 %v2356_v62, %v1509_v9  ;;  %v1188_v62 = vsel %vm2131_vm3, %v2349_v32, 0.0  ;;  %v1697_v37 = vcombine.low %v2138_v38, %v2154_v44  ;;  %v1089_v21 = vpack.c.bf16 %v1085_v2, %v1084_v33 }
  0x3c   : > { %1568 = vrot.lane.b32.xlu1 %v1775_v48, %s2011_s21  ;;  %v1777_v29 = vpack.c.bf16 %v1533_v36, %v1533_v36  ;;  %v1196_v32 = vpack.c.bf16 %v1189_v5, %v1188_v62  ;;  %v1191_v38 = vsel %vm2160_vm6, %v2411_v3, 0.0  ;;  %v1192_v44 = vsel %vm2210_vm7, %v2416_v47, 0.0  ;;  %v1187_v3 = vld [vmem:[#allocation2 + $0x40] sm:$0xff] }
  0x3d   : > { %v1532_v61 = vmax.f32 %v1524_v59, 0.0  ;;  %v1193_v49 = vsel %vm2225_vm8, %v2433_v23, 0.0  ;;  %v750_v55 = vpack.c.bf16 %v2275_v58, %v2270_v56  ;;  %v1325_v45 = vsel %vm446_vm0, %v1730_v16, 0 }
  0x3e   : > { %v751_v46 = vpack.c.bf16 %v2338_v6, %v2324_v52  ;;  %v1194_v14 = vsel %vm2245_vm9, %v2435_v31, 0.0  ;;  %v1195_v24 = vsel %vm2262_vm10, %v1187_v3, 0.0  ;;  %v752_v56 = vpack.c.bf16 %v2372_v12, %v2360_v41  ;;  %v2632_v6 = vld [vmem:[#allocation9_spill] sm:$0xff]  ;;  %v2633_v12 = vld [vmem:[#allocation8_spill] sm:$0xff] }
  0x3f   : > { %1566 = vrot.lane.b32.xlu0 %v1774_v17, %s2011_s21  ;;  %v1776_v40 = vpack.c.bf16 %v1532_v61, %v1532_v61  ;;  %v1199_v58 = vpack.c.bf16 %v1195_v24, %v1194_v14  ;;  %v1731_v52 = vcombine.low %v2186_v0, %v2189_v1  ;;  %v1732_v31 = vcombine.low %v2631_v53, %v2630_v43  ;;  %v2634_v0 = vld [vmem:[#allocation5_spill] sm:$0xff]  ;;  %v2635_v1 = vld [vmem:[#allocation4_spill] sm:$0xff] }
  0x40   : > { %1572 = vrot.lane.b32.xlu1 %v1777_v29, %s2011_s21  ;;  %v1733_v41 = vcombine.low %v2633_v12, %v2632_v6  ;;  %v1711_v47 = vcombine.low %v2635_v1, %v2634_v0 }
  0x41   : > { %1846 = vmatmul.mubr.msk.bf16.vlgmr.msra.gmra.mrb[0].mxu1 %vm339_vm1, %v1695_v19 }
  0x42   : > { %1886 = vmatmul.mubr.msk.bf16.vlgmr.msra.gmra.mrb[0].mxu0 %vm339_vm1, %v1087_v35  ;;  %1854 = vmatpush3.bf16.msra.mxu1 %v768_v25 }
  0x43   : > { %1894 = vmatpush3.bf16.msra.mxu0 %v1215_v26  ;;  %1849 = vmatprep.mubr.msk.bf16.mxu1 %vm339_vm1, %v1696_v63 }
  0x44   : > { %1889 = vmatprep.mubr.msk.bf16.mxu0 %vm339_vm1, %v1088_v57  ;;  %1988 = vmatprep.subr.msk.bf16.mxu0 %vm446_vm0, %v1730_v16 }
  0x45   : > { %1984 = vmatprep.subr.msk.bf16.mxu1 %vm446_vm0, %v2059_v4  ;;  %v1190_v4 = vsel %vm2156_vm5, %v2369_v50, 0.0  ;;  %1570 = vrot.lane.b32.xlu0 %v1776_v40, %s2011_s21  ;;  %v1198_v50 = vpack.c.bf16 %v1193_v49, %v1192_v44 }
  0x46   : > { %v1197_v18 = vpack.c.bf16 %v1191_v38, %v1190_v4 }
  0x49   : > { %1850 = vmatmul.mubr.msk.bf16.gmra.mrb[4].mxu1 %vm339_vm1, %v1697_v37 }
  0x4a   : > { %1890 = vmatmul.mubr.msk.bf16.gmra.mrb[4].mxu0 %vm339_vm1, %v1089_v21  ;;  %1855 = vmatprep.mubr.msk.bf16.mxu1 %vm339_vm1, %v749_v34 }
  0x4b   : > { %1895 = vmatprep.mubr.msk.bf16.mxu0 %vm339_vm1, %v1196_v32 }
  0x51   : > { %1856 = vmatmul.mubr.msk.bf16.vlgmr.msra.gmra.mrb[0].mxu1 %vm339_vm1, %v750_v55 }
  0x52   : > { %1896 = vmatmul.mubr.msk.bf16.vlgmr.msra.gmra.mrb[0].mxu0 %vm339_vm1, %v1197_v18  ;;  %1914 = vmatpush3.bf16.msra.mxu1 %v2072_v7  ;;  %v1710_v7 = vcombine.low %v2166_v51, %v2207_v13  ;;  %v2636_v51 = vld [vmem:[#allocation6_spill] sm:$0xff] }
  0x53   : > { %1904 = vmatpush3.bf16.msra.mxu0 %v1325_v45  ;;  %1859 = vmatprep.mubr.msk.bf16.mxu1 %vm339_vm1, %v751_v46  ;;  %v2637_v13 = vld [vmem:[#allocation10_spill] sm:$0xff] }
  0x54   : > { %1899 = vmatprep.mubr.msk.bf16.mxu0 %vm339_vm1, %v1198_v50  ;;  %v1734_v23 = vcombine.low %v2637_v13, %v2636_v51 }
  0x59   : > { %1860 = vmatmul.mubr.msk.bf16.gmra.mrb[4].mxu1 %vm339_vm1, %v752_v56 }
  0x5a   : > { %1900 = vmatmul.mubr.msk.bf16.gmra.mrb[4].mxu0 %vm339_vm1, %v1199_v58  ;;  %1869 = vmatprep.mubr.msk.bf16.mxu1 %vm339_vm1, %v1710_v7 }
  0x5b   : > { %1905 = vmatprep.mubr.msk.bf16.mxu0 %vm339_vm1, %v1731_v52 }
  0x62   : > { %1906 = vmatmul.mubr.msk.bf16.vlgmr.msra.gmra.mrb[0].mxu0 %vm339_vm1, %v1732_v31 }
  0x63   : > { %1909 = vmatprep.mubr.msk.bf16.mxu0 %vm339_vm1, %v1733_v41 }
  0x65   : > { %1870 = vmatmul.mubr.msk.bf16.vlgmr.msra.gmra.mrb[4].mxu1 %vm339_vm1, %v1711_v47 }
  0x6a   : > { %1910 = vmatmul.mubr.msk.bf16.gmra.mrb[4].mxu0 %vm339_vm1, %v1734_v23 }
  0xa6   : > { %v1563_v20 = vpop.permute.xlu1 %1562 }
  0xa9   : > { %v1559_v42 = vpop.permute.xlu0 %1558 }
  0xaa   : > { %v1565_v59 = vpop.permute.xlu1 %1564 }
  0xad   : > { %v1561_v35 = vpop.permute.xlu0 %1560 }
  0xae   : > { %v1569_v45 = vpop.permute.xlu1 %1568 }
  0xb1   : > { %v1567_v40 = vpop.permute.xlu0 %1566 }
  0xb2   : > { %v1573_v6 = vpop.permute.xlu1 %1572 }
  0xb7   : > { %v1571_v7 = vpop.permute.xlu0 %1570 }
 0x124   : > { %v1857_v60 = vpop.f32.mrb[0].mxu1 }
 0x125   : > { %v804_v22 = vpop.f32.mrb[1].mxu1 }
 0x126   : > { %v1858_v39 = vpop.f32.mrb[2].mxu1 }
 0x127   : > { %v807_v15 = vpop.f32.mrb[3].mxu1 }
 0x135   : > { %v1907_v10 = vpop.f32.mrb[0].mxu0 }
 0x136   : > { %v1915_v8 = vadd.f32 %v1907_v10, %v1857_v60  ;;  %v1361_v27 = vpop.f32.mrb[1].mxu0 }
 0x137   : > { %v1916_v48 = vadd.f32 %v1361_v27, %v804_v22  ;;  %v1908_v9 = vpop.f32.mrb[2].mxu0 }
 0x138   : > { %v1409_v54 = vadd.f32 %v1915_v8, %v1739_v11  ;;  %v1917_v30 = vadd.f32 %v1908_v9, %v1858_v39  ;;  %v1364_v19 = vpop.f32.mrb[3].mxu0  ;;  %v1871_v63 = vpop.f32.mrb[4].mxu1 }
 0x139   : > { %v1407_v28 = vadd.f32 %v1916_v48, %v1739_v11  ;;  %v1918_v36 = vadd.f32 %v1364_v19, %v807_v15  ;;  %v930_v57 = vpop.f32.mrb[5].mxu1 }
 0x13a   : > { %v1417_v26 = vmax.f32 %v1409_v54, 0.0  ;;  %v1410_v25 = vadd.f32 %v1917_v30, %v1739_v11  ;;  %v1872_v29 = vpop.f32.mrb[6].mxu1 }
 0x13b   : > { %v1415_v16 = vmax.f32 %v1407_v28, 0.0  ;;  %v1408_v17 = vadd.f32 %v1918_v36, %v1739_v11  ;;  %v933_v62 = vpop.f32.mrb[7].mxu1 }
 0x13c   : > { %v1764_v33 = vpack.c.bf16 %v1417_v26, %v1417_v26  ;;  %v1418_v2 = vmax.f32 %v1410_v25, 0.0 }
 0x13d   : > { %v1762_v5 = vpack.c.bf16 %v1415_v16, %v1415_v16  ;;  %v1416_v61 = vmax.f32 %v1408_v17, 0.0  ;;  %v1911_v37 = vpop.f32.mrb[4].mxu0 }
 0x13e   : > { %v1765_v21 = vpack.c.bf16 %v1418_v2, %v1418_v2  ;;  %v1919_v34 = vadd.f32 %v1911_v37, %v1871_v63  ;;  %1458 = vst.msk [vmem:[%s2554_s29 + $0x8] sm:$0xf] %vm1455_vm11, %v1764_v33  ;;  %v1377_v32 = vpop.f32.mrb[5].mxu0 }
 0x13f   : > { %v1763_v4 = vpack.c.bf16 %v1416_v61, %v1416_v61  ;;  %1585 = vst.msk [vmem:[%s2554_s29 + $0x8] sm:$0xf] %vm1582_vm12, %v1563_v20  ;;  %v1920_v38 = vadd.f32 %v1377_v32, %v930_v57  ;;  %v1912_v44 = vpop.f32.mrb[6].mxu0 }
 0x140   : > { %1456 = vst.msk [vmem:[%s2554_s29] sm:$0xf] %vm1455_vm11, %v1762_v5  ;;  %v1413_v49 = vadd.f32 %v1919_v34, %v1739_v11  ;;  %1459 = vst.msk [vmem:[%s2554_s29 + $0xc] sm:$0xf] %vm1455_vm11, %v1765_v21  ;;  %v1921_v55 = vadd.f32 %v1912_v44, %v1872_v29  ;;  %v1380_v18 = vpop.f32.mrb[7].mxu0 }
 0x141   : > { %1583 = vst.msk [vmem:[%s2554_s29] sm:$0xf] %vm1582_vm12, %v1559_v42  ;;  %v1411_v46 = vadd.f32 %v1920_v38, %v1739_v11  ;;  %v1922_v50 = vadd.f32 %v1380_v18, %v933_v62  ;;  %1586 = vst.msk [vmem:[%s2554_s29 + $0xc] sm:$0xf] %vm1582_vm12, %v1565_v59 }
 0x142   : > { %1457 = vst.msk [vmem:[%s2554_s29 + $0x4] sm:$0xf] %vm1455_vm11, %v1763_v4  ;;  %v1421_v3 = vmax.f32 %v1413_v49, 0.0  ;;  %v1414_v14 = vadd.f32 %v1921_v55, %v1739_v11 }
 0x143   : > { %1584 = vst.msk [vmem:[%s2554_s29 + $0x4] sm:$0xf] %vm1582_vm12, %v1561_v35  ;;  %v1419_v24 = vmax.f32 %v1411_v46, 0.0  ;;  %v1412_v56 = vadd.f32 %v1922_v50, %v1739_v11 }
 0x144   : > { %v1768_v58 = vpack.c.bf16 %v1421_v3, %v1421_v3  ;;  %v1422_v52 = vmax.f32 %v1414_v14, 0.0 }
 0x145   : > { %v1766_v43 = vpack.c.bf16 %v1419_v24, %v1419_v24  ;;  %v1420_v53 = vmax.f32 %v1412_v56, 0.0 }
 0x146   : > { %1462 = vst.msk [vmem:[%s2554_s29 + $0x18] sm:$0xf] %vm1455_vm11, %v1768_v58  ;;  %v1769_v31 = vpack.c.bf16 %v1422_v52, %v1422_v52 }
 0x147   : > { %1460 = vst.msk [vmem:[%s2554_s29 + $0x10] sm:$0xf] %vm1455_vm11, %v1766_v43  ;;  %v1767_v12 = vpack.c.bf16 %v1420_v53, %v1420_v53 }
 0x148   : > { %1589 = vst.msk [vmem:[%s2554_s29 + $0x18] sm:$0xf] %vm1582_vm12, %v1571_v7  ;;  %1587 = vst.msk [vmem:[%s2554_s29 + $0x10] sm:$0xf] %vm1582_vm12, %v1567_v40 }
 0x149   : > { %1463 = vst.msk [vmem:[%s2554_s29 + $0x1c] sm:$0xf] %vm1455_vm11, %v1769_v31  ;;  %1461 = vst.msk [vmem:[%s2554_s29 + $0x14] sm:$0xf] %vm1455_vm11, %v1767_v12 }
 0x14a   : > { %1590 = vst.msk [vmem:[%s2554_s29 + $0x1c] sm:$0xf] %vm1582_vm12, %v1573_v6  ;;  %1588 = vst.msk [vmem:[%s2554_s29 + $0x14] sm:$0xf] %vm1582_vm12, %v1569_v45 }
 0x14b PF: > { %s15_s18 = sadd.s32 1, %s2008_s18  }
 0x14c   : > { %p12_p4 = scmp.ge.s32.totalorder %s15_s18, 4  }
 0x14e   :  { %14 = sbr.rel (!%p12_p4) target bundleno = 1 (0x1), region = 81 }

// kernel: encoder_forward.21
= control target key start
LH: loop header
LB: loop body
LE: loop exit
PB: predicated region body
PF: predicated region fallthrough
CT: control target
= control target key end

     0   :  { %s1869_s24 = smov 0   ;;  %s2186_s0 = inlined_call_operand.vmem [shape: bf16[2,16,64], index: 0, kind: input, shape index: {}]   ;;  %s2187_s1 = inlined_call_operand.vmem [shape: bf16[3,64,64], index: 1, kind: input, shape index: {}]   ;;  %s2188_s2 = inlined_call_operand.vmem [shape: bf16[3,64,64], index: 2, kind: input, shape index: {}]   ;;  %s2189_s3 = inlined_call_operand.vmem [shape: bf16[3,64,64], index: 3, kind: input, shape index: {}]   ;;  %s2190_s4 = inlined_call_operand.vmem [shape: bf16[3,64,64], index: 4, kind: input, shape index: {}]   ;;  %s2191_s5 = inlined_call_operand.vmem [shape: f32[1,64], index: 5, kind: input, shape index: {}]   ;;  %s2192_s6 = inlined_call_operand.vmem [shape: f32[1,64], index: 6, kind: input, shape index: {}]   ;;  %s2193_s7 = inlined_call_operand.vmem [shape: bf16[2,16,64], index: 7, kind: output, shape index: {}]  }
   0x1 LB: > { %s1396_s25 = sadd.s32 4294967295, %s1825_s24   ;;  %p1400_p0 = scmp.ge.s32.totalorder %s1825_s24, 1  ;;  %s1825_s24 = sphi %s1869_s24, %s17_s24  }
   0x2   : > { %p237_p1 = scmp.lt.s32.totalorder %s1825_s24, 3 }
   0x4   : > { %p238_p2 = pnand %p1400_p0, %p237_p1 }
   0x5   : > { %v1770_v0 = vld [vmem:[%s2187_s1] sm:$0xff] (!%p238_p2)   ;;  %v1827_v1 = vmov (!%p238_p2), 0.0   ;;  %v1771_v2 = vld [vmem:[%s2187_s1 + $0x8] sm:$0xff] (!%p238_p2)   ;;  %vm1828_vm0 = vmmov (!%p238_p2), 0   ;;  %p269_p3 = scmp.lt.s32.totalorder (!%p238_p2), %s1396_s25, 1  ;;  %vm307_vm1 = vcmask (!%p238_p2), 519168   ;;  %v280_v25 = vlaneseq (!%p238_p2) }
   0x6   : > { %241 = sbr.rel (%p238_p2) target bundleno = 1066 (0x42a), region = 48  ;;  %1600 = vmatprep.subr.bf16.mxu0 (!%p238_p2), %v1827_v1  ;;  %1636 = vmatprep.subr.bf16.mxu1 (!%p238_p2), %v1827_v1  ;;  %308 = vst.msk [vmem:[#allocation2] sm:$0xf] (!%p238_p2), %vm307_vm1, %v1827_v1  ;;  %309 = vst.msk [vmem:[#allocation2 + $0x14] sm:$0xf] (!%p238_p2), %vm307_vm1, %v1827_v1  ;;  %v1772_v3 = vld [vmem:[%s2187_s1 + $0x10] sm:$0xff] (!%p238_p2)  }
   0x7   : > { %1601 = vmatpush3.bf16.msra.mxu0 (!%p238_p2), %v1770_v0  ;;  %1608 = vmatprep.mubr.msk.bf16.mxu0 (!%p238_p2), %vm1828_vm0, %v1827_v1  ;;  %vm323_vm2 = vcmask (!%p238_p2), 523264   ;;  %v1773_v7 = vld [vmem:[%s2187_s1 + $0x18] sm:$0xff] (!%p238_p2)   ;;  %v1774_v10 = vld [vmem:[%s2187_s1 + $0x20] sm:$0xff] (!%p238_p2)   ;;  %v1775_v12 = vld [vmem:[%s2187_s1 + $0x28] sm:$0xff] (!%p238_p2)   ;;  %v281_v26 = vshrl.u32 (!%p238_p2), %v280_v25, 7 }
   0x8   : > { %1602 = vmatprep.subr.bf16.mxu0 (!%p238_p2), %v1827_v1  ;;  %1644 = vmatprep.mubr.msk.bf16.mxu1 (!%p238_p2), %vm1828_vm0, %v1827_v1  ;;  %v1776_v13 = vld [vmem:[%s2187_s1 + $0x30] sm:$0xff] (!%p238_p2)   ;;  %v1777_v14 = vld [vmem:[%s2187_s1 + $0x38] sm:$0xff] (!%p238_p2)   ;;  %v1778_v15 = vld [vmem:[%s2187_s1 + $0x40] sm:$0xff] (!%p238_p2)  }
   0x9   : > { %v1779_v16 = vld [vmem:[%s2187_s1 + $0x48] sm:$0xff] (!%p238_p2)   ;;  %v1780_v17 = vld [vmem:[%s2187_s1 + $0x50] sm:$0xff] (!%p238_p2)   ;;  %v1781_v18 = vld [vmem:[%s2187_s1 + $0x58] sm:$0xff] (!%p238_p2)   ;;  %v282_v31 = vadd.s32 (!%p238_p2), 8, %v281_v26  ;;  %v287_v35 = vand.u32 (!%p238_p2), 3, %v281_v26 }
   0xa   : > { %v1782_v21 = vld [vmem:[%s2188_s2] sm:$0xff] (!%p238_p2)   ;;  %v1783_v22 = vld [vmem:[%s2188_s2 + $0x8] sm:$0xff] (!%p238_p2)   ;;  %v1784_v23 = vld [vmem:[%s2188_s2 + $0x10] sm:$0xff] (!%p238_p2)  }
   0xb   : > { %1603 = vmatpush3.bf16.msra.mxu0 (!%p238_p2), %v1771_v2  ;;  %1637 = vmatpush3.bf16.msra.mxu1 (!%p238_p2), %v1782_v21  ;;  %v1785_v24 = vld [vmem:[%s2188_s2 + $0x18] sm:$0xff] (!%p238_p2)   ;;  %v294_v36 = vand.u32 (!%p238_p2), 3, %v282_v31  ;;  %vm1981_vm3 = vcmp.ge.s32.totalorder (!%p238_p2), %v287_v35, 1  ;;  %v1786_v43 = vld [vmem:[%s2188_s2 + $0x20] sm:$0xff] (!%p238_p2)   ;;  %v1787_v45 = vld [vmem:[%s2188_s2 + $0x28] sm:$0xff] (!%p238_p2)   ;;  %vm2026_vm5 = vcmp.lt.s32.totalorder (!%p238_p2), %v287_v35, 3 }
   0xc   : > { %1604 = vmatprep.subr.bf16.mxu0 (!%p238_p2), %v1827_v1  ;;  %1638 = vmatprep.subr.bf16.mxu1 (!%p238_p2), %v1827_v1  ;;  %v1788_v46 = vld [vmem:[%s2188_s2 + $0x30] sm:$0xff] (!%p238_p2)   ;;  %v1789_v47 = vld [vmem:[%s2188_s2 + $0x38] sm:$0xff] (!%p238_p2)   ;;  %v1790_v48 = vld [vmem:[%s2188_s2 + $0x40] sm:$0xff] (!%p238_p2)  }
   0xd   : > { %s2203_s25 = smov (!%p269_p3, %s1396_s25), 1  ;;  %vm1985_vm4 = vcmp.ge.s32.totalorder %v294_v36, 1  ;;  %v1791_v49 = vld [vmem:[%s2188_s2 + $0x48] sm:$0xff]   ;;  %v1792_v50 = vld [vmem:[%s2188_s2 + $0x50] sm:$0xff]   ;;  %vm2030_vm6 = vcmp.lt.s32.totalorder %v294_v36, 3  ;;  %v1793_v55 = vld [vmem:[%s2188_s2 + $0x58] sm:$0xff]  }
   0xe   : > { %s1536_s9 = sshll.u32 %s2203_s25, 3  ;;  %v1794_v59 = vld [vmem:[%s2189_s3] sm:$0xff]   ;;  %v1795_v60 = vld [vmem:[%s2189_s3 + $0x8] sm:$0xff]   ;;  %v1796_v61 = vld [vmem:[%s2189_s3 + $0x10] sm:$0xff]  }
   0xf   : > { %s273_s12 = scalar_lea.vmem %s2186_s0, %s1536_s9  ;;  %1605 = vmatpush3.bf16.msra.mxu0 %v1772_v3  ;;  %1639 = vmatpush3.bf16.msra.mxu1 %v1783_v22  ;;  %v1797_v62 = vld [vmem:[%s2189_s3 + $0x18] sm:$0xff]   ;;  %v1812_v37 = vld [vmem:[%s2190_s4 + $0x30] sm:$0xff]   ;;  %v1531_v52 = vld [vmem:[%s2192_s6] ss:$0 sm:$0xff]  ;;  %s278_s8 = scalar_lea.vmem %s2193_s7, %s1536_s9 }
  0x10   : > { %v1906_v4 = vld [vmem:[%s273_s12] sm:$0xff]   ;;  %1606 = vmatprep.subr.bf16.mxu0 %v1827_v1  ;;  %1640 = vmatprep.subr.bf16.mxu1 %v1827_v1  ;;  %v1801_v31 = vld [vmem:[%s2189_s3 + $0x38] sm:$0xff]  }
  0x11   : > { %v312_v5 = vunpack.c.l.bf16 %v1906_v4  ;;  %v313_v6 = vunpack.c.h.bf16 %v1906_v4  ;;  %v1805_v35 = vld [vmem:[%s2189_s3 + $0x58] sm:$0xff]  }
  0x12   : > { %v1813_v38 = vld [vmem:[%s2190_s4 + $0x38] sm:$0xff]  }
  0x13   : > { %324 = vst.msk [vmem:[#allocation2 + $0x4] sm:$0xff] %vm323_vm2, %v312_v5  ;;  %325 = vst.msk [vmem:[#allocation2 + $0xc] sm:$0xff] %vm323_vm2, %v313_v6  ;;  %1607 = vmatpush3.bf16.msra.mxu0 %v1773_v7  ;;  %1641 = vmatpush3.bf16.msra.mxu1 %v1784_v23 }
  0x14   : > { %1612 = vmatprep.subr.bf16.mxu0 %v1827_v1  ;;  %1642 = vmatprep.subr.bf16.mxu1 %v1827_v1 }
  0x17   : > { %1643 = vmatpush3.bf16.msra.mxu1 %v1785_v24 }
  0x18   : > { %1648 = vmatprep.subr.bf16.mxu1 %v1827_v1 }
  0x1a   : > { %v326_v8 = vld [vmem:[#allocation2] sm:$0xff]  ;;  %v327_v9 = vld [vmem:[#allocation2 + $0x8] sm:$0xff]  ;;  %v479_v19 = vld [vmem:[#allocation2 + $0x10] sm:$0xff] }
  0x1b   : > { %v328_v11 = vpack.c.bf16 %v327_v9, %v326_v8  ;;  %v480_v20 = vpack.c.bf16 %v479_v19, %v327_v9 }
  0x1d   : > { %1609 = vmatmul.mubr.msk.bf16.vlgmr.msra.gmra.mrb[0].mxu0 %vm323_vm2, %v328_v11 }
  0x1e   : > { %1613 = vmatpush3.bf16.msra.mxu0 %v1774_v10  ;;  %1620 = vmatprep.mubr.msk.bf16.mxu0 %vm1828_vm0, %v1827_v1 }
  0x1f   : > { %1614 = vmatprep.subr.bf16.mxu0 %v1827_v1 }
  0x22   : > { %1615 = vmatpush3.bf16.msra.mxu0 %v1775_v12 }
  0x23   : > { %1616 = vmatprep.subr.bf16.mxu0 %v1827_v1 }
  0x26   : > { %1617 = vmatpush3.bf16.msra.mxu0 %v1776_v13 }
  0x27   : > { %1618 = vmatprep.subr.bf16.mxu0 %v1827_v1 }
  0x2a   : > { %1619 = vmatpush3.bf16.msra.mxu0 %v1777_v14  ;;  %v1468_v14 = vld [vmem:[%s2191_s5] ss:$0 sm:$0xff] }
  0x2b   : > { %1624 = vmatprep.subr.bf16.mxu0 %v1827_v1 }
  0x2d   : > { %1621 = vmatmul.mubr.msk.bf16.vlgmr.msra.gmra.mrb[0].mxu0 %vm323_vm2, %v1906_v4 }
  0x2e   : > { %1625 = vmatpush3.bf16.msra.mxu0 %v1778_v15  ;;  %1632 = vmatprep.mubr.msk.bf16.mxu0 %vm1828_vm0, %v1827_v1 }
  0x2f   : > { %1626 = vmatprep.subr.bf16.mxu0 %v1827_v1 }
  0x32   : > { %1627 = vmatpush3.bf16.msra.mxu0 %v1779_v16 }
  0x33   : > { %1628 = vmatprep.subr.bf16.mxu0 %v1827_v1 }
  0x36   : > { %1629 = vmatpush3.bf16.msra.mxu0 %v1780_v17 }
  0x37   : > { %1630 = vmatprep.subr.bf16.mxu0 %v1827_v1 }
  0x3a   : > { %1631 = vmatpush3.bf16.msra.mxu0 %v1781_v18 }
  0x3b   : > { %1672 = vmatprep.subr.bf16.mxu0 %v1827_v1 }
  0x3d   : > { %1633 = vmatmul.mubr.msk.bf16.vlgmr.msra.gmra.mrb[0].mxu0 %vm323_vm2, %v480_v20 }
  0x3e   : > { %1680 = vmatprep.mubr.msk.bf16.mxu0 %vm1828_vm0, %v1827_v1  ;;  %1673 = vmatpush3.bf16.msra.mxu0 %v1794_v59  ;;  %v1811_v59 = vld [vmem:[%s2190_s4 + $0x28] sm:$0xff]  }
  0x3f   : > { %1674 = vmatprep.subr.bf16.mxu0 %v1827_v1 }
  0x42   : > { %1675 = vmatpush3.bf16.msra.mxu0 %v1795_v60  ;;  %v1814_v60 = vld [vmem:[%s2190_s4 + $0x40] sm:$0xff]  }
  0x43   : > { %1676 = vmatprep.subr.bf16.mxu0 %v1827_v1 }
  0x46   : > { %1677 = vmatpush3.bf16.msra.mxu0 %v1796_v61  ;;  %v1815_v61 = vld [vmem:[%s2190_s4 + $0x48] sm:$0xff]  }
  0x47   : > { %1678 = vmatprep.subr.bf16.mxu0 %v1827_v1 }
  0x4a   : > { %1679 = vmatpush3.bf16.msra.mxu0 %v1797_v62  ;;  %v1816_v62 = vld [vmem:[%s2190_s4 + $0x50] sm:$0xff]  }
  0x4b   : > { %1684 = vmatprep.subr.bf16.mxu0 %v1827_v1 }
 0x110   : > { %v551_v27 = vpop.f32.mrb[0].mxu0 }
 0x111   : > { %v560_v28 = vmax.f32 %v551_v27, 0.0  ;;  %v1634_v29 = vpop.f32.mrb[1].mxu0  ;;  %v1798_v27 = vld [vmem:[%s2189_s3 + $0x20] sm:$0xff]  }
 0x112   : > { %v554_v30 = vpop.f32.mrb[2].mxu0  ;;  %v1799_v29 = vld [vmem:[%s2189_s3 + $0x28] sm:$0xff]  }
 0x113   : > { %576 = vst.msk [vmem:[#allocation2 + $0x4] sm:$0xff] %vm323_vm2, %v560_v28  ;;  %v561_v32 = vmax.f32 %v554_v30, 0.0  ;;  %v1635_v33 = vpop.f32.mrb[3].mxu0  ;;  %v1800_v30 = vld [vmem:[%s2189_s3 + $0x30] sm:$0xff]  }
 0x114   : > { %v1803_v33 = vld [vmem:[%s2189_s3 + $0x48] sm:$0xff]  }
 0x115   : > { %v566_v34 = vpack.c.bf16 %v561_v32, %v560_v28  ;;  %577 = vst.msk [vmem:[#allocation2 + $0xc] sm:$0xff] %vm323_vm2, %v561_v32  ;;  %v1802_v32 = vld [vmem:[%s2189_s3 + $0x40] sm:$0xff]  }
 0x11a   : > { %v578_v39 = vld [vmem:[#allocation2 + $0x3] sm:$0xff] }
 0x11b   : > { %v584_v41 = vsel %vm1981_vm3, %v578_v39, 0.0 }
 0x11c   : > { %v579_v40 = vld [vmem:[#allocation2 + $0xb] sm:$0xff] }
 0x11d   : > { %v585_v42 = vsel %vm1985_vm4, %v579_v40, 0.0  ;;  %v731_v53 = vld [vmem:[#allocation2 + $0x5] sm:$0xff]  ;;  %v732_v54 = vld [vmem:[#allocation2 + $0xd] sm:$0xff] }
 0x11e   : > { %v586_v44 = vpack.c.bf16 %v585_v42, %v584_v41  ;;  %v737_v56 = vsel %vm2026_vm5, %v731_v53, 0.0  ;;  %v738_v57 = vsel %vm2030_vm6, %v732_v54, 0.0  ;;  %v1806_v40 = vld [vmem:[%s2190_s4] sm:$0xff]   ;;  %v1807_v41 = vld [vmem:[%s2190_s4 + $0x8] sm:$0xff]   ;;  %v1808_v42 = vld [vmem:[%s2190_s4 + $0x10] sm:$0xff]  }
 0x11f   : > { %v739_v58 = vpack.c.bf16 %v738_v57, %v737_v56  ;;  %v1810_v57 = vld [vmem:[%s2190_s4 + $0x20] sm:$0xff]  }
 0x120   : > { %1645 = vmatmul.mubr.msk.bf16.vlgmr.msra.gmra.mrb[0].mxu1 %vm323_vm2, %v586_v44 }
 0x121   : > { %1649 = vmatpush3.bf16.msra.mxu1 %v1786_v43  ;;  %1656 = vmatprep.mubr.msk.bf16.mxu1 %vm1828_vm0, %v1827_v1  ;;  %v1809_v43 = vld [vmem:[%s2190_s4 + $0x18] sm:$0xff]  }
 0x122   : > { %1650 = vmatprep.subr.bf16.mxu1 %v1827_v1 }
 0x125   : > { %1651 = vmatpush3.bf16.msra.mxu1 %v1787_v45 }
 0x126   : > { %1652 = vmatprep.subr.bf16.mxu1 %v1827_v1 }
 0x129   : > { %1653 = vmatpush3.bf16.msra.mxu1 %v1788_v46 }
 0x12a   : > { %1654 = vmatprep.subr.bf16.mxu1 %v1827_v1 }
 0x12d   : > { %1655 = vmatpush3.bf16.msra.mxu1 %v1789_v47 }
 0x12e   : > { %1660 = vmatprep.subr.bf16.mxu1 %v1827_v1 }
 0x130   : > { %1657 = vmatmul.mubr.msk.bf16.vlgmr.msra.gmra.mrb[4].mxu1 %vm323_vm2, %v566_v34  ;;  %v1804_v34 = vld [vmem:[%s2189_s3 + $0x50] sm:$0xff]  }
 0x131   : > { %1661 = vmatpush3.bf16.msra.mxu1 %v1790_v48  ;;  %1668 = vmatprep.mubr.msk.bf16.mxu1 %vm1828_vm0, %v1827_v1 }
 0x132   : > { %1662 = vmatprep.subr.bf16.mxu1 %v1827_v1 }
 0x135   : > { %1663 = vmatpush3.bf16.msra.mxu1 %v1791_v49 }
 0x136   : > { %1664 = vmatprep.subr.bf16.mxu1 %v1827_v1 }
 0x139   : > { %1665 = vmatpush3.bf16.msra.mxu1 %v1792_v50 }
 0x13a   : > { %1666 = vmatprep.subr.bf16.mxu1 %v1827_v1 }
 0x13d   : > { %1667 = vmatpush3.bf16.msra.mxu1 %v1793_v55 }
 0x13e   : > { %1708 = vmatprep.subr.bf16.mxu1 %v1827_v1 }
 0x140   : > { %1669 = vmatmul.mubr.msk.bf16.vlgmr.msra.gmra.mrb[8].mxu1 %vm323_vm2, %v739_v58 }
 0x141   : > { %1716 = vmatprep.mubr.msk.bf16.mxu1 %vm1828_vm0, %v1827_v1  ;;  %1709 = vmatpush3.bf16.msra.mxu1 %v1806_v40 }
 0x142   : > { %1710 = vmatprep.subr.bf16.mxu1 %v1827_v1 }
 0x145   : > { %1711 = vmatpush3.bf16.msra.mxu1 %v1807_v41 }
 0x146   : > { %1712 = vmatprep.subr.bf16.mxu1 %v1827_v1 }
 0x149   : > { %1713 = vmatpush3.bf16.msra.mxu1 %v1808_v42 }
 0x14a   : > { %1714 = vmatprep.subr.bf16.mxu1 %v1827_v1 }
 0x14d   : > { %1715 = vmatpush3.bf16.msra.mxu1 %v1809_v43 }
 0x14e   : > { %1720 = vmatprep.subr.bf16.mxu1 %v1827_v1 }
 0x1f3   : > { %v656_v63 = vpop.f32.mrb[0].mxu1 }
 0x1f4   : > { %v1646_v0 = vpop.f32.mrb[1].mxu1 }
 0x1f5   : > { %v659_v2 = vpop.f32.mrb[2].mxu1 }
 0x1f6   : > { %v1647_v3 = vpop.f32.mrb[3].mxu1 }
 0x203   : > { %v724_v7 = vpop.f32.mrb[4].mxu1 }
 0x204   : > { %v725_v8 = vadd.f32 %v724_v7, %v656_v63  ;;  %v1658_v9 = vpop.f32.mrb[5].mxu1 }
 0x205   : > { %v727_v10 = vpop.f32.mrb[6].mxu1 }
 0x206   : > { %v728_v11 = vadd.f32 %v727_v10, %v659_v2  ;;  %v1659_v12 = vpop.f32.mrb[7].mxu1  ;;  %v1817_v2 = vld [vmem:[%s2190_s4 + $0x58] sm:$0xff]  }
 0x213   : > { %v810_v13 = vpop.f32.mrb[8].mxu1 }
 0x214   : > { %v817_v15 = vadd.f32 %v810_v13, %v725_v8  ;;  %v1670_v16 = vpop.f32.mrb[9].mxu1 }
 0x215   : > { %v813_v17 = vpop.f32.mrb[10].mxu1 }
 0x216   : > { %v826_v18 = vadd.f32 %v1468_v14, %v817_v15  ;;  %v818_v19 = vadd.f32 %v813_v17, %v728_v11  ;;  %v1671_v20 = vpop.f32.mrb[11].mxu1 }
 0x218   : > { %v828_v21 = vmax.f32 %v826_v18, 0.0  ;;  %v827_v22 = vadd.f32 %v1468_v14, %v818_v19 }
 0x21a   : > { %840 = vst.msk [vmem:[#allocation2 + $0x4] sm:$0xff] %vm323_vm2, %v828_v21  ;;  %v829_v23 = vmax.f32 %v827_v22, 0.0 }
 0x21c   : > { %v830_v24 = vpack.c.bf16 %v829_v23, %v828_v21  ;;  %841 = vst.msk [vmem:[#allocation2 + $0xc] sm:$0xff] %vm323_vm2, %v829_v23 }
 0x221   : > { %v842_v25 = vld [vmem:[#allocation2] sm:$0xff] }
 0x223   : > { %v843_v26 = vld [vmem:[#allocation2 + $0x8] sm:$0xff]  ;;  %v990_v36 = vld [vmem:[#allocation2 + $0x10] sm:$0xff] }
 0x224   : > { %v844_v28 = vpack.c.bf16 %v843_v26, %v842_v25  ;;  %v991_v39 = vpack.c.bf16 %v990_v36, %v843_v26 }
 0x226   : > { %1681 = vmatmul.mubr.msk.bf16.vlgmr.msra.gmra.mrb[4].mxu0 %vm323_vm2, %v844_v28 }
 0x227   : > { %1685 = vmatpush3.bf16.msra.mxu0 %v1798_v27  ;;  %1692 = vmatprep.mubr.msk.bf16.mxu0 %vm1828_vm0, %v1827_v1 }
 0x228   : > { %1686 = vmatprep.subr.bf16.mxu0 %v1827_v1 }
 0x22b   : > { %1687 = vmatpush3.bf16.msra.mxu0 %v1799_v29 }
 0x22c   : > { %1688 = vmatprep.subr.bf16.mxu0 %v1827_v1 }
 0x22f   : > { %1689 = vmatpush3.bf16.msra.mxu0 %v1800_v30 }
 0x230   : > { %1690 = vmatprep.subr.bf16.mxu0 %v1827_v1 }
 0x233   : > { %1691 = vmatpush3.bf16.msra.mxu0 %v1801_v31 }
 0x234   : > { %1696 = vmatprep.subr.bf16.mxu0 %v1827_v1 }
 0x236   : > { %1693 = vmatmul.mubr.msk.bf16.vlgmr.msra.gmra.mrb[4].mxu0 %vm323_vm2, %v830_v24 }
 0x237   : > { %1697 = vmatpush3.bf16.msra.mxu0 %v1802_v32  ;;  %1704 = vmatprep.mubr.msk.bf16.mxu0 %vm1828_vm0, %v1827_v1 }
 0x238   : > { %1698 = vmatprep.subr.bf16.mxu0 %v1827_v1 }
 0x23b   : > { %1699 = vmatpush3.bf16.msra.mxu0 %v1803_v33 }
 0x23c   : > { %1700 = vmatprep.subr.bf16.mxu0 %v1827_v1 }
 0x23f   : > { %1701 = vmatpush3.bf16.msra.mxu0 %v1804_v34 }
 0x240   : > { %1702 = vmatprep.subr.bf16.mxu0 %v1827_v1 }
 0x243   : > { %1703 = vmatpush3.bf16.msra.mxu0 %v1805_v35 }
 0x246   : > { %1705 = vmatmul.mubr.msk.bf16.vlgmr.msra.gmra.mrb[4].mxu0 %vm323_vm2, %v991_v39 }
 0x319   : > { %v1062_v44 = vpop.f32.mrb[4].mxu0 }
 0x31a   : > { %v1071_v45 = vmax.f32 %v1062_v44, 0.0  ;;  %v1706_v46 = vpop.f32.mrb[5].mxu0 }
 0x31b   : > { %v1065_v47 = vpop.f32.mrb[6].mxu0 }
 0x31c   : > { %1083 = vst.msk [vmem:[#allocation2 + $0x4] sm:$0xff] %vm323_vm2, %v1071_v45  ;;  %v1072_v48 = vmax.f32 %v1065_v47, 0.0  ;;  %v1707_v49 = vpop.f32.mrb[7].mxu0 }
 0x31e   : > { %v1073_v50 = vpack.c.bf16 %v1072_v48, %v1071_v45  ;;  %1084 = vst.msk [vmem:[#allocation2 + $0xc] sm:$0xff] %vm323_vm2, %v1072_v48 }
 0x323   : > { %v1085_v53 = vld [vmem:[#allocation2 + $0x3] sm:$0xff] }
 0x324   : > { %v1087_v55 = vsel %vm1981_vm3, %v1085_v53, 0.0 }
 0x325   : > { %v1086_v54 = vld [vmem:[#allocation2 + $0xb] sm:$0xff] }
 0x326   : > { %v1088_v56 = vsel %vm1985_vm4, %v1086_v54, 0.0  ;;  %v1234_v63 = vld [vmem:[#allocation2 + $0x5] sm:$0xff]  ;;  %v1235_v0 = vld [vmem:[#allocation2 + $0xd] sm:$0xff] }
 0x327   : > { %v1089_v58 = vpack.c.bf16 %v1088_v56, %v1087_v55  ;;  %v1236_v3 = vsel %vm2026_vm5, %v1234_v63, 0.0  ;;  %v1237_v7 = vsel %vm2030_vm6, %v1235_v0, 0.0 }
 0x328   : > { %v1238_v8 = vpack.c.bf16 %v1237_v7, %v1236_v3 }
 0x329   : > { %1717 = vmatmul.mubr.msk.bf16.vlgmr.msra.gmra.mrb[12].mxu1 %vm323_vm2, %v1089_v58 }
 0x32a   : > { %1721 = vmatpush3.bf16.msra.mxu1 %v1810_v57  ;;  %1728 = vmatprep.mubr.msk.bf16.mxu1 %vm1828_vm0, %v1827_v1 }
 0x32b   : > { %1722 = vmatprep.subr.bf16.mxu1 %v1827_v1 }
 0x32e   : > { %1723 = vmatpush3.bf16.msra.mxu1 %v1811_v59 }
 0x32f   : > { %1724 = vmatprep.subr.bf16.mxu1 %v1827_v1 }
 0x332   : > { %1725 = vmatpush3.bf16.msra.mxu1 %v1812_v37 }
 0x333   : > { %1726 = vmatprep.subr.bf16.mxu1 %v1827_v1 }
 0x336   : > { %1727 = vmatpush3.bf16.msra.mxu1 %v1813_v38 }
 0x337   : > { %1732 = vmatprep.subr.bf16.mxu1 %v1827_v1 }
 0x339   : > { %1729 = vmatmul.mubr.msk.bf16.vlgmr.msra.gmra.mrb[16].mxu1 %vm323_vm2, %v1073_v50 }
 0x33a   : > { %1733 = vmatpush3.bf16.msra.mxu1 %v1814_v60  ;;  %1740 = vmatprep.mubr.msk.bf16.mxu1 %vm1828_vm0, %v1827_v1 }
 0x33b   : > { %1734 = vmatprep.subr.bf16.mxu1 %v1827_v1 }
 0x33e   : > { %1735 = vmatpush3.bf16.msra.mxu1 %v1815_v61 }
 0x33f   : > { %1736 = vmatprep.subr.bf16.mxu1 %v1827_v1 }
 0x342   : > { %1737 = vmatpush3.bf16.msra.mxu1 %v1816_v62 }
 0x343   : > { %1738 = vmatprep.subr.bf16.mxu1 %v1827_v1 }
 0x346   : > { %1739 = vmatpush3.bf16.msra.mxu1 %v1817_v2 }
 0x349   : > { %1741 = vmatmul.mubr.msk.bf16.vlgmr.msra.gmra.mrb[20].mxu1 %vm323_vm2, %v1238_v8 }
 0x3fc   : > { %v1159_v9 = vpop.f32.mrb[12].mxu1 }
 0x3fd   : > { %v1718_v10 = vpop.f32.mrb[13].mxu1 }
 0x3fe   : > { %v1162_v11 = vpop.f32.mrb[14].mxu1 }
 0x3ff   : > { %v1719_v12 = vpop.f32.mrb[15].mxu1 }
 0x40c   : > { %v1227_v13 = vpop.f32.mrb[16].mxu1 }
 0x40d   : > { %v1228_v14 = vadd.f32 %v1227_v13, %v1159_v9  ;;  %v1730_v15 = vpop.f32.mrb[17].mxu1 }
 0x40e   : > { %v1230_v16 = vpop.f32.mrb[18].mxu1 }
 0x40f   : > { %v1231_v1 = vadd.f32 %v1230_v16, %v1162_v11  ;;  %v1731_v17 = vpop.f32.mrb[19].mxu1 }
 0x41c   : > { %v1309_v51 = vpop.f32.mrb[20].mxu1 }
 0x41d   : > { %v1316_v18 = vadd.f32 %v1309_v51, %v1228_v14  ;;  %v1742_v19 = vpop.f32.mrb[21].mxu1 }
 0x41e   : > { %v1312_v20 = vpop.f32.mrb[22].mxu1 }
 0x41f   : > { %v1325_v21 = vadd.f32 %v1531_v52, %v1316_v18  ;;  %v1317_v22 = vadd.f32 %v1312_v20, %v1231_v1  ;;  %v1743_v23 = vpop.f32.mrb[23].mxu1 }
 0x421   : > { %v1327_v24 = vadd.f32 %v1325_v21, %v312_v5  ;;  %v1326_v25 = vadd.f32 %v1531_v52, %v1317_v22 }
 0x423   : > { %v1329_v26 = vmax.f32 %v1327_v24, 0.0  ;;  %v1328_v27 = vadd.f32 %v1326_v25, %v313_v6 }
 0x425   : > { %v1538_v28 = vpack.c.bf16 %v1329_v26, %v1329_v26  ;;  %v1330_v29 = vmax.f32 %v1328_v27, 0.0 }
 0x427   : > { %1339 = vst.msk [vmem:[%s278_s8] sm:$0xf] %vm307_vm1, %v1538_v28  ;;  %v1539_v30 = vpack.c.bf16 %v1330_v29, %v1330_v29 }
 0x429   : > { %1340 = vst.msk [vmem:[%s278_s8 + $0x4] sm:$0xf] %vm307_vm1, %v1539_v30 }
 0x42a PF: > { %s17_s24 = sadd.s32 1, %s1825_s24  }
 0x42b   : > { %p14_p4 = scmp.ge.s32.totalorder %s17_s24, 4  }
 0x42d   :  { %16 = sbr.rel (!%p14_p4) target bundleno = 1 (0x1), region = 86 }

// kernel: encoder_forward.26
= control target key start
LH: loop header
LB: loop body
LE: loop exit
PB: predicated region body
PF: predicated region fallthrough
CT: control target
= control target key end

     0   :  { %s1430_s18 = smov 0   ;;  %s1670_s0 = inlined_call_operand.vmem [shape: bf16[2,4,4,64], index: 0, kind: input, shape index: {}]   ;;  %s1671_s1 = inlined_call_operand.vmem [shape: bf16[9,64,64], index: 1, kind: input, shape index: {}]   ;;  %s1672_s2 = inlined_call_operand.vmem [shape: f32[1,64], index: 2, kind: input, shape index: {}]   ;;  %s1673_s3 = inlined_call_operand.vmem [shape: f32[1,64], index: 3, kind: input, shape index: {}]   ;;  %s1674_s4 = inlined_call_operand.vmem [shape: f32[1,64], index: 4, kind: input, shape index: {}]   ;;  %s1675_s5 = inlined_call_operand.vmem [shape: bf16[2,4,128], index: 5, kind: output, shape index: {}]  }
   0x1 LB: > { %s1061_s19 = sadd.s32 4294967295, %s1394_s18   ;;  %p1065_p0 = scmp.ge.s32.totalorder %s1394_s18, 1  ;;  %s1394_s18 = sphi %s1430_s18, %s15_s18  }
   0x2   : > { %p187_p1 = scmp.lt.s32.totalorder %s1394_s18, 3 }
   0x4   : > { %p188_p2 = pnand %p1065_p0, %p187_p1 }
   0x5   : > { %v1352_v0 = vld [vmem:[%s1671_s1 + $0x60] sm:$0xff] (!%p188_p2)   ;;  %v1396_v1 = vmov (!%p188_p2), 0.0   ;;  %v1354_v3 = vld [vmem:[%s1671_s1 + $0x68] sm:$0xff] (!%p188_p2)   ;;  %vm1397_vm0 = vmmov (!%p188_p2), 0   ;;  %p214_p3 = scmp.lt.s32.totalorder (!%p188_p2), %s1061_s19, 1  ;;  %v224_v5 = vlaneseq (!%p188_p2)  ;;  %v1356_v6 = vld [vmem:[%s1671_s1 + $0x70] sm:$0xff] (!%p188_p2)  }
   0x6   : > { %191 = sbr.rel (%p188_p2) target bundleno = 316 (0x13c), region = 40  ;;  %1232 = vmatprep.subr.bf16.mxu0 (!%p188_p2), %v1396_v1  ;;  %1244 = vmatprep.subr.bf16.mxu1 (!%p188_p2), %v1396_v1  ;;  %v1353_v2 = vld [vmem:[%s1671_s1 + $0x80] sm:$0xff] (!%p188_p2)   ;;  %v1355_v4 = vld [vmem:[%s1671_s1 + $0x88] sm:$0xff] (!%p188_p2)   ;;  %v1357_v7 = vld [vmem:[%s1671_s1 + $0x90] sm:$0xff] (!%p188_p2)   ;;  %vm239_vm1 = vcmask (!%p188_p2), 518144   ;;  %vm258_vm2 = vcmask (!%p188_p2), 519168  }
   0x7   : > { %1233 = vmatpush3.bf16.msra.mxu0 (!%p188_p2), %v1352_v0  ;;  %1240 = vmatprep.mubr.msk.bf16.mxu0 (!%p188_p2), %vm1397_vm0, %v1396_v1  ;;  %v1473_v8 = vshrl.u32 (!%p188_p2), %v224_v5, 7  ;;  %v1358_v10 = vld [vmem:[%s1671_s1 + $0x78] sm:$0xff] (!%p188_p2)   ;;  %240 = vst.msk [vmem:[#allocation2] sm:$0x7] (!%p188_p2), %vm239_vm1, %v1396_v1  ;;  %vm298_vm3 = vcmask (!%p188_p2), 523264   ;;  %v1361_v17 = vld [vmem:[%s1671_s1 + $0x20] sm:$0xff] (!%p188_p2)  }
   0x8   : > { %1245 = vmatpush3.bf16.msra.mxu1 (!%p188_p2), %v1353_v2  ;;  %1234 = vmatprep.subr.bf16.mxu0 (!%p188_p2), %v1396_v1  ;;  %v1359_v12 = vld [vmem:[%s1671_s1 + $0x98] sm:$0xff] (!%p188_p2)   ;;  %v1360_v20 = vld [vmem:[%s1671_s1 + $0xa0] sm:$0xff] (!%p188_p2)   ;;  %v1363_v22 = vld [vmem:[%s1671_s1 + $0x28] sm:$0xff] (!%p188_p2)   ;;  %v1398_v46 = vmov (!%p188_p2), 1983009808   ;;  %s1399_s7 = smov (!%p188_p2), 64  }
   0x9   : > { %1246 = vmatprep.subr.bf16.mxu1 (!%p188_p2), %v1396_v1  ;;  %1252 = vmatprep.mubr.msk.bf16.mxu1 (!%p188_p2), %vm1397_vm0, %v1396_v1  ;;  %v230_v13 = vand.u32 (!%p188_p2), 1, %v1473_v8  ;;  %v1362_v25 = vld [vmem:[%s1671_s1 + $0xa8] sm:$0xff] (!%p188_p2)   ;;  %v1365_v27 = vld [vmem:[%s1671_s1 + $0x30] sm:$0xff] (!%p188_p2)   ;;  %v1367_v30 = vld [vmem:[%s1671_s1 + $0x38] sm:$0xff] (!%p188_p2)   ;;  %v997_v47 = vunpack.c.l.s4 (!%p188_p2), %v1398_v46  ;;  %vm971_vm5 = vcmask (!%p188_p2), 517120   ;;  %vm1006_vm6 = vcmask (!%p188_p2), 1041920  }
   0xa   : > { %v1364_v28 = vld [vmem:[%s1671_s1 + $0xb0] sm:$0xff] (!%p188_p2)   ;;  %v1366_v33 = vld [vmem:[%s1671_s1 + $0xb8] sm:$0xff] (!%p188_p2)   ;;  %v1369_v35 = vld [vmem:[%s1671_s1] sm:$0xff] (!%p188_p2)  }
   0xb   : > { %1235 = vmatpush3.bf16.msra.mxu0 (!%p188_p2), %v1354_v3  ;;  %vm1500_vm4 = vcmp.ge.s32.totalorder (!%p188_p2), %v230_v13, 1  ;;  %v1368_v37 = vld [vmem:[%s1671_s1 + $0xe0] sm:$0xff] (!%p188_p2)   ;;  %v1371_v38 = vld [vmem:[%s1671_s1 + $0x8] sm:$0xff] (!%p188_p2)   ;;  %v1373_v41 = vld [vmem:[%s1671_s1 + $0x10] sm:$0xff] (!%p188_p2)   ;;  %v998_v52 = vunpack.c.0.s8 (!%p188_p2), %v997_v47 }
   0xc   : > { %1247 = vmatpush3.bf16.msra.mxu1 (!%p188_p2), %v1355_v4  ;;  %1236 = vmatprep.subr.bf16.mxu0 (!%p188_p2), %v1396_v1  ;;  %v1370_v40 = vld [vmem:[%s1671_s1 + $0xe8] sm:$0xff] (!%p188_p2)   ;;  %v1182_v42 = vld [vmem:[%s1673_s3] ss:$0 sm:$0xff] (!%p188_p2)  ;;  %v1372_v49 = vld [vmem:[%s1671_s1 + $0xf0] sm:$0xff] (!%p188_p2)  }
   0xd   : > { %s1679_s19 = smov (!%p214_p3, %s1061_s19), 1  ;;  %1248 = vmatprep.subr.bf16.mxu1 %v1396_v1  ;;  %v1183_v43 = vld [vmem:[%s1674_s4] ss:$0 sm:$0xff]  ;;  %v1375_v50 = vld [vmem:[%s1671_s1 + $0x18] sm:$0xff]   ;;  %v1001_v54 = vsub.s32 %v998_v52, %v1473_v8  ;;  %v1379_v61 = vld [vmem:[%s1671_s1 + $0xc8] sm:$0xff]  }
   0xe   : > { %s1186_s30 = sshll.u32 %s1679_s19, 3  ;;  %v1374_v57 = vld [vmem:[%s1671_s1 + $0xf8] sm:$0xff]   ;;  %v1377_v58 = vld [vmem:[%s1671_s1 + $0xc0] sm:$0xff]   ;;  %v1378_v62 = vld [vmem:[%s1671_s1 + $0x48] sm:$0xff]   ;;  %s1068_s9 = sshll.u32 %s1679_s19, 1 }
   0xf   : > { %s1471_s10 = scalar_lea.vmem %s1670_s0, %s1186_s30  ;;  %1237 = vmatpush3.bf16.msra.mxu0 %v1356_v6  ;;  %v1376_v60 = vld [vmem:[%s1671_s1 + $0x40] sm:$0xff]   ;;  %v1381_v63 = vld [vmem:[%s1671_s1 + $0xd0] sm:$0xff]   ;;  %v1383_v3 = vld [vmem:[%s1671_s1 + $0xd8] sm:$0xff]   ;;  %s222_s12 = scalar_lea.vmem %s1675_s5, %s1068_s9 }
  0x10   : > { %v1477_v9 = vld [vmem:[%s1471_s10 + $0x2] sm:$0x3]  ;;  %1249 = vmatpush3.bf16.msra.mxu1 %v1357_v7  ;;  %1238 = vmatprep.subr.bf16.mxu0 %v1396_v1  ;;  %v1492_v14 = vld [vmem:[%s1471_s10 + $0x4] sm:$0x3]  ;;  %v241_v15 = vld [vmem:[%s1471_s10] sm:$0x3] }
  0x11   : > { %v257_v11 = vunpack.c.l.bf16 %v1477_v9  ;;  %1250 = vmatprep.subr.bf16.mxu1 %v1396_v1  ;;  %v486_v16 = vunpack.c.l.bf16 %v1492_v14  ;;  %v1518_v24 = vld [vmem:[%s1471_s10 + $0x6] sm:$0x3]  ;;  %v973_v31 = vmax.bf16 %v1477_v9, %v241_v15  ;;  %v1380_v2 = vld [vmem:[%s1671_s1 + $0x50] sm:$0xff]   ;;  %v1382_v6 = vld [vmem:[%s1671_s1 + $0x58] sm:$0xff]  }
  0x12   : > { %v644_v26 = vunpack.c.l.bf16 %v1518_v24  ;;  %v974_v32 = vmax.bf16 %v1518_v24, %v1492_v14  ;;  %v1181_v52 = vld [vmem:[%s1672_s2] ss:$0 sm:$0xff] }
  0x13   : > { %259 = vst.msk [vmem:[#allocation2 + $0x3] sm:$0xf] %vm258_vm2, %v257_v11  ;;  %1239 = vmatpush3.bf16.msra.mxu0 %v1358_v10  ;;  %v1385_v10 = vld [vmem:[%s1671_s1 + $0x108] sm:$0xff]   ;;  %v1386_v11 = vld [vmem:[%s1671_s1 + $0x110] sm:$0xff]  }
  0x14   : > { %1251 = vmatpush3.bf16.msra.mxu1 %v1359_v12  ;;  %1256 = vmatprep.subr.bf16.mxu0 %v1396_v1  ;;  %v975_v36 = vmax.bf16 %v974_v32, %v973_v31  ;;  %v1387_v12 = vld [vmem:[%s1671_s1 + $0x118] sm:$0xff]  }
  0x15   : > { %1268 = vmatprep.subr.bf16.mxu1 %v1396_v1 }
  0x16   : > { %v976_v39 = vunpack.c.l.bf16 %v975_v36 }
  0x17   : > { %1253 = vmatmul.mubr.msk.bf16.vlgmr.msra.gmra.mrb[0].mxu1 %vm298_vm3, %v241_v15 }
  0x18   : > { %1269 = vmatpush3.bf16.msra.mxu1 %v1361_v17  ;;  %1276 = vmatprep.mubr.msk.bf16.mxu1 %vm1397_vm0, %v1396_v1  ;;  %v984_v45 = vmul.f32 %v1182_v42, %v976_v39 }
  0x19   : > { %1270 = vmatprep.subr.bf16.mxu1 %v1396_v1 }
  0x1a   : > { %v260_v19 = vld [vmem:[#allocation2 + $0x2] sm:$0xf]  ;;  %v992_v48 = vadd.f32 %v1183_v43, %v984_v45 }
  0x1b   : > { %v263_v21 = vsel %vm1500_vm4, %v260_v19, 0.0  ;;  %487 = vst.msk [vmem:[#allocation2 + $0x3] sm:$0xf] %vm258_vm2, %v486_v16 }
  0x1c   : > { %v264_v23 = vpack.c.bf16 %v263_v21, %v263_v21  ;;  %1271 = vmatpush3.bf16.msra.mxu1 %v1363_v22  ;;  %v993_v53 = vmax.f32 %v992_v48, 0.0 }
  0x1d   : > { %1272 = vmatprep.subr.bf16.mxu1 %v1396_v1 }
  0x1e   : > { %1241 = vmatmul.mubr.msk.bf16.vlgmr.msra.gmra.mrb[0].mxu0 %vm298_vm3, %v264_v23  ;;  %v994_v56 = vpack.c.bf16 %v993_v53, %v993_v53 }
  0x1f   : > { %1257 = vmatpush3.bf16.msra.mxu0 %v1360_v20  ;;  %1264 = vmatprep.mubr.msk.bf16.mxu0 %vm1397_vm0, %v1396_v1 }
  0x20   : > { %1258 = vmatprep.subr.bf16.mxu0 %v1396_v1  ;;  %1273 = vmatpush3.bf16.msra.mxu1 %v1365_v27  ;;  %v1002_v59 = vrot.slane %v994_v56, %v1001_v54 }
  0x21   : > { %1274 = vmatprep.subr.bf16.mxu1 %v1396_v1 }
  0x22   : > { %v488_v29 = vld [vmem:[#allocation2 + $0x1] sm:$0xf]  ;;  %1003 = vrot.lane.b32.xlu0 %v1002_v59, %s1399_s7 }
  0x23   : > { %1259 = vmatpush3.bf16.msra.mxu0 %v1362_v25  ;;  %645 = vst.msk [vmem:[#allocation2 + $0x3] sm:$0xf] %vm258_vm2, %v644_v26  ;;  %v489_v34 = vpack.c.bf16 %v488_v29, %v488_v29 }
  0x24   : > { %1260 = vmatprep.subr.bf16.mxu0 %v1396_v1  ;;  %1275 = vmatpush3.bf16.msra.mxu1 %v1367_v30 }
  0x25   : > { %1292 = vmatprep.subr.bf16.mxu1 %v1396_v1 }
  0x27   : > { %1261 = vmatpush3.bf16.msra.mxu0 %v1364_v28  ;;  %1277 = vmatmul.mubr.msk.bf16.vlgmr.msra.gmra.mrb[4].mxu1 %vm298_vm3, %v489_v34 }
  0x28   : > { %1262 = vmatprep.subr.bf16.mxu0 %v1396_v1  ;;  %1293 = vmatpush3.bf16.msra.mxu1 %v1369_v35 }
  0x29   : > { %1294 = vmatprep.subr.bf16.mxu1 %v1396_v1  ;;  %1300 = vmatprep.mubr.msk.bf16.mxu1 %vm1397_vm0, %v1396_v1 }
  0x2a   : > { %v646_v44 = vld [vmem:[#allocation2] sm:$0xf] }
  0x2b   : > { %1263 = vmatpush3.bf16.msra.mxu0 %v1366_v33  ;;  %v647_v51 = vsel %vm1500_vm4, %v646_v44, 0.0  ;;  %v804_v0 = vld [vmem:[#allocation2 + $0x2] sm:$0xf] }
  0x2c   : > { %1280 = vmatprep.subr.bf16.mxu0 %v1396_v1  ;;  %1295 = vmatpush3.bf16.msra.mxu1 %v1371_v38  ;;  %v648_v55 = vpack.c.bf16 %v647_v51, %v647_v51  ;;  %v805_v4 = vsel %vm1500_vm4, %v804_v0, 0.0  ;;  %v725_v7 = vld [vmem:[#allocation2 + $0x1] sm:$0xf] }
  0x2d   : > { %1296 = vmatprep.subr.bf16.mxu1 %v1396_v1  ;;  %v806_v5 = vpack.c.bf16 %v805_v4, %v805_v4  ;;  %v726_v8 = vpack.c.bf16 %v725_v7, %v725_v7 }
  0x2e   : > { %1265 = vmatmul.mubr.msk.bf16.vlgmr.msra.gmra.mrb[4].mxu0 %vm298_vm3, %v1477_v9  ;;  %v1384_v9 = vld [vmem:[%s1671_s1 + $0x100] sm:$0xff]  }
  0x2f   : > { %1281 = vmatpush3.bf16.msra.mxu0 %v1368_v37  ;;  %1288 = vmatprep.mubr.msk.bf16.mxu0 %vm1397_vm0, %v1396_v1 }
  0x30   : > { %1282 = vmatprep.subr.bf16.mxu0 %v1396_v1  ;;  %1297 = vmatpush3.bf16.msra.mxu1 %v1373_v41 }
  0x31   : > { %1298 = vmatprep.subr.bf16.mxu1 %v1396_v1 }
  0x33   : > { %1283 = vmatpush3.bf16.msra.mxu0 %v1370_v40 }
  0x34   : > { %1284 = vmatprep.subr.bf16.mxu0 %v1396_v1  ;;  %1299 = vmatpush3.bf16.msra.mxu1 %v1375_v50 }
  0x35   : > { %1316 = vmatprep.subr.bf16.mxu1 %v1396_v1 }
  0x37   : > { %1285 = vmatpush3.bf16.msra.mxu0 %v1372_v49  ;;  %1301 = vmatmul.mubr.msk.bf16.vlgmr.msra.gmra.mrb[8].mxu1 %vm298_vm3, %v648_v55 }
  0x38   : > { %1286 = vmatprep.subr.bf16.mxu0 %v1396_v1  ;;  %1317 = vmatpush3.bf16.msra.mxu1 %v1377_v58 }
  0x39   : > { %1318 = vmatprep.subr.bf16.mxu1 %v1396_v1  ;;  %1324 = vmatprep.mubr.msk.bf16.mxu1 %vm1397_vm0, %v1396_v1 }
  0x3b   : > { %1287 = vmatpush3.bf16.msra.mxu0 %v1374_v57 }
  0x3c   : > { %1304 = vmatprep.subr.bf16.mxu0 %v1396_v1  ;;  %1319 = vmatpush3.bf16.msra.mxu1 %v1379_v61 }
  0x3d   : > { %1320 = vmatprep.subr.bf16.mxu1 %v1396_v1 }
  0x3e   : > { %1289 = vmatmul.mubr.msk.bf16.vlgmr.msra.gmra.mrb[8].mxu0 %vm298_vm3, %v1492_v14 }
  0x3f   : > { %1305 = vmatpush3.bf16.msra.mxu0 %v1376_v60  ;;  %1312 = vmatprep.mubr.msk.bf16.mxu0 %vm1397_vm0, %v1396_v1 }
  0x40   : > { %1306 = vmatprep.subr.bf16.mxu0 %v1396_v1  ;;  %1321 = vmatpush3.bf16.msra.mxu1 %v1381_v63 }
  0x41   : > { %1322 = vmatprep.subr.bf16.mxu1 %v1396_v1 }
  0x43   : > { %1307 = vmatpush3.bf16.msra.mxu0 %v1378_v62 }
  0x44   : > { %1308 = vmatprep.subr.bf16.mxu0 %v1396_v1  ;;  %1323 = vmatpush3.bf16.msra.mxu1 %v1383_v3 }
  0x47   : > { %1309 = vmatpush3.bf16.msra.mxu0 %v1380_v2  ;;  %1325 = vmatmul.mubr.msk.bf16.vlgmr.msra.gmra.mrb[12].mxu1 %vm298_vm3, %v806_v5 }
  0x48   : > { %1310 = vmatprep.subr.bf16.mxu0 %v1396_v1 }
  0x4b   : > { %1311 = vmatpush3.bf16.msra.mxu0 %v1382_v6 }
  0x4c   : > { %1328 = vmatprep.subr.bf16.mxu0 %v1396_v1 }
  0x4e   : > { %1313 = vmatmul.mubr.msk.bf16.vlgmr.msra.gmra.mrb[12].mxu0 %vm298_vm3, %v726_v8 }
  0x4f   : > { %1329 = vmatpush3.bf16.msra.mxu0 %v1384_v9  ;;  %1336 = vmatprep.mubr.msk.bf16.mxu0 %vm1397_vm0, %v1396_v1 }
  0x50   : > { %1330 = vmatprep.subr.bf16.mxu0 %v1396_v1 }
  0x53   : > { %1331 = vmatpush3.bf16.msra.mxu0 %v1385_v10 }
  0x54   : > { %1332 = vmatprep.subr.bf16.mxu0 %v1396_v1 }
  0x57   : > { %1333 = vmatpush3.bf16.msra.mxu0 %v1386_v11 }
  0x58   : > { %1334 = vmatprep.subr.bf16.mxu0 %v1396_v1 }
  0x5b   : > { %1335 = vmatpush3.bf16.msra.mxu0 %v1387_v12 }
  0x5e   : > { %1337 = vmatmul.mubr.msk.bf16.vlgmr.msra.gmra.mrb[16].mxu0 %vm298_vm3, %v1518_v24 }
  0x94   : > { %v1004_v60 = vpop.permute.xlu0 %1003 }
  0xea   : > { %v403_v13 = vpop.f32.mrb[0].mxu1 }
  0xeb   : > { %v1254_v14 = vpop.f32.mrb[1].mxu1 }
  0xec   : > { %v406_v15 = vpop.f32.mrb[2].mxu1 }
  0xed   : > { %v1255_v16 = vpop.f32.mrb[3].mxu1 }
  0xf1   : > { %v336_v17 = vpop.f32.mrb[0].mxu0 }
  0xf2   : > { %v404_v18 = vadd.f32 %v403_v13, %v336_v17  ;;  %v1242_v19 = vpop.f32.mrb[1].mxu0 }
  0xf3   : > { %v339_v20 = vpop.f32.mrb[2].mxu0 }
  0xf4   : > { %v1243_v21 = vpop.f32.mrb[3].mxu0 }
  0xfa   : > { %v560_v22 = vpop.f32.mrb[4].mxu1 }
  0xfb   : > { %v1278_v23 = vpop.f32.mrb[5].mxu1 }
  0xfc   : > { %v563_v25 = vpop.f32.mrb[6].mxu1 }
  0xfd   : > { %v1279_v26 = vpop.f32.mrb[7].mxu1 }
 0x101   : > { %v479_v27 = vpop.f32.mrb[4].mxu0 }
 0x102   : > { %v485_v28 = vadd.f32 %v479_v27, %v404_v18  ;;  %v1266_v1 = vpop.f32.mrb[5].mxu0 }
 0x103   : > { %v482_v29 = vpop.f32.mrb[6].mxu0 }
 0x104   : > { %v566_v30 = vadd.f32 %v560_v22, %v485_v28  ;;  %v1267_v31 = vpop.f32.mrb[7].mxu0 }
 0x10a   : > { %v718_v24 = vpop.f32.mrb[8].mxu1 }
 0x10b   : > { %v1302_v32 = vpop.f32.mrb[9].mxu1 }
 0x10c   : > { %v721_v33 = vpop.f32.mrb[10].mxu1 }
 0x10d   : > { %v1303_v34 = vpop.f32.mrb[11].mxu1 }
 0x111   : > { %v637_v35 = vpop.f32.mrb[8].mxu0 }
 0x112   : > { %v643_v36 = vadd.f32 %v637_v35, %v566_v30  ;;  %v1290_v37 = vpop.f32.mrb[9].mxu0 }
 0x113   : > { %v640_v38 = vpop.f32.mrb[10].mxu0 }
 0x114   : > { %v724_v39 = vadd.f32 %v718_v24, %v643_v36  ;;  %v1291_v40 = vpop.f32.mrb[11].mxu0 }
 0x11a   : > { %v877_v41 = vpop.f32.mrb[12].mxu1 }
 0x11b   : > { %v1326_v42 = vpop.f32.mrb[13].mxu1 }
 0x11c   : > { %v880_v43 = vpop.f32.mrb[14].mxu1 }
 0x11d   : > { %v1327_v44 = vpop.f32.mrb[15].mxu1 }
 0x121   : > { %v797_v45 = vpop.f32.mrb[12].mxu0 }
 0x122   : > { %v803_v46 = vadd.f32 %v797_v45, %v724_v39  ;;  %v1314_v47 = vpop.f32.mrb[13].mxu0 }
 0x123   : > { %v800_v48 = vpop.f32.mrb[14].mxu0 }
 0x124   : > { %v883_v49 = vadd.f32 %v877_v41, %v803_v46  ;;  %v1315_v50 = vpop.f32.mrb[15].mxu0 }
 0x131   : > { %v954_v51 = vpop.f32.mrb[16].mxu0 }
 0x132   : > { %v960_v53 = vadd.f32 %v954_v51, %v883_v49  ;;  %v1338_v54 = vpop.f32.mrb[17].mxu0 }
 0x133   : > { %v957_v55 = vpop.f32.mrb[18].mxu0 }
 0x134   : > { %v968_v56 = vadd.f32 %v1181_v52, %v960_v53  ;;  %v1339_v57 = vpop.f32.mrb[19].mxu0 }
 0x136   : > { %v969_v58 = vmax.f32 %v968_v56, 0.0 }
 0x138   : > { %v970_v59 = vpack.c.bf16 %v969_v58, %v969_v58 }
 0x13a   : > { %972 = vst.msk [vmem:[%s222_s12] sm:$0x3] %vm971_vm5, %v970_v59 }
 0x13b   : > { %1007 = vst.msk [vmem:[%s222_s12] sm:$0x3] %vm1006_vm6, %v1004_v60 }
 0x13c PF: > { %s15_s18 = sadd.s32 1, %s1394_s18  }
 0x13d   : > { %p12_p4 = scmp.ge.s32.totalorder %s15_s18, 4  }
 0x13f   :  { %14 = sbr.rel (!%p12_p4) target bundleno = 1 (0x1), region = 81 }

// kernel: encoder_forward.27
= control target key start
LH: loop header
LB: loop body
LE: loop exit
PB: predicated region body
PF: predicated region fallthrough
CT: control target
= control target key end

     0   :  { %s1770_s24 = smov 0   ;;  %s2085_s0 = inlined_call_operand.vmem [shape: bf16[2,4,128], index: 0, kind: input, shape index: {}]   ;;  %s2086_s1 = inlined_call_operand.vmem [shape: bf16[3,128,128], index: 1, kind: input, shape index: {}]   ;;  %s2087_s2 = inlined_call_operand.vmem [shape: bf16[3,128,128], index: 2, kind: input, shape index: {}]   ;;  %s2088_s3 = inlined_call_operand.vmem [shape: bf16[3,128,128], index: 3, kind: input, shape index: {}]   ;;  %s2089_s4 = inlined_call_operand.vmem [shape: bf16[3,128,128], index: 4, kind: input, shape index: {}]   ;;  %s2090_s5 = inlined_call_operand.vmem [shape: f32[1,128], index: 5, kind: input, shape index: {}]   ;;  %s2091_s6 = inlined_call_operand.vmem [shape: f32[1,128], index: 6, kind: input, shape index: {}]   ;;  %s2092_s7 = inlined_call_operand.vmem [shape: bf16[2,4,128], index: 7, kind: output, shape index: {}]  }
   0x1 LB: > { %s1229_s25 = sadd.s32 4294967295, %s1726_s24   ;;  %p1233_p0 = scmp.ge.s32.totalorder %s1726_s24, 1  ;;  %s1726_s24 = sphi %s1770_s24, %s17_s24  }
   0x2   : > { %p236_p1 = scmp.lt.s32.totalorder %s1726_s24, 3 }
   0x4   : > { %p237_p2 = pnand %p1233_p0, %p236_p1 }
   0x5   : > { %v1656_v0 = vld [vmem:[%s2086_s1] sm:$0xff] (!%p237_p2)   ;;  %v1728_v1 = vmov (!%p237_p2), 0.0   ;;  %v1657_v2 = vld [vmem:[%s2086_s1 + $0x8] sm:$0xff] (!%p237_p2)   ;;  %vm1729_vm0 = vmmov (!%p237_p2), 0   ;;  %p266_p3 = scmp.lt.s32.totalorder (!%p237_p2), %s1229_s25, 1  ;;  %v1658_v3 = vld [vmem:[%s2086_s1 + $0x10] sm:$0xff] (!%p237_p2)   ;;  %v275_v39 = vlaneseq (!%p237_p2) }
   0x6   : > { %240 = sbr.rel (%p237_p2) target bundleno = 1047 (0x417), region = 48  ;;  %1478 = vmatprep.subr.bf16.mxu0 (!%p237_p2), %v1728_v1  ;;  %289 = vst [vmem:[#allocation2] sm:$0x3] (!%p237_p2), %v1728_v1  ;;  %290 = vst [vmem:[#allocation2 + $0x6] sm:$0x3] (!%p237_p2), %v1728_v1  ;;  %1538 = vmatprep.subr.bf16.mxu1 (!%p237_p2), %v1728_v1  ;;  %v1659_v6 = vld [vmem:[%s2086_s1 + $0x18] sm:$0xff] (!%p237_p2)  }
   0x7   : > { %1479 = vmatpush3.bf16.msra.mxu0 (!%p237_p2), %v1656_v0  ;;  %1494 = vmatprep.mubr.msk.bf16.mxu0 (!%p237_p2), %vm1729_vm0, %v1728_v1  ;;  %v1660_v7 = vld [vmem:[%s2086_s1 + $0x20] sm:$0xff] (!%p237_p2)   ;;  %v1661_v8 = vld [vmem:[%s2086_s1 + $0x28] sm:$0xff] (!%p237_p2)   ;;  %v1662_v9 = vld [vmem:[%s2086_s1 + $0x30] sm:$0xff] (!%p237_p2)   ;;  %v1934_v40 = vshrl.u32 (!%p237_p2), %v275_v39, 7 }
   0x8   : > { %1480 = vmatprep.subr.bf16.mxu0 (!%p237_p2), %v1728_v1  ;;  %1554 = vmatprep.mubr.msk.bf16.mxu1 (!%p237_p2), %vm1729_vm0, %v1728_v1  ;;  %v1663_v10 = vld [vmem:[%s2086_s1 + $0x38] sm:$0xff] (!%p237_p2)   ;;  %v1680_v11 = vld [vmem:[%s2087_s2] sm:$0xff] (!%p237_p2)   ;;  %v1681_v13 = vld [vmem:[%s2087_s2 + $0x8] sm:$0xff] (!%p237_p2)  }
   0x9   : > { %1539 = vmatpush3.bf16.msra.mxu1 (!%p237_p2), %v1680_v11  ;;  %v1664_v14 = vld [vmem:[%s2086_s1 + $0x40] sm:$0xff] (!%p237_p2)   ;;  %v1682_v16 = vld [vmem:[%s2087_s2 + $0x10] sm:$0xff] (!%p237_p2)   ;;  %v1665_v17 = vld [vmem:[%s2086_s1 + $0x48] sm:$0xff] (!%p237_p2)   ;;  %v281_v46 = vand.u32 (!%p237_p2), 1, %v1934_v40 }
   0xa   : > { %1540 = vmatprep.subr.bf16.mxu1 (!%p237_p2), %v1728_v1  ;;  %v1683_v18 = vld [vmem:[%s2087_s2 + $0x18] sm:$0xff] (!%p237_p2)   ;;  %v1666_v19 = vld [vmem:[%s2086_s1 + $0x50] sm:$0xff] (!%p237_p2)   ;;  %v1684_v20 = vld [vmem:[%s2087_s2 + $0x20] sm:$0xff] (!%p237_p2)  }
   0xb   : > { %1481 = vmatpush3.bf16.msra.mxu0 (!%p237_p2), %v1657_v2  ;;  %v1667_v21 = vld [vmem:[%s2086_s1 + $0x58] sm:$0xff] (!%p237_p2)   ;;  %v1668_v22 = vld [vmem:[%s2086_s1 + $0x60] sm:$0xff] (!%p237_p2)   ;;  %v1669_v23 = vld [vmem:[%s2086_s1 + $0x68] sm:$0xff] (!%p237_p2)   ;;  %vm614_vm1 = vcmp.ge.s32.totalorder (!%p237_p2), %v281_v46, 1  ;;  %vm615_vm3 = vcmp.lt.s32.totalorder (!%p237_p2), %v281_v46, 1 }
   0xc   : > { %1482 = vmatprep.subr.bf16.mxu0 (!%p237_p2), %v1728_v1  ;;  %v1670_v24 = vld [vmem:[%s2086_s1 + $0x70] sm:$0xff] (!%p237_p2)   ;;  %v1671_v25 = vld [vmem:[%s2086_s1 + $0x78] sm:$0xff] (!%p237_p2)   ;;  %v1672_v26 = vld [vmem:[%s2086_s1 + $0x80] sm:$0xff] (!%p237_p2)  }
   0xd   : > { %s2094_s25 = smov (!%p266_p3, %s1229_s25), 1  ;;  %1541 = vmatpush3.bf16.msra.mxu1 %v1681_v13  ;;  %v1673_v27 = vld [vmem:[%s2086_s1 + $0x88] sm:$0xff]   ;;  %v1674_v28 = vld [vmem:[%s2086_s1 + $0x90] sm:$0xff]   ;;  %v1675_v29 = vld [vmem:[%s2086_s1 + $0x98] sm:$0xff]  }
   0xe   : > { %s1234_s9 = sshll.u32 %s2094_s25, 1  ;;  %1542 = vmatprep.subr.bf16.mxu1 %v1728_v1  ;;  %v1676_v30 = vld [vmem:[%s2086_s1 + $0xa0] sm:$0xff]   ;;  %v1677_v31 = vld [vmem:[%s2086_s1 + $0xa8] sm:$0xff]   ;;  %v1678_v32 = vld [vmem:[%s2086_s1 + $0xb0] sm:$0xff]  }
   0xf   : > { %s269_s12 = scalar_lea.vmem %s2085_s0, %s1234_s9  ;;  %1483 = vmatpush3.bf16.msra.mxu0 %v1658_v3  ;;  %v1679_v33 = vld [vmem:[%s2086_s1 + $0xb8] sm:$0xff]   ;;  %v1685_v36 = vld [vmem:[%s2087_s2 + $0x28] sm:$0xff]   ;;  %v1686_v37 = vld [vmem:[%s2087_s2 + $0x30] sm:$0xff]   ;;  %s273_s21 = scalar_lea.vmem %s2092_s7, %s1234_s9 }
  0x10   : > { %v1805_v4 = vld [vmem:[%s269_s12] sm:$0x3]  ;;  %1484 = vmatprep.subr.bf16.mxu0 %v1728_v1  ;;  %v1687_v38 = vld [vmem:[%s2087_s2 + $0x38] sm:$0xff]   ;;  %vm1316_vm2 = vmpackc.low %vm614_vm1, %vm614_vm1 }
  0x11   : > { %v292_v5 = vunpack.c.l.bf16 %v1805_v4  ;;  %1543 = vmatpush3.bf16.msra.mxu1 %v1682_v16  ;;  %v1688_v48 = vld [vmem:[%s2087_s2 + $0x40] sm:$0xff]   ;;  %v1689_v50 = vld [vmem:[%s2087_s2 + $0x48] sm:$0xff]   ;;  %v1690_v51 = vld [vmem:[%s2087_s2 + $0x50] sm:$0xff]  }
  0x12   : > { %1544 = vmatprep.subr.bf16.mxu1 %v1728_v1  ;;  %v1691_v52 = vld [vmem:[%s2087_s2 + $0x58] sm:$0xff]   ;;  %v1692_v53 = vld [vmem:[%s2087_s2 + $0x60] sm:$0xff]   ;;  %v1693_v54 = vld [vmem:[%s2087_s2 + $0x68] sm:$0xff]  }
  0x13   : > { %310 = vst [vmem:[#allocation2 + $0x2] sm:$0xf] %v292_v5  ;;  %1485 = vmatpush3.bf16.msra.mxu0 %v1659_v6  ;;  %v1694_v55 = vld [vmem:[%s2087_s2 + $0x70] sm:$0xff]   ;;  %v1695_v56 = vld [vmem:[%s2087_s2 + $0x78] sm:$0xff]   ;;  %v1696_v57 = vld [vmem:[%s2087_s2 + $0x80] sm:$0xff]  }
  0x14   : > { %1486 = vmatprep.subr.bf16.mxu0 %v1728_v1  ;;  %v1697_v59 = vld [vmem:[%s2087_s2 + $0x88] sm:$0xff]   ;;  %v1698_v60 = vld [vmem:[%s2087_s2 + $0x90] sm:$0xff]   ;;  %v1699_v61 = vld [vmem:[%s2087_s2 + $0x98] sm:$0xff]  }
  0x15   : > { %1545 = vmatpush3.bf16.msra.mxu1 %v1683_v18  ;;  %v1700_v62 = vld [vmem:[%s2087_s2 + $0xa0] sm:$0xff]   ;;  %v1701_v63 = vld [vmem:[%s2087_s2 + $0xa8] sm:$0xff]   ;;  %v1702_v0 = vld [vmem:[%s2087_s2 + $0xb0] sm:$0xff]  }
  0x16   : > { %1546 = vmatprep.subr.bf16.mxu1 %v1728_v1  ;;  %v1703_v2 = vld [vmem:[%s2087_s2 + $0xb8] sm:$0xff]   ;;  %vm1351_vm4 = vmpackc.low %vm615_vm3, %vm615_vm3  ;;  %v1708_v11 = vld [vmem:[%s2088_s3 + $0x60] sm:$0xff]  }
  0x17   : > { %1487 = vmatpush3.bf16.msra.mxu0 %v1660_v7  ;;  %v1704_v7 = vld [vmem:[%s2088_s3 + $0x40] sm:$0xff]   ;;  %v1710_v13 = vld [vmem:[%s2088_s3 + $0x70] sm:$0xff]   ;;  %v1713_v16 = vld [vmem:[%s2089_s4 + $0x48] sm:$0xff]  }
  0x18   : > { %1488 = vmatprep.subr.bf16.mxu0 %v1728_v1  ;;  %v1715_v18 = vld [vmem:[%s2089_s4 + $0x58] sm:$0xff]   ;;  %v1395_v46 = vld [vmem:[%s2091_s6] ss:$0 sm:$0xff] }
  0x19   : > { %1547 = vmatpush3.bf16.msra.mxu1 %v1684_v20  ;;  %v1717_v20 = vld [vmem:[%s2089_s4 + $0x68] sm:$0xff]   ;;  %v1719_v39 = vld [vmem:[%s2089_s4 + $0x78] sm:$0xff]  }
  0x1a   : > { %v311_v12 = vld [vmem:[#allocation2] sm:$0xf]  ;;  %1548 = vmatprep.subr.bf16.mxu1 %v1728_v1  ;;  %v505_v34 = vld [vmem:[#allocation2 + $0x4] sm:$0xf] }
  0x1b   : > { %1489 = vmatpush3.bf16.msra.mxu0 %v1661_v8  ;;  %v312_v15 = vpack.c.bf16 %v311_v12, %v311_v12  ;;  %v506_v35 = vpack.c.bf16 %v505_v34, %v505_v34  ;;  %v1705_v8 = vld [vmem:[%s2088_s3 + $0x48] sm:$0xff]  }
  0x1c   : > { %1490 = vmatprep.subr.bf16.mxu0 %v1728_v1  ;;  %v1709_v12 = vld [vmem:[%s2088_s3 + $0x68] sm:$0xff]  }
  0x1d   : > { %1549 = vmatpush3.bf16.msra.mxu1 %v1685_v36 }
  0x1e   : > { %1550 = vmatprep.subr.bf16.mxu1 %v1728_v1 }
  0x1f   : > { %1491 = vmatpush3.bf16.msra.mxu0 %v1662_v9  ;;  %v1706_v9 = vld [vmem:[%s2088_s3 + $0x50] sm:$0xff]  }
  0x20   : > { %1492 = vmatprep.subr.bf16.mxu0 %v1728_v1 }
  0x21   : > { %1551 = vmatpush3.bf16.msra.mxu1 %v1686_v37 }
  0x22   : > { %1552 = vmatprep.subr.bf16.mxu1 %v1728_v1 }
  0x23   : > { %1493 = vmatpush3.bf16.msra.mxu0 %v1663_v10  ;;  %v1707_v10 = vld [vmem:[%s2088_s3 + $0x58] sm:$0xff]  }
  0x24   : > { %1498 = vmatprep.subr.bf16.mxu0 %v1728_v1 }
  0x25   : > { %1553 = vmatpush3.bf16.msra.mxu1 %v1687_v38 }
  0x26   : > { %1495 = vmatmul.mubr.bf16.vlgmr.msra.gmra.mrb[0].mxu0 %v312_v15  ;;  %1558 = vmatprep.subr.bf16.mxu1 %v1728_v1  ;;  %v1712_v15 = vld [vmem:[%s2089_s4 + $0x40] sm:$0xff]  }
  0x27   : > { %1499 = vmatpush3.bf16.msra.mxu0 %v1664_v14  ;;  %1514 = vmatprep.mubr.msk.bf16.mxu0 %vm1729_vm0, %v1728_v1  ;;  %v1711_v14 = vld [vmem:[%s2088_s3 + $0x78] sm:$0xff]  }
  0x28   : > { %1500 = vmatprep.subr.bf16.mxu0 %v1728_v1 }
  0x2b   : > { %1501 = vmatpush3.bf16.msra.mxu0 %v1665_v17  ;;  %v1714_v17 = vld [vmem:[%s2089_s4 + $0x50] sm:$0xff]  }
  0x2c   : > { %1502 = vmatprep.subr.bf16.mxu0 %v1728_v1 }
  0x2f   : > { %1503 = vmatpush3.bf16.msra.mxu0 %v1666_v19  ;;  %v1716_v19 = vld [vmem:[%s2089_s4 + $0x60] sm:$0xff]  }
  0x30   : > { %1504 = vmatprep.subr.bf16.mxu0 %v1728_v1 }
  0x33   : > { %1505 = vmatpush3.bf16.msra.mxu0 %v1667_v21  ;;  %v1718_v21 = vld [vmem:[%s2089_s4 + $0x70] sm:$0xff]  }
  0x34   : > { %1506 = vmatprep.subr.bf16.mxu0 %v1728_v1 }
  0x37   : > { %1507 = vmatpush3.bf16.msra.mxu0 %v1668_v22 }
  0x38   : > { %1508 = vmatprep.subr.bf16.mxu0 %v1728_v1 }
  0x3b   : > { %1509 = vmatpush3.bf16.msra.mxu0 %v1669_v23 }
  0x3c   : > { %1510 = vmatprep.subr.bf16.mxu0 %v1728_v1 }
  0x3f   : > { %1511 = vmatpush3.bf16.msra.mxu0 %v1670_v24 }
  0x40   : > { %1512 = vmatprep.subr.bf16.mxu0 %v1728_v1 }
  0x43   : > { %1513 = vmatpush3.bf16.msra.mxu0 %v1671_v25 }
  0x44   : > { %1518 = vmatprep.subr.bf16.mxu0 %v1728_v1 }
  0x46   : > { %1515 = vmatmul.mubr.bf16.vlgmr.msra.gmra.mrb[0].mxu0 %v1805_v4 }
  0x47   : > { %1519 = vmatpush3.bf16.msra.mxu0 %v1672_v26  ;;  %1534 = vmatprep.mubr.msk.bf16.mxu0 %vm1729_vm0, %v1728_v1 }
  0x48   : > { %1520 = vmatprep.subr.bf16.mxu0 %v1728_v1 }
  0x4b   : > { %1521 = vmatpush3.bf16.msra.mxu0 %v1673_v27 }
  0x4c   : > { %1522 = vmatprep.subr.bf16.mxu0 %v1728_v1 }
  0x4f   : > { %1523 = vmatpush3.bf16.msra.mxu0 %v1674_v28 }
  0x50   : > { %1524 = vmatprep.subr.bf16.mxu0 %v1728_v1 }
  0x53   : > { %1525 = vmatpush3.bf16.msra.mxu0 %v1675_v29 }
  0x54   : > { %1526 = vmatprep.subr.bf16.mxu0 %v1728_v1 }
  0x57   : > { %1527 = vmatpush3.bf16.msra.mxu0 %v1676_v30 }
  0x58   : > { %1528 = vmatprep.subr.bf16.mxu0 %v1728_v1 }
  0x5b   : > { %1529 = vmatpush3.bf16.msra.mxu0 %v1677_v31 }
  0x5c   : > { %1530 = vmatprep.subr.bf16.mxu0 %v1728_v1 }
  0x5f   : > { %1531 = vmatpush3.bf16.msra.mxu0 %v1678_v32  ;;  %v1354_v32 = vld [vmem:[%s2090_s5] ss:$0 sm:$0xff] }
  0x60   : > { %1532 = vmatprep.subr.bf16.mxu0 %v1728_v1 }
  0x63   : > { %1533 = vmatpush3.bf16.msra.mxu0 %v1679_v33 }
  0x64   : > { %1598 = vmatprep.subr.bf16.mxu0 %v1728_v1 }
  0x66   : > { %1535 = vmatmul.mubr.bf16.vlgmr.msra.gmra.mrb[0].mxu0 %v506_v35 }
  0x67   : > { %1614 = vmatprep.mubr.msk.bf16.mxu0 %vm1729_vm0, %v1728_v1  ;;  %1599 = vmatpush3.bf16.msra.mxu0 %v1704_v7 }
  0x68   : > { %1600 = vmatprep.subr.bf16.mxu0 %v1728_v1 }
  0x6b   : > { %1601 = vmatpush3.bf16.msra.mxu0 %v1705_v8 }
  0x6c   : > { %1602 = vmatprep.subr.bf16.mxu0 %v1728_v1 }
  0x6f   : > { %1603 = vmatpush3.bf16.msra.mxu0 %v1706_v9 }
  0x70   : > { %1604 = vmatprep.subr.bf16.mxu0 %v1728_v1 }
  0x73   : > { %1605 = vmatpush3.bf16.msra.mxu0 %v1707_v10 }
  0x74   : > { %1606 = vmatprep.subr.bf16.mxu0 %v1728_v1 }
  0x77   : > { %1607 = vmatpush3.bf16.msra.mxu0 %v1708_v11 }
  0x78   : > { %1608 = vmatprep.subr.bf16.mxu0 %v1728_v1 }
  0x7b   : > { %1609 = vmatpush3.bf16.msra.mxu0 %v1709_v12 }
  0x7c   : > { %1610 = vmatprep.subr.bf16.mxu0 %v1728_v1 }
  0x7f   : > { %1611 = vmatpush3.bf16.msra.mxu0 %v1710_v13 }
  0x80   : > { %1612 = vmatprep.subr.bf16.mxu0 %v1728_v1 }
  0x83   : > { %1613 = vmatpush3.bf16.msra.mxu0 %v1711_v14 }
 0x139   : > { %v606_v41 = vpop.f32.mrb[0].mxu0 }
 0x13a   : > { %v613_v42 = vmax.f32 %v606_v41, 0.0  ;;  %v1536_v43 = vpop.f32.mrb[1].mxu0 }
 0x13b   : > { %v609_v44 = vpop.f32.mrb[2].mxu0 }
 0x13c   : > { %634 = vst [vmem:[#allocation2 + $0x2] sm:$0xf] %v613_v42  ;;  %v1537_v45 = vpop.f32.mrb[3].mxu0  ;;  %v616_v58 = vpack.c.bf16 %v613_v42, %v613_v42 }
 0x143   : > { %v635_v47 = vld [vmem:[#allocation2 + $0x1] sm:$0xf] }
 0x144   : > { %v1317_v49 = vpack.c.bf16 %v635_v47, %v635_v47  ;;  %v832_v3 = vld [vmem:[#allocation2 + $0x3] sm:$0xf] }
 0x145   : > { %v1352_v6 = vpack.c.bf16 %v832_v3, %v832_v3 }
 0x146   : > { %1555 = vmatmul.mubr.msk.bf16.vlgmr.msra.gmra.mrb[0].mxu1 %vm1316_vm2, %v1317_v49 }
 0x147   : > { %1559 = vmatpush3.bf16.msra.mxu1 %v1688_v48  ;;  %1574 = vmatprep.mubr.msk.bf16.mxu1 %vm1729_vm0, %v1728_v1 }
 0x148   : > { %1560 = vmatprep.subr.bf16.mxu1 %v1728_v1 }
 0x14b   : > { %1561 = vmatpush3.bf16.msra.mxu1 %v1689_v50 }
 0x14c   : > { %1562 = vmatprep.subr.bf16.mxu1 %v1728_v1 }
 0x14f   : > { %1563 = vmatpush3.bf16.msra.mxu1 %v1690_v51 }
 0x150   : > { %1564 = vmatprep.subr.bf16.mxu1 %v1728_v1 }
 0x153   : > { %1565 = vmatpush3.bf16.msra.mxu1 %v1691_v52 }
 0x154   : > { %1566 = vmatprep.subr.bf16.mxu1 %v1728_v1 }
 0x157   : > { %1567 = vmatpush3.bf16.msra.mxu1 %v1692_v53 }
 0x158   : > { %1568 = vmatprep.subr.bf16.mxu1 %v1728_v1 }
 0x15b   : > { %1569 = vmatpush3.bf16.msra.mxu1 %v1693_v54 }
 0x15c   : > { %1570 = vmatprep.subr.bf16.mxu1 %v1728_v1 }
 0x15f   : > { %1571 = vmatpush3.bf16.msra.mxu1 %v1694_v55 }
 0x160   : > { %1572 = vmatprep.subr.bf16.mxu1 %v1728_v1 }
 0x163   : > { %1573 = vmatpush3.bf16.msra.mxu1 %v1695_v56 }
 0x164   : > { %1578 = vmatprep.subr.bf16.mxu1 %v1728_v1 }
 0x166   : > { %1575 = vmatmul.mubr.bf16.vlgmr.msra.gmra.mrb[4].mxu1 %v616_v58 }
 0x167   : > { %1579 = vmatpush3.bf16.msra.mxu1 %v1696_v57  ;;  %1594 = vmatprep.mubr.msk.bf16.mxu1 %vm1729_vm0, %v1728_v1 }
 0x168   : > { %1580 = vmatprep.subr.bf16.mxu1 %v1728_v1 }
 0x16b   : > { %1581 = vmatpush3.bf16.msra.mxu1 %v1697_v59 }
 0x16c   : > { %1582 = vmatprep.subr.bf16.mxu1 %v1728_v1 }
 0x16f   : > { %1583 = vmatpush3.bf16.msra.mxu1 %v1698_v60 }
 0x170   : > { %1584 = vmatprep.subr.bf16.mxu1 %v1728_v1 }
 0x173   : > { %1585 = vmatpush3.bf16.msra.mxu1 %v1699_v61 }
 0x174   : > { %1586 = vmatprep.subr.bf16.mxu1 %v1728_v1 }
 0x177   : > { %1587 = vmatpush3.bf16.msra.mxu1 %v1700_v62 }
 0x178   : > { %1588 = vmatprep.subr.bf16.mxu1 %v1728_v1 }
 0x17b   : > { %1589 = vmatpush3.bf16.msra.mxu1 %v1701_v63 }
 0x17c   : > { %1590 = vmatprep.subr.bf16.mxu1 %v1728_v1 }
 0x17f   : > { %1591 = vmatpush3.bf16.msra.mxu1 %v1702_v0 }
 0x180   : > { %1592 = vmatprep.subr.bf16.mxu1 %v1728_v1 }
 0x183   : > { %1593 = vmatpush3.bf16.msra.mxu1 %v1703_v2 }
 0x184   : > { %1618 = vmatprep.subr.bf16.mxu1 %v1728_v1 }
 0x186   : > { %1595 = vmatmul.mubr.msk.bf16.vlgmr.msra.gmra.mrb[8].mxu1 %vm1351_vm4, %v1352_v6 }
 0x187   : > { %1634 = vmatprep.mubr.msk.bf16.mxu1 %vm1729_vm0, %v1728_v1  ;;  %1619 = vmatpush3.bf16.msra.mxu1 %v1712_v15 }
 0x188   : > { %1620 = vmatprep.subr.bf16.mxu1 %v1728_v1 }
 0x18b   : > { %1621 = vmatpush3.bf16.msra.mxu1 %v1713_v16 }
 0x18c   : > { %1622 = vmatprep.subr.bf16.mxu1 %v1728_v1 }
 0x18f   : > { %1623 = vmatpush3.bf16.msra.mxu1 %v1714_v17 }
 0x190   : > { %1624 = vmatprep.subr.bf16.mxu1 %v1728_v1 }
 0x193   : > { %1625 = vmatpush3.bf16.msra.mxu1 %v1715_v18 }
 0x194   : > { %1626 = vmatprep.subr.bf16.mxu1 %v1728_v1 }
 0x197   : > { %1627 = vmatpush3.bf16.msra.mxu1 %v1716_v19 }
 0x198   : > { %1628 = vmatprep.subr.bf16.mxu1 %v1728_v1 }
 0x19b   : > { %1629 = vmatpush3.bf16.msra.mxu1 %v1717_v20 }
 0x19c   : > { %1630 = vmatprep.subr.bf16.mxu1 %v1728_v1 }
 0x19f   : > { %1631 = vmatpush3.bf16.msra.mxu1 %v1718_v21 }
 0x1a0   : > { %1632 = vmatprep.subr.bf16.mxu1 %v1728_v1 }
 0x1a3   : > { %1633 = vmatpush3.bf16.msra.mxu1 %v1719_v39 }
 0x219   : > { %v738_v22 = vpop.f32.mrb[0].mxu1 }
 0x21a   : > { %v1556_v23 = vpop.f32.mrb[1].mxu1 }
 0x21b   : > { %v741_v24 = vpop.f32.mrb[2].mxu1 }
 0x21c   : > { %v1557_v25 = vpop.f32.mrb[3].mxu1 }
 0x239   : > { %v826_v26 = vpop.f32.mrb[4].mxu1 }
 0x23a   : > { %v827_v27 = vadd.f32 %v826_v26, %v738_v22  ;;  %v1576_v28 = vpop.f32.mrb[5].mxu1 }
 0x23b   : > { %v829_v29 = vpop.f32.mrb[6].mxu1 }
 0x23c   : > { %v1577_v30 = vpop.f32.mrb[7].mxu1 }
 0x259   : > { %v936_v31 = vpop.f32.mrb[8].mxu1 }
 0x25a   : > { %v942_v33 = vadd.f32 %v936_v31, %v827_v27  ;;  %v1596_v34 = vpop.f32.mrb[9].mxu1 }
 0x25b   : > { %v939_v35 = vpop.f32.mrb[10].mxu1 }
 0x25c   : > { %v950_v36 = vadd.f32 %v1354_v32, %v942_v33  ;;  %v1597_v37 = vpop.f32.mrb[11].mxu1 }
 0x25e   : > { %v951_v1 = vmax.f32 %v950_v36, 0.0 }
 0x260   : > { %v952_v38 = vpack.c.bf16 %v951_v1, %v951_v1 }
 0x262   : > { %1615 = vmatmul.mubr.bf16.vlgmr.msra.gmra.mrb[4].mxu0 %v952_v38 }
 0x335   : > { %v1052_v40 = vpop.f32.mrb[4].mxu0 }
 0x336   : > { %v1058_v41 = vmax.f32 %v1052_v40, 0.0  ;;  %v1616_v42 = vpop.f32.mrb[5].mxu0 }
 0x337   : > { %v1055_v43 = vpop.f32.mrb[6].mxu0 }
 0x338   : > { %v1059_v44 = vpack.c.bf16 %v1058_v41, %v1058_v41  ;;  %v1617_v45 = vpop.f32.mrb[7].mxu0 }
 0x33a   : > { %1635 = vmatmul.mubr.bf16.vlgmr.msra.gmra.mrb[12].mxu1 %v1059_v44 }
 0x40d   : > { %v1166_v47 = vpop.f32.mrb[12].mxu1 }
 0x40e   : > { %v1167_v48 = vadd.f32 %v1395_v46, %v1166_v47  ;;  %v1636_v49 = vpop.f32.mrb[13].mxu1 }
 0x40f   : > { %v1169_v50 = vpop.f32.mrb[14].mxu1 }
 0x410   : > { %v1172_v51 = vadd.f32 %v1167_v48, %v292_v5  ;;  %v1637_v52 = vpop.f32.mrb[15].mxu1 }
 0x412   : > { %v1173_v53 = vmax.f32 %v1172_v51, 0.0 }
 0x414   : > { %v1174_v54 = vpack.c.bf16 %v1173_v53, %v1173_v53 }
 0x416   : > { %1175 = vst [vmem:[%s273_s21] sm:$0x3] %v1174_v54 }
 0x417 PF: > { %s17_s24 = sadd.s32 1, %s1726_s24  }
 0x418   : > { %p14_p4 = scmp.ge.s32.totalorder %s17_s24, 4  }
 0x41a   :  { %16 = sbr.rel (!%p14_p4) target bundleno = 1 (0x1), region = 84 }

// kernel: encoder_forward.35
= control target key start
LH: loop header
LB: loop body
LE: loop exit
PB: predicated region body
PF: predicated region fallthrough
CT: control target
= control target key end

     0   :  { %s1827_s12 = smov 0   ;;  %s2185_s0 = inlined_call_operand.vmem [shape: bf16[2,4,128], index: 0, kind: input, shape index: {}]   ;;  %s2186_s1 = inlined_call_operand.vmem [shape: bf16[9,128,64], index: 1, kind: input, shape index: {}]   ;;  %s2187_s2 = inlined_call_operand.vmem [shape: f32[1,64], index: 2, kind: input, shape index: {}]   ;;  %s2188_s3 = inlined_call_operand.vmem [shape: bf16[2,4,4,64], index: 3, kind: output, shape index: {}]  }
   0x1 LB: > { %s1230_s13 = sadd.s32 4294967295, %s1803_s12   ;;  %p1234_p0 = scmp.ge.s32.totalorder %s1803_s12, 1  ;;  %s1803_s12 = sphi %s1827_s12, %s13_s12  }
   0x2   : > { %p136_p1 = scmp.lt.s32.totalorder %s1803_s12, 3 }
   0x4   : > { %p137_p2 = pnand %p1234_p0, %p136_p1 }
   0x5   : > { %v1725_v0 = vld [vmem:[%s2186_s1 + $0x100] sm:$0xff] (!%p137_p2)   ;;  %v1805_v1 = vmov (!%p137_p2), 0.0   ;;  %v1727_v3 = vld [vmem:[%s2186_s1 + $0x108] sm:$0xff] (!%p137_p2)   ;;  %vm1806_vm0 = vmmov (!%p137_p2), 0   ;;  %p159_p3 = scmp.lt.s32.totalorder (!%p137_p2), %s1230_s13, 1  ;;  %v1729_v5 = vld [vmem:[%s2186_s1 + $0x110] sm:$0xff] (!%p137_p2)   ;;  %v169_v27 = vlaneseq (!%p137_p2) }
   0x6   : > { %140 = sbr.rel (%p137_p2) target bundleno = 387 (0x183), region = 32  ;;  %1535 = vmatprep.subr.bf16.mxu0 (!%p137_p2), %v1805_v1  ;;  %187 = vst [vmem:[#allocation2 + $0x4] sm:$0x7] (!%p137_p2), %v1805_v1  ;;  %1555 = vmatprep.subr.bf16.mxu1 (!%p137_p2), %v1805_v1  ;;  %v1726_v2 = vld [vmem:[%s2186_s1 + $0x140] sm:$0xff] (!%p137_p2)   ;;  %v1728_v4 = vld [vmem:[%s2186_s1 + $0x148] sm:$0xff] (!%p137_p2)   ;;  %v1730_v6 = vld [vmem:[%s2186_s1 + $0x150] sm:$0xff] (!%p137_p2)  }
   0x7   : > { %1536 = vmatpush3.bf16.msra.mxu0 (!%p137_p2), %v1725_v0  ;;  %1551 = vmatprep.mubr.msk.bf16.mxu0 (!%p137_p2), %vm1806_vm0, %v1805_v1  ;;  %v1731_v7 = vld [vmem:[%s2186_s1 + $0x118] sm:$0xff] (!%p137_p2)   ;;  %v1733_v9 = vld [vmem:[%s2186_s1 + $0x120] sm:$0xff] (!%p137_p2)   ;;  %v1735_v13 = vld [vmem:[%s2186_s1 + $0x128] sm:$0xff] (!%p137_p2)   ;;  %v170_v30 = vshrl.u32 (!%p137_p2), %v169_v27, 7  ;;  %vm302_vm3 = vcmask (!%p137_p2), 517120  }
   0x8   : > { %1556 = vmatpush3.bf16.msra.mxu1 (!%p137_p2), %v1726_v2  ;;  %1537 = vmatprep.subr.bf16.mxu0 (!%p137_p2), %v1805_v1  ;;  %v1732_v8 = vld [vmem:[%s2186_s1 + $0x158] sm:$0xff] (!%p137_p2)   ;;  %v1734_v10 = vld [vmem:[%s2186_s1 + $0x160] sm:$0xff] (!%p137_p2)   ;;  %v1736_v14 = vld [vmem:[%s2186_s1 + $0x168] sm:$0xff] (!%p137_p2)  }
   0x9   : > { %1557 = vmatprep.subr.bf16.mxu1 (!%p137_p2), %v1805_v1  ;;  %1571 = vmatprep.mubr.msk.bf16.mxu1 (!%p137_p2), %vm1806_vm0, %v1805_v1  ;;  %v1737_v15 = vld [vmem:[%s2186_s1 + $0x130] sm:$0xff] (!%p137_p2)   ;;  %v1739_v17 = vld [vmem:[%s2186_s1 + $0x138] sm:$0xff] (!%p137_p2)   ;;  %v1741_v19 = vld [vmem:[%s2186_s1 + $0xc0] sm:$0xff] (!%p137_p2)   ;;  %v175_v33 = vand.u32 (!%p137_p2), 1, %v170_v30 }
   0xa   : > { %v1738_v16 = vld [vmem:[%s2186_s1 + $0x170] sm:$0xff] (!%p137_p2)   ;;  %v1740_v18 = vld [vmem:[%s2186_s1 + $0x178] sm:$0xff] (!%p137_p2)   ;;  %v1742_v20 = vld [vmem:[%s2186_s1 + $0x1c0] sm:$0xff] (!%p137_p2)  }
   0xb   : > { %1538 = vmatpush3.bf16.msra.mxu0 (!%p137_p2), %v1727_v3  ;;  %v1743_v21 = vld [vmem:[%s2186_s1 + $0xc8] sm:$0xff] (!%p137_p2)   ;;  %v1745_v23 = vld [vmem:[%s2186_s1 + $0xd0] sm:$0xff] (!%p137_p2)   ;;  %v1747_v25 = vld [vmem:[%s2186_s1 + $0xd8] sm:$0xff] (!%p137_p2)   ;;  %vm183_vm1 = vcmp.lt.s32.totalorder (!%p137_p2), %v175_v33, 1 }
   0xc   : > { %1558 = vmatpush3.bf16.msra.mxu1 (!%p137_p2), %v1728_v4  ;;  %1539 = vmatprep.subr.bf16.mxu0 (!%p137_p2), %v1805_v1  ;;  %v1744_v22 = vld [vmem:[%s2186_s1 + $0x1c8] sm:$0xff] (!%p137_p2)   ;;  %v1746_v24 = vld [vmem:[%s2186_s1 + $0x1d0] sm:$0xff] (!%p137_p2)   ;;  %v1748_v26 = vld [vmem:[%s2186_s1 + $0x1d8] sm:$0xff] (!%p137_p2)  }
   0xd   : > { %s2192_s13 = smov (!%p159_p3, %s1230_s13), 1  ;;  %1559 = vmatprep.subr.bf16.mxu1 %v1805_v1  ;;  %v1749_v28 = vld [vmem:[%s2186_s1 + $0xe0] sm:$0xff]   ;;  %v1751_v31 = vld [vmem:[%s2186_s1 + $0xe8] sm:$0xff]   ;;  %v1753_v34 = vld [vmem:[%s2186_s1 + $0xf0] sm:$0xff]  }
   0xe   : > { %s1235_s28 = sshll.u32 %s2192_s13, 1  ;;  %v1750_v29 = vld [vmem:[%s2186_s1 + $0x1e0] sm:$0xff]   ;;  %v1752_v32 = vld [vmem:[%s2186_s1 + $0x1e8] sm:$0xff]   ;;  %v1754_v35 = vld [vmem:[%s2186_s1 + $0x1f0] sm:$0xff]   ;;  %s1453_s14 = sshll.u32 %s2192_s13, 3 }
   0xf   : > { %1540 = vmatpush3.bf16.msra.mxu0 %v1729_v5  ;;  %s162_s6 = scalar_lea.vmem %s2185_s0, %s1235_s28  ;;  %v1755_v36 = vld [vmem:[%s2186_s1 + $0xf8] sm:$0xff]   ;;  %vm1983_vm2 = vmpackc.low %vm183_vm1, %vm183_vm1  ;;  %v1757_v41 = vld [vmem:[%s2186_s1 + $0x40] sm:$0xff]   ;;  %s2172_s17 = scalar_lea.vmem %s2188_s3, %s1453_s14 }
  0x10   : > { %1560 = vmatpush3.bf16.msra.mxu1 %v1730_v6  ;;  %1541 = vmatprep.subr.bf16.mxu0 %v1805_v1  ;;  %v1886_v11 = vld [vmem:[%s162_s6] sm:$0x3]  ;;  %v1756_v38 = vld [vmem:[%s2186_s1 + $0x1f8] sm:$0xff]   ;;  %v1759_v43 = vld [vmem:[%s2186_s1 + $0x48] sm:$0xff]  }
  0x11   : > { %1561 = vmatprep.subr.bf16.mxu1 %v1805_v1  ;;  %v185_v12 = vunpack.c.l.bf16 %v1886_v11  ;;  %v1758_v42 = vld [vmem:[%s2186_s1 + $0x80] sm:$0xff]   ;;  %v1760_v44 = vld [vmem:[%s2186_s1 + $0x88] sm:$0xff]   ;;  %v1761_v45 = vld [vmem:[%s2186_s1 + $0x50] sm:$0xff]  }
  0x12   : > { %v1762_v46 = vld [vmem:[%s2186_s1 + $0x90] sm:$0xff]   ;;  %v1763_v47 = vld [vmem:[%s2186_s1 + $0x58] sm:$0xff]   ;;  %v1765_v49 = vld [vmem:[%s2186_s1 + $0x60] sm:$0xff]  }
  0x13   : > { %1542 = vmatpush3.bf16.msra.mxu0 %v1731_v7  ;;  %186 = vst [vmem:[#allocation2] sm:$0xf] %v185_v12  ;;  %v1764_v48 = vld [vmem:[%s2186_s1 + $0x98] sm:$0xff]   ;;  %v1766_v50 = vld [vmem:[%s2186_s1 + $0xa0] sm:$0xff]   ;;  %v1767_v51 = vld [vmem:[%s2186_s1 + $0x68] sm:$0xff]  }
  0x14   : > { %1562 = vmatpush3.bf16.msra.mxu1 %v1732_v8  ;;  %1543 = vmatprep.subr.bf16.mxu0 %v1805_v1  ;;  %v1768_v52 = vld [vmem:[%s2186_s1 + $0xa8] sm:$0xff]   ;;  %v1769_v53 = vld [vmem:[%s2186_s1 + $0x70] sm:$0xff]   ;;  %v1771_v55 = vld [vmem:[%s2186_s1 + $0x78] sm:$0xff]  }
  0x15   : > { %1563 = vmatprep.subr.bf16.mxu1 %v1805_v1  ;;  %v1770_v54 = vld [vmem:[%s2186_s1 + $0xb0] sm:$0xff]   ;;  %v1772_v57 = vld [vmem:[%s2186_s1 + $0xb8] sm:$0xff]   ;;  %v1773_v60 = vld [vmem:[%s2186_s1] sm:$0xff]  }
  0x16   : > { %v1774_v62 = vld [vmem:[%s2186_s1 + $0x180] sm:$0xff]   ;;  %v1775_v63 = vld [vmem:[%s2186_s1 + $0x8] sm:$0xff]   ;;  %v1777_v2 = vld [vmem:[%s2186_s1 + $0x10] sm:$0xff]  }
  0x17   : > { %1544 = vmatpush3.bf16.msra.mxu0 %v1733_v9  ;;  %v1776_v0 = vld [vmem:[%s2186_s1 + $0x188] sm:$0xff]   ;;  %v1778_v3 = vld [vmem:[%s2186_s1 + $0x190] sm:$0xff]   ;;  %v1779_v4 = vld [vmem:[%s2186_s1 + $0x18] sm:$0xff]  }
  0x18   : > { %1564 = vmatpush3.bf16.msra.mxu1 %v1734_v10  ;;  %1545 = vmatprep.subr.bf16.mxu0 %v1805_v1  ;;  %v1780_v5 = vld [vmem:[%s2186_s1 + $0x198] sm:$0xff]   ;;  %v1781_v6 = vld [vmem:[%s2186_s1 + $0x20] sm:$0xff]   ;;  %v1783_v8 = vld [vmem:[%s2186_s1 + $0x28] sm:$0xff]  }
  0x19   : > { %1565 = vmatprep.subr.bf16.mxu1 %v1805_v1  ;;  %v1782_v7 = vld [vmem:[%s2186_s1 + $0x1a0] sm:$0xff]   ;;  %v1784_v9 = vld [vmem:[%s2186_s1 + $0x1a8] sm:$0xff]   ;;  %v1785_v10 = vld [vmem:[%s2186_s1 + $0x30] sm:$0xff]  }
  0x1a   : > { %v304_v37 = vld [vmem:[#allocation2 + $0x1] sm:$0xf]  ;;  %v1786_v12 = vld [vmem:[%s2186_s1 + $0x1b0] sm:$0xff]   ;;  %v1254_v27 = vld [vmem:[%s2187_s2] ss:$0 sm:$0xff] }
  0x1b   : > { %1546 = vmatpush3.bf16.msra.mxu0 %v1735_v13  ;;  %v1312_v40 = vpack.c.bf16 %v304_v37, %v304_v37  ;;  %v524_v56 = vld [vmem:[#allocation2 + $0x2] sm:$0xf]  ;;  %v1787_v13 = vld [vmem:[%s2186_s1 + $0x38] sm:$0xff]  }
  0x1c   : > { %1566 = vmatpush3.bf16.msra.mxu1 %v1736_v14  ;;  %1547 = vmatprep.subr.bf16.mxu0 %v1805_v1  ;;  %v760_v58 = vld [vmem:[#allocation2 + $0x2] sm:$0xf]  ;;  %v525_v59 = vpack.c.bf16 %v524_v56, %v524_v56 }
  0x1d   : > { %1567 = vmatprep.subr.bf16.mxu1 %v1805_v1  ;;  %v761_v61 = vpack.c.bf16 %v760_v58, %v760_v58  ;;  %v741_v14 = vld [vmem:[#allocation2 + $0x3] sm:$0xf] }
  0x1f   : > { %1548 = vmatpush3.bf16.msra.mxu0 %v1737_v15  ;;  %v1788_v15 = vld [vmem:[%s2186_s1 + $0x1b8] sm:$0xff]  }
  0x20   : > { %1568 = vmatpush3.bf16.msra.mxu1 %v1738_v16  ;;  %1549 = vmatprep.subr.bf16.mxu0 %v1805_v1  ;;  %v955_v16 = vld [vmem:[#allocation2 + $0x1] sm:$0xf] }
  0x21   : > { %1569 = vmatprep.subr.bf16.mxu1 %v1805_v1 }
  0x23   : > { %1550 = vmatpush3.bf16.msra.mxu0 %v1739_v17  ;;  %v1397_v17 = vpack.c.bf16 %v741_v14, %v741_v14 }
  0x24   : > { %1570 = vmatpush3.bf16.msra.mxu1 %v1740_v18  ;;  %1575 = vmatprep.subr.bf16.mxu0 %v1805_v1  ;;  %v1789_v18 = vld [vmem:[%s2186_s1 + $0x200] sm:$0xff]  }
  0x25   : > { %1595 = vmatprep.subr.bf16.mxu1 %v1805_v1 }
  0x26   : > { %1552 = vmatmul.mubr.bf16.vlgmr.msra.gmra.mrb[0].mxu0 %v1886_v11 }
  0x27   : > { %1576 = vmatpush3.bf16.msra.mxu0 %v1741_v19  ;;  %1572 = vmatmul.mubr.bf16.vlgmr.msra.gmra.mrb[0].mxu1 %v1886_v11  ;;  %v1424_v19 = vpack.c.bf16 %v955_v16, %v955_v16 }
  0x28   : > { %1596 = vmatpush3.bf16.msra.mxu1 %v1742_v20  ;;  %1577 = vmatprep.subr.bf16.mxu0 %v1805_v1  ;;  %v1790_v20 = vld [vmem:[%s2186_s1 + $0x208] sm:$0xff]  }
  0x29   : > { %1597 = vmatprep.subr.bf16.mxu1 %v1805_v1  ;;  %1591 = vmatprep.mubr.msk.bf16.mxu0 %vm1806_vm0, %v1805_v1 }
  0x2a   : > { %1611 = vmatprep.mubr.msk.bf16.mxu1 %vm1806_vm0, %v1805_v1 }
  0x2b   : > { %1578 = vmatpush3.bf16.msra.mxu0 %v1743_v21  ;;  %v1791_v21 = vld [vmem:[%s2186_s1 + $0x210] sm:$0xff]  }
  0x2c   : > { %1598 = vmatpush3.bf16.msra.mxu1 %v1744_v22  ;;  %1579 = vmatprep.subr.bf16.mxu0 %v1805_v1  ;;  %v1792_v22 = vld [vmem:[%s2186_s1 + $0x218] sm:$0xff]  }
  0x2d   : > { %1599 = vmatprep.subr.bf16.mxu1 %v1805_v1 }
  0x2f   : > { %1580 = vmatpush3.bf16.msra.mxu0 %v1745_v23  ;;  %v1793_v23 = vld [vmem:[%s2186_s1 + $0x220] sm:$0xff]  }
  0x30   : > { %1600 = vmatpush3.bf16.msra.mxu1 %v1746_v24  ;;  %1581 = vmatprep.subr.bf16.mxu0 %v1805_v1  ;;  %v1794_v24 = vld [vmem:[%s2186_s1 + $0x228] sm:$0xff]  }
  0x31   : > { %1601 = vmatprep.subr.bf16.mxu1 %v1805_v1 }
  0x33   : > { %1582 = vmatpush3.bf16.msra.mxu0 %v1747_v25  ;;  %v1795_v25 = vld [vmem:[%s2186_s1 + $0x230] sm:$0xff]  }
  0x34   : > { %1602 = vmatpush3.bf16.msra.mxu1 %v1748_v26  ;;  %1583 = vmatprep.subr.bf16.mxu0 %v1805_v1  ;;  %v1796_v26 = vld [vmem:[%s2186_s1 + $0x238] sm:$0xff]  }
  0x35   : > { %1603 = vmatprep.subr.bf16.mxu1 %v1805_v1 }
  0x37   : > { %1584 = vmatpush3.bf16.msra.mxu0 %v1749_v28 }
  0x38   : > { %1604 = vmatpush3.bf16.msra.mxu1 %v1750_v29  ;;  %1585 = vmatprep.subr.bf16.mxu0 %v1805_v1 }
  0x39   : > { %1605 = vmatprep.subr.bf16.mxu1 %v1805_v1 }
  0x3b   : > { %1586 = vmatpush3.bf16.msra.mxu0 %v1751_v31 }
  0x3c   : > { %1606 = vmatpush3.bf16.msra.mxu1 %v1752_v32  ;;  %1587 = vmatprep.subr.bf16.mxu0 %v1805_v1 }
  0x3d   : > { %1607 = vmatprep.subr.bf16.mxu1 %v1805_v1 }
  0x3f   : > { %1588 = vmatpush3.bf16.msra.mxu0 %v1753_v34 }
  0x40   : > { %1608 = vmatpush3.bf16.msra.mxu1 %v1754_v35  ;;  %1589 = vmatprep.subr.bf16.mxu0 %v1805_v1 }
  0x41   : > { %1609 = vmatprep.subr.bf16.mxu1 %v1805_v1 }
  0x43   : > { %1590 = vmatpush3.bf16.msra.mxu0 %v1755_v36 }
  0x44   : > { %1610 = vmatpush3.bf16.msra.mxu1 %v1756_v38  ;;  %1615 = vmatprep.subr.bf16.mxu0 %v1805_v1 }
  0x45   : > { %1635 = vmatprep.subr.bf16.mxu1 %v1805_v1 }
  0x46   : > { %1592 = vmatmul.mubr.msk.bf16.vlgmr.msra.gmra.mrb[4].mxu0 %vm1983_vm2, %v1312_v40 }
  0x47   : > { %1616 = vmatpush3.bf16.msra.mxu0 %v1757_v41  ;;  %1612 = vmatmul.mubr.bf16.vlgmr.msra.gmra.mrb[4].mxu1 %v1886_v11 }
  0x48   : > { %1636 = vmatpush3.bf16.msra.mxu1 %v1758_v42  ;;  %1617 = vmatprep.subr.bf16.mxu0 %v1805_v1 }
  0x49   : > { %1637 = vmatprep.subr.bf16.mxu1 %v1805_v1  ;;  %1631 = vmatprep.mubr.msk.bf16.mxu0 %vm1806_vm0, %v1805_v1 }
  0x4a   : > { %1651 = vmatprep.mubr.msk.bf16.mxu1 %vm1806_vm0, %v1805_v1 }
  0x4b   : > { %1618 = vmatpush3.bf16.msra.mxu0 %v1759_v43 }
  0x4c   : > { %1638 = vmatpush3.bf16.msra.mxu1 %v1760_v44  ;;  %1619 = vmatprep.subr.bf16.mxu0 %v1805_v1 }
  0x4d   : > { %1639 = vmatprep.subr.bf16.mxu1 %v1805_v1 }
  0x4f   : > { %1620 = vmatpush3.bf16.msra.mxu0 %v1761_v45 }
  0x50   : > { %1640 = vmatpush3.bf16.msra.mxu1 %v1762_v46  ;;  %1621 = vmatprep.subr.bf16.mxu0 %v1805_v1 }
  0x51   : > { %1641 = vmatprep.subr.bf16.mxu1 %v1805_v1 }
  0x53   : > { %1622 = vmatpush3.bf16.msra.mxu0 %v1763_v47 }
  0x54   : > { %1642 = vmatpush3.bf16.msra.mxu1 %v1764_v48  ;;  %1623 = vmatprep.subr.bf16.mxu0 %v1805_v1 }
  0x55   : > { %1643 = vmatprep.subr.bf16.mxu1 %v1805_v1 }
  0x57   : > { %1624 = vmatpush3.bf16.msra.mxu0 %v1765_v49 }
  0x58   : > { %1644 = vmatpush3.bf16.msra.mxu1 %v1766_v50  ;;  %1625 = vmatprep.subr.bf16.mxu0 %v1805_v1 }
  0x59   : > { %1645 = vmatprep.subr.bf16.mxu1 %v1805_v1 }
  0x5b   : > { %1626 = vmatpush3.bf16.msra.mxu0 %v1767_v51 }
  0x5c   : > { %1646 = vmatpush3.bf16.msra.mxu1 %v1768_v52  ;;  %1627 = vmatprep.subr.bf16.mxu0 %v1805_v1 }
  0x5d   : > { %1647 = vmatprep.subr.bf16.mxu1 %v1805_v1 }
  0x5f   : > { %1628 = vmatpush3.bf16.msra.mxu0 %v1769_v53 }
  0x60   : > { %1648 = vmatpush3.bf16.msra.mxu1 %v1770_v54  ;;  %1629 = vmatprep.subr.bf16.mxu0 %v1805_v1 }
  0x61   : > { %1649 = vmatprep.subr.bf16.mxu1 %v1805_v1 }
  0x63   : > { %1630 = vmatpush3.bf16.msra.mxu0 %v1771_v55 }
  0x64   : > { %1650 = vmatpush3.bf16.msra.mxu1 %v1772_v57  ;;  %1655 = vmatprep.subr.bf16.mxu0 %v1805_v1 }
  0x65   : > { %1675 = vmatprep.subr.bf16.mxu1 %v1805_v1 }
  0x66   : > { %1632 = vmatmul.mubr.bf16.vlgmr.msra.gmra.mrb[8].mxu0 %v525_v59 }
  0x67   : > { %1656 = vmatpush3.bf16.msra.mxu0 %v1773_v60  ;;  %1652 = vmatmul.mubr.bf16.vlgmr.msra.gmra.mrb[8].mxu1 %v761_v61 }
  0x68   : > { %1676 = vmatpush3.bf16.msra.mxu1 %v1774_v62  ;;  %1657 = vmatprep.subr.bf16.mxu0 %v1805_v1 }
  0x69   : > { %1677 = vmatprep.subr.bf16.mxu1 %v1805_v1  ;;  %1671 = vmatprep.mubr.msk.bf16.mxu0 %vm1806_vm0, %v1805_v1 }
  0x6a   : > { %1691 = vmatprep.mubr.msk.bf16.mxu1 %vm1806_vm0, %v1805_v1 }
  0x6b   : > { %1658 = vmatpush3.bf16.msra.mxu0 %v1775_v63 }
  0x6c   : > { %1678 = vmatpush3.bf16.msra.mxu1 %v1776_v0  ;;  %1659 = vmatprep.subr.bf16.mxu0 %v1805_v1 }
  0x6d   : > { %1679 = vmatprep.subr.bf16.mxu1 %v1805_v1 }
  0x6f   : > { %1660 = vmatpush3.bf16.msra.mxu0 %v1777_v2 }
  0x70   : > { %1680 = vmatpush3.bf16.msra.mxu1 %v1778_v3  ;;  %1661 = vmatprep.subr.bf16.mxu0 %v1805_v1 }
  0x71   : > { %1681 = vmatprep.subr.bf16.mxu1 %v1805_v1 }
  0x73   : > { %1662 = vmatpush3.bf16.msra.mxu0 %v1779_v4 }
  0x74   : > { %1682 = vmatpush3.bf16.msra.mxu1 %v1780_v5  ;;  %1663 = vmatprep.subr.bf16.mxu0 %v1805_v1 }
  0x75   : > { %1683 = vmatprep.subr.bf16.mxu1 %v1805_v1 }
  0x77   : > { %1664 = vmatpush3.bf16.msra.mxu0 %v1781_v6 }
  0x78   : > { %1684 = vmatpush3.bf16.msra.mxu1 %v1782_v7  ;;  %1665 = vmatprep.subr.bf16.mxu0 %v1805_v1 }
  0x79   : > { %1685 = vmatprep.subr.bf16.mxu1 %v1805_v1 }
  0x7b   : > { %1666 = vmatpush3.bf16.msra.mxu0 %v1783_v8 }
  0x7c   : > { %1686 = vmatpush3.bf16.msra.mxu1 %v1784_v9  ;;  %1667 = vmatprep.subr.bf16.mxu0 %v1805_v1 }
  0x7d   : > { %1687 = vmatprep.subr.bf16.mxu1 %v1805_v1 }
  0x7f   : > { %1668 = vmatpush3.bf16.msra.mxu0 %v1785_v10 }
  0x80   : > { %1688 = vmatpush3.bf16.msra.mxu1 %v1786_v12  ;;  %1669 = vmatprep.subr.bf16.mxu0 %v1805_v1 }
  0x81   : > { %1689 = vmatprep.subr.bf16.mxu1 %v1805_v1 }
  0x83   : > { %1670 = vmatpush3.bf16.msra.mxu0 %v1787_v13 }
  0x84   : > { %1690 = vmatpush3.bf16.msra.mxu1 %v1788_v15  ;;  %1695 = vmatprep.subr.bf16.mxu0 %v1805_v1 }
  0x86   : > { %1672 = vmatmul.mubr.msk.bf16.vlgmr.msra.gmra.mrb[12].mxu0 %vm1983_vm2, %v1397_v17 }
  0x87   : > { %1696 = vmatpush3.bf16.msra.mxu0 %v1789_v18  ;;  %1692 = vmatmul.mubr.msk.bf16.vlgmr.msra.gmra.mrb[12].mxu1 %vm1983_vm2, %v1424_v19 }
  0x88   : > { %1697 = vmatprep.subr.bf16.mxu0 %v1805_v1  ;;  %1711 = vmatprep.mubr.msk.bf16.mxu0 %vm1806_vm0, %v1805_v1 }
  0x8b   : > { %1698 = vmatpush3.bf16.msra.mxu0 %v1790_v20 }
  0x8c   : > { %1699 = vmatprep.subr.bf16.mxu0 %v1805_v1 }
  0x8f   : > { %1700 = vmatpush3.bf16.msra.mxu0 %v1791_v21 }
  0x90   : > { %1701 = vmatprep.subr.bf16.mxu0 %v1805_v1 }
  0x93   : > { %1702 = vmatpush3.bf16.msra.mxu0 %v1792_v22 }
  0x94   : > { %1703 = vmatprep.subr.bf16.mxu0 %v1805_v1 }
  0x97   : > { %1704 = vmatpush3.bf16.msra.mxu0 %v1793_v23 }
  0x98   : > { %1705 = vmatprep.subr.bf16.mxu0 %v1805_v1 }
  0x9b   : > { %1706 = vmatpush3.bf16.msra.mxu0 %v1794_v24 }
  0x9c   : > { %1707 = vmatprep.subr.bf16.mxu0 %v1805_v1 }
  0x9f   : > { %1708 = vmatpush3.bf16.msra.mxu0 %v1795_v25 }
  0xa0   : > { %1709 = vmatprep.subr.bf16.mxu0 %v1805_v1 }
  0xa3   : > { %1710 = vmatpush3.bf16.msra.mxu0 %v1796_v26 }
  0xa6   : > { %1712 = vmatmul.mubr.bf16.vlgmr.msra.gmra.mrb[16].mxu0 %v1886_v11 }
  0xf9   : > { %v294_v28 = vpop.f32.mrb[0].mxu0 }
  0xfa   : > { %v295_v29 = vadd.f32 %v1254_v27, %v294_v28  ;;  %v1553_v30 = vpop.f32.mrb[1].mxu0  ;;  %v425_v31 = vpop.f32.mrb[0].mxu1 }
  0xfb   : > { %v297_v32 = vpop.f32.mrb[2].mxu0  ;;  %v1573_v33 = vpop.f32.mrb[1].mxu1 }
  0xfc   : > { %v300_v34 = vmax.f32 %v295_v29, 0.0  ;;  %v1554_v35 = vpop.f32.mrb[3].mxu0  ;;  %v428_v36 = vpop.f32.mrb[2].mxu1 }
  0xfd   : > { %v1574_v1 = vpop.f32.mrb[3].mxu1 }
  0xfe   : > { %v301_v11 = vpack.c.bf16 %v300_v34, %v300_v34 }
 0x100   : > { %303 = vst.msk [vmem:[%s2172_s17] sm:$0x3] %vm302_vm3, %v301_v11 }
 0x119   : > { %v513_v37 = vpop.f32.mrb[4].mxu0 }
 0x11a   : > { %v514_v38 = vadd.f32 %v513_v37, %v425_v31  ;;  %v1593_v39 = vpop.f32.mrb[5].mxu0  ;;  %v642_v40 = vpop.f32.mrb[4].mxu1 }
 0x11b   : > { %v516_v41 = vpop.f32.mrb[6].mxu0  ;;  %v1613_v42 = vpop.f32.mrb[5].mxu1 }
 0x11c   : > { %v519_v43 = vadd.f32 %v1254_v27, %v514_v38  ;;  %v1594_v44 = vpop.f32.mrb[7].mxu0  ;;  %v645_v45 = vpop.f32.mrb[6].mxu1 }
 0x11d   : > { %v1614_v46 = vpop.f32.mrb[7].mxu1 }
 0x11e   : > { %v520_v47 = vmax.f32 %v519_v43, 0.0 }
 0x120   : > { %v521_v48 = vpack.c.bf16 %v520_v47, %v520_v47 }
 0x122   : > { %1314 = vst.msk [vmem:[%s2172_s17 + $0x2] sm:$0x3] %vm302_vm3, %v521_v48 }
 0x139   : > { %v730_v49 = vpop.f32.mrb[8].mxu0 }
 0x13a   : > { %v731_v50 = vadd.f32 %v730_v49, %v642_v40  ;;  %v1633_v51 = vpop.f32.mrb[9].mxu0  ;;  %v861_v52 = vpop.f32.mrb[8].mxu1 }
 0x13b   : > { %v733_v53 = vpop.f32.mrb[10].mxu0  ;;  %v1653_v54 = vpop.f32.mrb[9].mxu1 }
 0x13c   : > { %v736_v55 = vadd.f32 %v1254_v27, %v731_v50  ;;  %v1634_v56 = vpop.f32.mrb[11].mxu0  ;;  %v864_v57 = vpop.f32.mrb[10].mxu1 }
 0x13d   : > { %v1654_v58 = vpop.f32.mrb[11].mxu1 }
 0x13e   : > { %v737_v59 = vmax.f32 %v736_v55, 0.0 }
 0x140   : > { %v738_v60 = vpack.c.bf16 %v737_v59, %v737_v59 }
 0x142   : > { %1363 = vst.msk [vmem:[%s2172_s17 + $0x4] sm:$0x3] %vm302_vm3, %v738_v60 }
 0x159   : > { %v949_v61 = vpop.f32.mrb[12].mxu0 }
 0x15a   : > { %v950_v62 = vadd.f32 %v949_v61, %v861_v52  ;;  %v1673_v63 = vpop.f32.mrb[13].mxu0  ;;  %v1057_v0 = vpop.f32.mrb[12].mxu1 }
 0x15b   : > { %v952_v2 = vpop.f32.mrb[14].mxu0  ;;  %v1693_v3 = vpop.f32.mrb[13].mxu1 }
 0x15c   : > { %v1063_v4 = vadd.f32 %v1057_v0, %v950_v62  ;;  %v1674_v5 = vpop.f32.mrb[15].mxu0  ;;  %v1060_v6 = vpop.f32.mrb[14].mxu1 }
 0x15d   : > { %v1694_v7 = vpop.f32.mrb[15].mxu1 }
 0x179   : > { %v1163_v8 = vpop.f32.mrb[16].mxu0 }
 0x17a   : > { %v1169_v9 = vadd.f32 %v1163_v8, %v1063_v4  ;;  %v1713_v10 = vpop.f32.mrb[17].mxu0 }
 0x17b   : > { %v1166_v12 = vpop.f32.mrb[18].mxu0 }
 0x17c   : > { %v1170_v13 = vadd.f32 %v1254_v27, %v1169_v9  ;;  %v1714_v14 = vpop.f32.mrb[19].mxu0 }
 0x17e   : > { %v1171_v15 = vmax.f32 %v1170_v13, 0.0 }
 0x180   : > { %v1172_v16 = vpack.c.bf16 %v1171_v15, %v1171_v15 }
 0x182   : > { %1450 = vst.msk [vmem:[%s2172_s17 + $0x6] sm:$0x3] %vm302_vm3, %v1172_v16 }
 0x183 PF: > { %s13_s12 = sadd.s32 1, %s1803_s12  }
 0x184   : > { %p10_p4 = scmp.ge.s32.totalorder %s13_s12, 4  }
 0x186   :  { %12 = sbr.rel (!%p10_p4) target bundleno = 1 (0x1), region = 73 }

</bundles_post_ra>
